<compile_context>
chip_gen: v5e
topology: v5e:2x2
jax: 0.10.0
libtpu: 0.0.40
codegen_flags: <defaults>
</compile_context>

<pallas_src>
import functools
import math

import jax
import jax.numpy as jnp
import numpy as np
from jax import lax
from jax.experimental import pallas as pl
from jax.experimental.pallas import tpu as pltpu

# ---------------- small synthetic config (implied by the module) ----------------
TEXT_VOCAB = 50
CPT_VOCAB = 40
EMB = 32          # embedding_dim
HID = 32          # hidden_size  -> da = 32, db = 16
OUT = 4           # output_size
GAMA = 0.5
B = 2
T_TXT = 8         # text sequence length
T_CPT = 6         # concept sequence length
DA = HID
DB = HID // 2
D2 = 2 * HID      # bi-LSTM output width

_SLAB_COLS = 8 * HID      # 256 lanes (widest packed tensor)


def _round8(n):
    return (n + 7) // 8 * 8


def _make_layout():
    """name -> (row offset, rows, cols) inside the single packed weight slab."""
    sizes = [
        ('win',  2 * EMB, 8 * HID),            # [fwd|bwd] input weights, gate-major lanes
        ('wh',   2 * HID, 8 * HID),            # [fwd|bwd] recurrent weights
        ('bi',   1,       8 * HID),            # folded gate bias
        ('wl1',  EMB + D2, 5 * (DA + DB)),     # fused layer-1 (cst|ccs)
        ('bl1',  1,        5 * (DA + DB)),
        ('wl2',  5 * (DA + DB), 4 * (DA + DB)),
        ('bl2',  1,             4 * (DA + DB)),
        ('wl3',  4 * (DA + DB), 3 * (DA + DB)),
        ('bl3',  1,             3 * (DA + DB)),
        ('wl4',  3 * (DA + DB), 2 * (DA + DB)),
        ('bl4',  1,             2 * (DA + DB)),
        ('wl5',  2 * (DA + DB), DA + DB),
        ('bl5',  1,             DA + DB),
        ('vcat', DA + DB, 2),                  # [v1 | v2] score columns
        ('gvec', 2, 1),                        # [gama ; 1-gama]
        ('woq',  D2, OUT),
        ('wop',  EMB, OUT),
        ('bo',   1, OUT),
        ('amask', T_TXT * B, T_TXT * B),       # additive same-batch attention mask
        ('seg',   B * T_CPT, B),               # concept-row -> batch indicator
        ('segT',  B, B * T_CPT),
    ]
    layout, off = {}, 0
    for name, nr, nc in sizes:
        layout[name] = (off, nr, nc)
        off += _round8(nr)
    return layout, off


LAYOUT, SLAB_ROWS = _make_layout()             # SLAB_ROWS == 1144 (multiple of 8)


# ============================ fused kernel ============================
def fused_stcka_kernel(x2_ref, c_ref, slab_ref, out_ref, h_scr, *, nt, nb, hid):
    f32 = jnp.float32
    d2 = 2 * hid

    def W(name):
        r0, nr, nc = LAYOUT[name]
        return slab_ref[r0:r0 + nr, 0:nc]

    # ---------------- bi-LSTM: fwd + bwd fused per step ----------------
    # gi row s*B+b holds fwd gates (x at time s) and bwd gates (x at time T-1-s)
    # side by side; gate-major lane layout [i | f | o | g], each group 2H wide
    # (fwd lanes 0:H, bwd lanes H:2H inside each group).
    gi = jnp.dot(x2_ref[...], W('win'), preferred_element_type=f32) + W('bi')   # (T*B, 8H)
    wh = W('wh')                                                                # (2H, 8H)

    h2 = jnp.zeros((nb, d2), f32)              # [h_fwd | h_bwd]
    c2 = jnp.zeros((nb, d2), f32)
    for s in range(nt):                        # static, fully unrolled
        g = gi[s * nb:(s + 1) * nb, :] + jnp.dot(h2, wh, preferred_element_type=f32)
        sig = jax.nn.sigmoid(g[:, 0:3 * d2])   # one sigmoid slab for i, f, o
        gg = jnp.tanh(g[:, 3 * d2:4 * d2])     # one tanh for g
        c2 = sig[:, d2:2 * d2] * c2 + sig[:, 0:d2] * gg
        h2 = sig[:, 2 * d2:3 * d2] * jnp.tanh(c2)
        # scatter into time-major scratch: fwd half at time s, bwd half at time T-1-s
        h_scr[s * nb:(s + 1) * nb, 0:hid] = h2[:, 0:hid]
        h_scr[(nt - 1 - s) * nb:(nt - s) * nb, hid:d2] = h2[:, hid:d2]

    hmat = h_scr[...]                          # (T*B, 2H), row = t*B + b

    # ---------------- batched masked self-attention + max-pool over time ----------------
    inv = 1.0 / math.sqrt(d2)
    sc = lax.dot_general(hmat * inv, hmat, (((1,), (1,)), ((), ())),
                         preferred_element_type=f32)                 # (TB, TB)
    attn = jax.nn.softmax(sc + W('amask'), axis=-1)                   # cross-batch masked
    a = jnp.dot(attn, hmat, preferred_element_type=f32)               # (TB, 2H)
    q = a[0:nb, :]
    for s in range(1, nt):
        q = jnp.maximum(q, a[s * nb:(s + 1) * nb, :])                 # (B, 2H)

    # ---------------- fused cst + ccs deep MLPs (block-diagonal layers) ----------------
    cmat = c_ref[...]                          # (B*Cn, E)
    seg = W('seg')                             # (B*Cn, B) 0/1 indicator
    segT = W('segT')                           # (B, B*Cn)
    q_rows = jnp.dot(seg, q, preferred_element_type=f32)              # replicate q per row

    off1, _, nc1 = LAYOUT['wl1']
    w1c = slab_ref[off1:off1 + EMB, 0:nc1]                            # acts on c
    w1q = slab_ref[off1 + EMB:off1 + EMB + d2, 0:nc1]                 # acts on q (cst only)
    x1 = jnp.tanh(jnp.dot(cmat, w1c, preferred_element_type=f32)
                  + jnp.dot(q_rows, w1q, preferred_element_type=f32) + W('bl1'))
    x1 = jnp.tanh(jnp.dot(x1, W('wl2'), preferred_element_type=f32) + W('bl2'))
    x1 = jnp.tanh(jnp.dot(x1, W('wl3'), preferred_element_type=f32) + W('bl3'))
    x1 = jnp.tanh(jnp.dot(x1, W('wl4'), preferred_element_type=f32) + W('bl4'))
    x1 = jnp.tanh(jnp.dot(x1, W('wl5'), preferred_element_type=f32) + W('bl5'))
    s12 = jnp.dot(x1, W('vcat'), preferred_element_type=f32)          # (B*Cn, 2): [cst|ccs]

    # segmented softmax over each sample's Cn concepts (both columns at once);
    # per-column global max-shift is exact for a segmented softmax.
    e12 = jnp.exp(s12 - jnp.max(s12, axis=0, keepdims=True))
    den = jnp.dot(seg, jnp.dot(segT, e12, preferred_element_type=f32),
                  preferred_element_type=f32)                         # per-row group sums
    ab = e12 / den                                                    # alpha | beta

    wmix = jnp.dot(ab, W('gvec'), preferred_element_type=f32)         # gama*a + (1-gama)*b
    e3 = jnp.exp(wmix - jnp.max(wmix, axis=0, keepdims=True))
    gden = jnp.dot(seg, jnp.dot(segT, e3, preferred_element_type=f32),
                   preferred_element_type=f32)
    gate = e3 / gden                                                  # (B*Cn, 1)
    p = jnp.dot(segT, gate * cmat, preferred_element_type=f32)        # (B, E)

    # ---------------- output Linear on [q | p] ----------------
    out_ref[...] = (jnp.dot(q, W('woq'), preferred_element_type=f32)
                    + jnp.dot(p, W('wop'), preferred_element_type=f32) + W('bo'))


# ============================ parameter packing ============================
def pack_params(p):
    """One-time re-layout of the PyTorch-style params into a single kernel slab."""
    h = HID

    def npf(a):
        return np.asarray(a, np.float32)

    def reorder(w):
        # PyTorch gate order (i, f, g, o) -> kernel order (i, f, o, g).
        w = npf(w)
        return np.concatenate([w[:, 0:h], w[:, h:2 * h], w[:, 3 * h:4 * h], w[:, 2 * h:3 * h]],
                              axis=1)

    def scatter_gates(w, dir_off):
        # (rows, 4H) gate-order (i,f,o,g) -> (rows, 8H) gate-major 2H groups,
        # this direction's H lanes at offset dir_off inside each group.
        out = np.zeros((w.shape[0], 8 * h), np.float32)
        for gidx in range(4):
            out[:, gidx * 2 * h + dir_off: gidx * 2 * h + dir_off + h] = w[:, gidx * h:(gidx + 1) * h]
        return out

    def blockdiag(a, b):
        a, b = npf(a), npf(b)
        out = np.zeros((a.shape[0] + b.shape[0], a.shape[1] + b.shape[1]), np.float32)
        out[:a.shape[0], :a.shape[1]] = a
        out[a.shape[0]:, a.shape[1]:] = b
        return out

    ent = {}
    ent['win'] = np.concatenate([scatter_gates(reorder(p['wif']), 0),
                                 scatter_gates(reorder(p['wib']), h)], axis=0)
    ent['wh'] = np.concatenate([scatter_gates(reorder(p['whf']), 0),
                                scatter_gates(reorder(p['whb']), h)], axis=0)
    ent['bi'] = scatter_gates(reorder(p['bf']), 0) + scatter_gates(reorder(p['bb']), h)

    wl1 = np.zeros((EMB + D2, 5 * (DA + DB)), np.float32)
    wl1[0:EMB, 0:5 * DA] = npf(p['w1c'])
    wl1[EMB:, 0:5 * DA] = npf(p['w1q'])
    wl1[0:EMB, 5 * DA:] = npf(p['w2'])
    ent['wl1'] = wl1
    ent['bl1'] = np.concatenate([npf(p['b1']), npf(p['b2'])], axis=1)
    ent['wl2'] = blockdiag(p['w12'], p['w22'])
    ent['bl2'] = np.concatenate([npf(p['b12']), npf(p['b22'])], axis=1)
    ent['wl3'] = blockdiag(p['w13'], p['w23'])
    ent['bl3'] = np.concatenate([npf(p['b13']), npf(p['b23'])], axis=1)
    ent['wl4'] = blockdiag(p['w14'], p['w24'])
    ent['bl4'] = np.concatenate([npf(p['b14']), npf(p['b24'])], axis=1)
    ent['wl5'] = blockdiag(p['w15'], p['w25'])
    ent['bl5'] = np.concatenate([npf(p['b15']), npf(p['b25'])], axis=1)
    ent['vcat'] = blockdiag(npf(p['v1']).T, npf(p['v2']).T)            # (DA+DB, 2)
    ent['gvec'] = np.array([[GAMA], [1.0 - GAMA]], np.float32)
    ent['woq'] = npf(p['woq'])
    ent['wop'] = npf(p['wop'])
    ent['bo'] = npf(p['bo'])

    bid = np.arange(T_TXT * B) % B
    ent['amask'] = np.where(bid[:, None] == bid[None, :], 0.0, -1e30).astype(np.float32)
    grp = np.arange(B * T_CPT) // T_CPT
    seg = (grp[:, None] == np.arange(B)[None, :]).astype(np.float32)
    ent['seg'] = seg
    ent['segT'] = np.ascontiguousarray(seg.T)

    slab = np.zeros((SLAB_ROWS, _SLAB_COLS), np.float32)
    for name, (off, nr, nc) in LAYOUT.items():
        arr = ent[name]
        assert arr.shape == (nr, nc), (name, arr.shape, (nr, nc))
        slab[off:off + nr, 0:nc] = arr
    return {'slab': jnp.asarray(slab),
            'txt_emb': p['txt_emb'],
            'cpt_emb': p['cpt_emb']}


# ============================ wrapper ============================
@jax.jit
def forward(packed, txt_ids, cpt_ids):
    Bn, Tn = txt_ids.shape
    Cn = cpt_ids.shape[1]

    # Embedding gathers (glue).  Time-major rows s*B+b; backward direction gets the
    # time-reversed embedding lane-concatenated so each LSTM step reads one row block.
    emb = jnp.take(packed['txt_emb'], txt_ids, axis=0)                      # (B, T, E)
    x_time = jnp.transpose(emb, (1, 0, 2)).reshape(Tn * Bn, EMB)
    x_rev = jnp.transpose(emb[:, ::-1, :], (1, 0, 2)).reshape(Tn * Bn, EMB)
    x2 = jnp.concatenate([x_time, x_rev], axis=-1)                          # (T*B, 2E)
    c_flat = jnp.take(packed['cpt_emb'], cpt_ids.reshape(-1), axis=0)       # (B*Cn, E)

    kernel = functools.partial(fused_stcka_kernel, nt=Tn, nb=Bn, hid=HID)
    vmem = lambda: pl.BlockSpec(memory_space=pltpu.MemorySpace.VMEM)
    return pl.pallas_call(
        kernel,
        out_shape=jax.ShapeDtypeStruct((Bn, OUT), jnp.float32),
        in_specs=[vmem(), vmem(), vmem()],
        out_specs=vmem(),
        scratch_shapes=[pltpu.VMEM((Tn * Bn, 2 * HID), jnp.float32)],
    )(x2, c_flat, packed['slab'])


# ============================ parameter init ============================
def init_params(key):
    keys = iter(jax.random.split(key, 64))

    def mat(shape, scale=0.1):
        return (scale * jax.random.normal(next(keys), shape)).astype(jnp.float32)

    p = {}
    p['txt_emb'] = mat((TEXT_VOCAB, EMB))
    p['cpt_emb'] = mat((CPT_VOCAB, EMB))
    # LSTM (PyTorch gate order i, f, g, o); stored transposed (in, 4H); bias = b_ih + b_hh
    p['wif'] = mat((EMB, 4 * HID)); p['whf'] = mat((HID, 4 * HID)); p['bf'] = mat((1, 4 * HID))
    p['wib'] = mat((EMB, 4 * HID)); p['whb'] = mat((HID, 4 * HID)); p['bb'] = mat((1, 4 * HID))
    # cst attention MLP (W1 acts on concat(c, q): split rows into c-part and q-part)
    p['w1c'] = mat((EMB, 5 * DA)); p['w1q'] = mat((D2, 5 * DA)); p['b1'] = mat((1, 5 * DA))
    p['w12'] = mat((5 * DA, 4 * DA)); p['b12'] = mat((1, 4 * DA))
    p['w13'] = mat((4 * DA, 3 * DA)); p['b13'] = mat((1, 3 * DA))
    p['w14'] = mat((3 * DA, 2 * DA)); p['b14'] = mat((1, 2 * DA))
    p['w15'] = mat((2 * DA, DA));     p['b15'] = mat((1, DA))
    p['v1'] = mat((1, DA))
    # ccs attention MLP
    p['w2'] = mat((EMB, 5 * DB));     p['b2'] = mat((1, 5 * DB))
    p['w22'] = mat((5 * DB, 4 * DB)); p['b22'] = mat((1, 4 * DB))
    p['w23'] = mat((4 * DB, 3 * DB)); p['b23'] = mat((1, 3 * DB))
    p['w24'] = mat((3 * DB, 2 * DB)); p['b24'] = mat((1, 2 * DB))
    p['w25'] = mat((2 * DB, DB));     p['b25'] = mat((1, DB))
    p['v2'] = mat((1, DB))
    # output Linear acts on concat(q, p): split rows into q-part and p-part
    p['woq'] = mat((D2, OUT)); p['wop'] = mat((EMB, OUT)); p['bo'] = mat((1, OUT))
    return p


# ============================ plain-JAX reference ============================
def reference_forward(params, txt_ids, cpt_ids):
    x = params['txt_emb'][txt_ids]
    Bn = x.shape[0]
    Hs = HID

    def run_dir(xs, wi, wh, b):
        def step(carry, x_t):
            h, c = carry
            g = x_t @ wi + h @ wh + b
            i = jax.nn.sigmoid(g[:, :Hs]); f = jax.nn.sigmoid(g[:, Hs:2 * Hs])
            gg = jnp.tanh(g[:, 2 * Hs:3 * Hs]); o = jax.nn.sigmoid(g[:, 3 * Hs:])
            c = f * c + i * gg
            h = o * jnp.tanh(c)
            return (h, c), h
        init = (jnp.zeros((Bn, Hs)), jnp.zeros((Bn, Hs)))
        _, hs = jax.lax.scan(step, init, jnp.transpose(xs, (1, 0, 2)))
        return jnp.transpose(hs, (1, 0, 2))

    hf = run_dir(x, params['wif'], params['whf'], params['bf'][0])
    hb = run_dir(x[:, ::-1], params['wib'], params['whb'], params['bb'][0])[:, ::-1]
    Hseq = jnp.concatenate([hf, hb], axis=-1)
    Dv = Hseq.shape[-1]
    s = jnp.einsum('btd,bsd->bts', Hseq, Hseq) / math.sqrt(Dv)
    A = jnp.einsum('bts,bsd->btd', jax.nn.softmax(s, axis=-1), Hseq)
    q = jnp.max(A, axis=1)
    c = params['cpt_emb'][cpt_ids]
    Cn = c.shape[1]
    qe = jnp.broadcast_to(q[:, None, :], (Bn, Cn, Dv))
    x1 = jnp.tanh(c @ params['w1c'] + qe @ params['w1q'] + params['b1'])
    x1 = jnp.tanh(x1 @ params['w12'] + params['b12'])
    x1 = jnp.tanh(x1 @ params['w13'] + params['b13'])
    x1 = jnp.tanh(x1 @ params['w14'] + params['b14'])
    x1 = jnp.tanh(x1 @ params['w15'] + params['b15'])
    alpha = jax.nn.softmax(jnp.sum(x1 * params['v1'], axis=-1), axis=-1)
    y1 = jnp.tanh(c @ params['w2'] + params['b2'])
    y1 = jnp.tanh(y1 @ params['w22'] + params['b22'])
    y1 = jnp.tanh(y1 @ params['w23'] + params['b23'])
    y1 = jnp.tanh(y1 @ params['w24'] + params['b24'])
    y1 = jnp.tanh(y1 @ params['w25'] + params['b25'])
    beta = jax.nn.softmax(jnp.sum(y1 * params['v2'], axis=-1), axis=-1)
    gate = jax.nn.softmax(GAMA * alpha + (1 - GAMA) * beta, axis=-1)
    p = jnp.einsum('bc,bce->be', gate, c)
    return q @ params['woq'] + p @ params['wop'] + params['bo']


if __name__ == "__main__":
    key = jax.random.PRNGKey(0)
    kp, k1, k2 = jax.random.split(key, 3)
    params = init_params(kp)
    packed = pack_params(params)
    txt_ids = jax.random.randint(k1, (B, T_TXT), 0, TEXT_VOCAB)
    cpt_ids = jax.random.randint(k2, (B, T_CPT), 0, CPT_VOCAB)

    logit = forward(packed, txt_ids, cpt_ids)
    logit = jax.block_until_ready(logit)

    ref = reference_forward(params, txt_ids, cpt_ids)
    assert logit.shape == (B, OUT)
    assert np.allclose(np.asarray(logit), np.asarray(ref), atol=1e-3, rtol=1e-3), (
        "max abs diff", float(np.max(np.abs(np.asarray(logit) - np.asarray(ref)))))
    print("KERNEL_OK")
</pallas_src>

<mosaic_0001>
module attributes {stable_mosaic.version = 11 : i64} {
  func.func @fused_stcka_kernel(%arg0: memref<16x64xf32, #tpu.memory_space<vmem>>, %arg1: memref<12x32xf32, #tpu.memory_space<vmem>>, %arg2: memref<1144x256xf32, #tpu.memory_space<vmem>>, %arg3: memref<2x4xf32, #tpu.memory_space<vmem>>, %arg4: memref<16x64xf32, #tpu.memory_space<vmem>>) attributes {dimension_semantics = [], scalar_prefetch = 0 : i64, scratch_operands = 1 : i64, tpu.core_type = #tpu.core_type<tc>} {
    %c0 = arith.constant 0 : index
    %c0_0 = arith.constant 0 : index
    %0 = vector.load %arg0[%c0, %c0_0] : memref<16x64xf32, #tpu.memory_space<vmem>>, vector<16x64xf32>
    %c0_1 = arith.constant 0 : index
    %c0_2 = arith.constant 0 : index
    %1 = vector.load %arg2[%c0_1, %c0_2] : memref<1144x256xf32, #tpu.memory_space<vmem>>, vector<64x256xf32>
    %cst = arith.constant dense<0.000000e+00> : vector<16x256xf32>
    %2 = tpu.matmul %0, %1, %cst {dimension_numbers = #tpu.dot_dimension_numbers<[1], [0], [0], [1], [0, 0, 1, 1], [], []>} : vector<16x64xf32>, vector<64x256xf32>, vector<16x256xf32> -> vector<16x256xf32>
    %c128 = arith.constant 128 : index
    %c0_3 = arith.constant 0 : index
    %3 = vector.load %arg2[%c128, %c0_3] : memref<1144x256xf32, #tpu.memory_space<vmem>>, vector<1x256xf32>
    %4 = vector.broadcast %3 : vector<1x256xf32> to vector<16x256xf32>
    %5 = arith.addf %2, %4 : vector<16x256xf32>
    %c64 = arith.constant 64 : index
    %c0_4 = arith.constant 0 : index
    %6 = vector.load %arg2[%c64, %c0_4] : memref<1144x256xf32, #tpu.memory_space<vmem>>, vector<64x256xf32>
    %cst_5 = arith.constant 0.000000e+00 : f32
    %7 = vector.broadcast %cst_5 : f32 to vector<2x64xf32>
    %cst_6 = arith.constant 0.000000e+00 : f32
    %8 = vector.broadcast %cst_6 : f32 to vector<2x64xf32>
    %9 = vector.extract_strided_slice %5 {offsets = [0, 0], sizes = [2, 256], strides = [1, 1]} : vector<16x256xf32> to vector<2x256xf32>
    %cst_7 = arith.constant dense<0.000000e+00> : vector<2x256xf32>
    %10 = tpu.matmul %7, %6, %cst_7 {dimension_numbers = #tpu.dot_dimension_numbers<[1], [0], [0], [1], [0, 0, 1, 1], [], []>} : vector<2x64xf32>, vector<64x256xf32>, vector<2x256xf32> -> vector<2x256xf32>
    %11 = arith.addf %9, %10 : vector<2x256xf32>
    %12 = vector.extract_strided_slice %11 {offsets = [0, 0], sizes = [2, 192], strides = [1, 1]} : vector<2x256xf32> to vector<2x192xf32>
    %13 = arith.negf %12 : vector<2x192xf32>
    %14 = math.exp %13 : vector<2x192xf32>
    %cst_8 = arith.constant 1.000000e+00 : f32
    %15 = vector.broadcast %cst_8 : f32 to vector<2x192xf32>
    %16 = arith.addf %15, %14 : vector<2x192xf32>
    %17 = arith.divf %15, %16 : vector<2x192xf32>
    %18 = vector.extract_strided_slice %11 {offsets = [0, 192], sizes = [2, 64], strides = [1, 1]} : vector<2x256xf32> to vector<2x64xf32>
    %19 = math.tanh %18 : vector<2x64xf32>
    %20 = vector.extract_strided_slice %17 {offsets = [0, 64], sizes = [2, 64], strides = [1, 1]} : vector<2x192xf32> to vector<2x64xf32>
    %21 = arith.mulf %20, %8 : vector<2x64xf32>
    %22 = vector.extract_strided_slice %17 {offsets = [0, 0], sizes = [2, 64], strides = [1, 1]} : vector<2x192xf32> to vector<2x64xf32>
    %23 = arith.mulf %22, %19 : vector<2x64xf32>
    %24 = arith.addf %21, %23 : vector<2x64xf32>
    %25 = vector.extract_strided_slice %17 {offsets = [0, 128], sizes = [2, 64], strides = [1, 1]} : vector<2x192xf32> to vector<2x64xf32>
    %26 = math.tanh %24 : vector<2x64xf32>
    %27 = arith.mulf %25, %26 : vector<2x64xf32>
    %28 = vector.extract_strided_slice %27 {offsets = [0, 0], sizes = [2, 32], strides = [1, 1]} : vector<2x64xf32> to vector<2x32xf32>
    %c0_9 = arith.constant 0 : index
    %c0_10 = arith.constant 0 : index
    %29 = vector.load %arg4[%c0_9, %c0_10] : memref<16x64xf32, #tpu.memory_space<vmem>>, vector<2x32xf32>
    tpu.vector_store %arg4[%c0_9, %c0_10], %28 {strides = array<i32>} : memref<16x64xf32, #tpu.memory_space<vmem>>, vector<2x32xf32>,
    %30 = vector.extract_strided_slice %27 {offsets = [0, 32], sizes = [2, 32], strides = [1, 1]} : vector<2x64xf32> to vector<2x32xf32>
    %c14 = arith.constant 14 : index
    %c32 = arith.constant 32 : index
    %31 = vector.load %arg4[%c14, %c32] : memref<16x64xf32, #tpu.memory_space<vmem>>, vector<2x32xf32>
    tpu.vector_store %arg4[%c14, %c32], %30 {strides = array<i32>} : memref<16x64xf32, #tpu.memory_space<vmem>>, vector<2x32xf32>,
    %32 = vector.extract_strided_slice %5 {offsets = [2, 0], sizes = [2, 256], strides = [1, 1]} : vector<16x256xf32> to vector<2x256xf32>
    %cst_11 = arith.constant dense<0.000000e+00> : vector<2x256xf32>
    %33 = tpu.matmul %27, %6, %cst_11 {dimension_numbers = #tpu.dot_dimension_numbers<[1], [0], [0], [1], [0, 0, 1, 1], [], []>} : vector<2x64xf32>, vector<64x256xf32>, vector<2x256xf32> -> vector<2x256xf32>
    %34 = arith.addf %32, %33 : vector<2x256xf32>
    %35 = vector.extract_strided_slice %34 {offsets = [0, 0], sizes = [2, 192], strides = [1, 1]} : vector<2x256xf32> to vector<2x192xf32>
    %36 = arith.negf %35 : vector<2x192xf32>
    %37 = math.exp %36 : vector<2x192xf32>
    %cst_12 = arith.constant 1.000000e+00 : f32
    %38 = vector.broadcast %cst_12 : f32 to vector<2x192xf32>
    %39 = arith.addf %38, %37 : vector<2x192xf32>
    %40 = arith.divf %38, %39 : vector<2x192xf32>
    %41 = vector.extract_strided_slice %34 {offsets = [0, 192], sizes = [2, 64], strides = [1, 1]} : vector<2x256xf32> to vector<2x64xf32>
    %42 = math.tanh %41 : vector<2x64xf32>
    %43 = vector.extract_strided_slice %40 {offsets = [0, 64], sizes = [2, 64], strides = [1, 1]} : vector<2x192xf32> to vector<2x64xf32>
    %44 = arith.mulf %43, %24 : vector<2x64xf32>
    %45 = vector.extract_strided_slice %40 {offsets = [0, 0], sizes = [2, 64], strides = [1, 1]} : vector<2x192xf32> to vector<2x64xf32>
    %46 = arith.mulf %45, %42 : vector<2x64xf32>
    %47 = arith.addf %44, %46 : vector<2x64xf32>
    %48 = vector.extract_strided_slice %40 {offsets = [0, 128], sizes = [2, 64], strides = [1, 1]} : vector<2x192xf32> to vector<2x64xf32>
    %49 = math.tanh %47 : vector<2x64xf32>
    %50 = arith.mulf %48, %49 : vector<2x64xf32>
    %51 = vector.extract_strided_slice %50 {offsets = [0, 0], sizes = [2, 32], strides = [1, 1]} : vector<2x64xf32> to vector<2x32xf32>
    %c2 = arith.constant 2 : index
    %c0_13 = arith.constant 0 : index
    %52 = vector.load %arg4[%c2, %c0_13] : memref<16x64xf32, #tpu.memory_space<vmem>>, vector<2x32xf32>
    tpu.vector_store %arg4[%c2, %c0_13], %51 {strides = array<i32>} : memref<16x64xf32, #tpu.memory_space<vmem>>, vector<2x32xf32>,
    %53 = vector.extract_strided_slice %50 {offsets = [0, 32], sizes = [2, 32], strides = [1, 1]} : vector<2x64xf32> to vector<2x32xf32>
    %c12 = arith.constant 12 : index
    %c32_14 = arith.constant 32 : index
    %54 = vector.load %arg4[%c12, %c32_14] : memref<16x64xf32, #tpu.memory_space<vmem>>, vector<2x32xf32>
    tpu.vector_store %arg4[%c12, %c32_14], %53 {strides = array<i32>} : memref<16x64xf32, #tpu.memory_space<vmem>>, vector<2x32xf32>,
    %55 = vector.extract_strided_slice %5 {offsets = [4, 0], sizes = [2, 256], strides = [1, 1]} : vector<16x256xf32> to vector<2x256xf32>
    %cst_15 = arith.constant dense<0.000000e+00> : vector<2x256xf32>
    %56 = tpu.matmul %50, %6, %cst_15 {dimension_numbers = #tpu.dot_dimension_numbers<[1], [0], [0], [1], [0, 0, 1, 1], [], []>} : vector<2x64xf32>, vector<64x256xf32>, vector<2x256xf32> -> vector<2x256xf32>
    %57 = arith.addf %55, %56 : vector<2x256xf32>
    %58 = vector.extract_strided_slice %57 {offsets = [0, 0], sizes = [2, 192], strides = [1, 1]} : vector<2x256xf32> to vector<2x192xf32>
    %59 = arith.negf %58 : vector<2x192xf32>
    %60 = math.exp %59 : vector<2x192xf32>
    %cst_16 = arith.constant 1.000000e+00 : f32
    %61 = vector.broadcast %cst_16 : f32 to vector<2x192xf32>
    %62 = arith.addf %61, %60 : vector<2x192xf32>
    %63 = arith.divf %61, %62 : vector<2x192xf32>
    %64 = vector.extract_strided_slice %57 {offsets = [0, 192], sizes = [2, 64], strides = [1, 1]} : vector<2x256xf32> to vector<2x64xf32>
    %65 = math.tanh %64 : vector<2x64xf32>
    %66 = vector.extract_strided_slice %63 {offsets = [0, 64], sizes = [2, 64], strides = [1, 1]} : vector<2x192xf32> to vector<2x64xf32>
    %67 = arith.mulf %66, %47 : vector<2x64xf32>
    %68 = vector.extract_strided_slice %63 {offsets = [0, 0], sizes = [2, 64], strides = [1, 1]} : vector<2x192xf32> to vector<2x64xf32>
    %69 = arith.mulf %68, %65 : vector<2x64xf32>
    %70 = arith.addf %67, %69 : vector<2x64xf32>
    %71 = vector.extract_strided_slice %63 {offsets = [0, 128], sizes = [2, 64], strides = [1, 1]} : vector<2x192xf32> to vector<2x64xf32>
    %72 = math.tanh %70 : vector<2x64xf32>
    %73 = arith.mulf %71, %72 : vector<2x64xf32>
    %74 = vector.extract_strided_slice %73 {offsets = [0, 0], sizes = [2, 32], strides = [1, 1]} : vector<2x64xf32> to vector<2x32xf32>
    %c4 = arith.constant 4 : index
    %c0_17 = arith.constant 0 : index
    %75 = vector.load %arg4[%c4, %c0_17] : memref<16x64xf32, #tpu.memory_space<vmem>>, vector<2x32xf32>
    tpu.vector_store %arg4[%c4, %c0_17], %74 {strides = array<i32>} : memref<16x64xf32, #tpu.memory_space<vmem>>, vector<2x32xf32>,
    %76 = vector.extract_strided_slice %73 {offsets = [0, 32], sizes = [2, 32], strides = [1, 1]} : vector<2x64xf32> to vector<2x32xf32>
    %c10 = arith.constant 10 : index
    %c32_18 = arith.constant 32 : index
    %77 = vector.load %arg4[%c10, %c32_18] : memref<16x64xf32, #tpu.memory_space<vmem>>, vector<2x32xf32>
    tpu.vector_store %arg4[%c10, %c32_18], %76 {strides = array<i32>} : memref<16x64xf32, #tpu.memory_space<vmem>>, vector<2x32xf32>,
    %78 = vector.extract_strided_slice %5 {offsets = [6, 0], sizes = [2, 256], strides = [1, 1]} : vector<16x256xf32> to vector<2x256xf32>
    %cst_19 = arith.constant dense<0.000000e+00> : vector<2x256xf32>
    %79 = tpu.matmul %73, %6, %cst_19 {dimension_numbers = #tpu.dot_dimension_numbers<[1], [0], [0], [1], [0, 0, 1, 1], [], []>} : vector<2x64xf32>, vector<64x256xf32>, vector<2x256xf32> -> vector<2x256xf32>
    %80 = arith.addf %78, %79 : vector<2x256xf32>
    %81 = vector.extract_strided_slice %80 {offsets = [0, 0], sizes = [2, 192], strides = [1, 1]} : vector<2x256xf32> to vector<2x192xf32>
    %82 = arith.negf %81 : vector<2x192xf32>
    %83 = math.exp %82 : vector<2x192xf32>
    %cst_20 = arith.constant 1.000000e+00 : f32
    %84 = vector.broadcast %cst_20 : f32 to vector<2x192xf32>
    %85 = arith.addf %84, %83 : vector<2x192xf32>
    %86 = arith.divf %84, %85 : vector<2x192xf32>
    %87 = vector.extract_strided_slice %80 {offsets = [0, 192], sizes = [2, 64], strides = [1, 1]} : vector<2x256xf32> to vector<2x64xf32>
    %88 = math.tanh %87 : vector<2x64xf32>
    %89 = vector.extract_strided_slice %86 {offsets = [0, 64], sizes = [2, 64], strides = [1, 1]} : vector<2x192xf32> to vector<2x64xf32>
    %90 = arith.mulf %89, %70 : vector<2x64xf32>
    %91 = vector.extract_strided_slice %86 {offsets = [0, 0], sizes = [2, 64], strides = [1, 1]} : vector<2x192xf32> to vector<2x64xf32>
    %92 = arith.mulf %91, %88 : vector<2x64xf32>
    %93 = arith.addf %90, %92 : vector<2x64xf32>
    %94 = vector.extract_strided_slice %86 {offsets = [0, 128], sizes = [2, 64], strides = [1, 1]} : vector<2x192xf32> to vector<2x64xf32>
    %95 = math.tanh %93 : vector<2x64xf32>
    %96 = arith.mulf %94, %95 : vector<2x64xf32>
    %97 = vector.extract_strided_slice %96 {offsets = [0, 0], sizes = [2, 32], strides = [1, 1]} : vector<2x64xf32> to vector<2x32xf32>
    %c6 = arith.constant 6 : index
    %c0_21 = arith.constant 0 : index
    %98 = vector.load %arg4[%c6, %c0_21] : memref<16x64xf32, #tpu.memory_space<vmem>>, vector<2x32xf32>
    tpu.vector_store %arg4[%c6, %c0_21], %97 {strides = array<i32>} : memref<16x64xf32, #tpu.memory_space<vmem>>, vector<2x32xf32>,
    %99 = vector.extract_strided_slice %96 {offsets = [0, 32], sizes = [2, 32], strides = [1, 1]} : vector<2x64xf32> to vector<2x32xf32>
    %c8 = arith.constant 8 : index
    %c32_22 = arith.constant 32 : index
    %100 = vector.load %arg4[%c8, %c32_22] : memref<16x64xf32, #tpu.memory_space<vmem>>, vector<2x32xf32>
    tpu.vector_store %arg4[%c8, %c32_22], %99 {strides = array<i32>} : memref<16x64xf32, #tpu.memory_space<vmem>>, vector<2x32xf32>,
    %101 = vector.extract_strided_slice %5 {offsets = [8, 0], sizes = [2, 256], strides = [1, 1]} : vector<16x256xf32> to vector<2x256xf32>
    %cst_23 = arith.constant dense<0.000000e+00> : vector<2x256xf32>
    %102 = tpu.matmul %96, %6, %cst_23 {dimension_numbers = #tpu.dot_dimension_numbers<[1], [0], [0], [1], [0, 0, 1, 1], [], []>} : vector<2x64xf32>, vector<64x256xf32>, vector<2x256xf32> -> vector<2x256xf32>
    %103 = arith.addf %101, %102 : vector<2x256xf32>
    %104 = vector.extract_strided_slice %103 {offsets = [0, 0], sizes = [2, 192], strides = [1, 1]} : vector<2x256xf32> to vector<2x192xf32>
    %105 = arith.negf %104 : vector<2x192xf32>
    %106 = math.exp %105 : vector<2x192xf32>
    %cst_24 = arith.constant 1.000000e+00 : f32
    %107 = vector.broadcast %cst_24 : f32 to vector<2x192xf32>
    %108 = arith.addf %107, %106 : vector<2x192xf32>
    %109 = arith.divf %107, %108 : vector<2x192xf32>
    %110 = vector.extract_strided_slice %103 {offsets = [0, 192], sizes = [2, 64], strides = [1, 1]} : vector<2x256xf32> to vector<2x64xf32>
    %111 = math.tanh %110 : vector<2x64xf32>
    %112 = vector.extract_strided_slice %109 {offsets = [0, 64], sizes = [2, 64], strides = [1, 1]} : vector<2x192xf32> to vector<2x64xf32>
    %113 = arith.mulf %112, %93 : vector<2x64xf32>
    %114 = vector.extract_strided_slice %109 {offsets = [0, 0], sizes = [2, 64], strides = [1, 1]} : vector<2x192xf32> to vector<2x64xf32>
    %115 = arith.mulf %114, %111 : vector<2x64xf32>
    %116 = arith.addf %113, %115 : vector<2x64xf32>
    %117 = vector.extract_strided_slice %109 {offsets = [0, 128], sizes = [2, 64], strides = [1, 1]} : vector<2x192xf32> to vector<2x64xf32>
    %118 = math.tanh %116 : vector<2x64xf32>
    %119 = arith.mulf %117, %118 : vector<2x64xf32>
    %120 = vector.extract_strided_slice %119 {offsets = [0, 0], sizes = [2, 32], strides = [1, 1]} : vector<2x64xf32> to vector<2x32xf32>
    %c8_25 = arith.constant 8 : index
    %c0_26 = arith.constant 0 : index
    %121 = vector.load %arg4[%c8_25, %c0_26] : memref<16x64xf32, #tpu.memory_space<vmem>>, vector<2x32xf32>
    tpu.vector_store %arg4[%c8_25, %c0_26], %120 {strides = array<i32>} : memref<16x64xf32, #tpu.memory_space<vmem>>, vector<2x32xf32>,
    %122 = vector.extract_strided_slice %119 {offsets = [0, 32], sizes = [2, 32], strides = [1, 1]} : vector<2x64xf32> to vector<2x32xf32>
    %c6_27 = arith.constant 6 : index
    %c32_28 = arith.constant 32 : index
    %123 = vector.load %arg4[%c6_27, %c32_28] : memref<16x64xf32, #tpu.memory_space<vmem>>, vector<2x32xf32>
    tpu.vector_store %arg4[%c6_27, %c32_28], %122 {strides = array<i32>} : memref<16x64xf32, #tpu.memory_space<vmem>>, vector<2x32xf32>,
    %124 = vector.extract_strided_slice %5 {offsets = [10, 0], sizes = [2, 256], strides = [1, 1]} : vector<16x256xf32> to vector<2x256xf32>
    %cst_29 = arith.constant dense<0.000000e+00> : vector<2x256xf32>
    %125 = tpu.matmul %119, %6, %cst_29 {dimension_numbers = #tpu.dot_dimension_numbers<[1], [0], [0], [1], [0, 0, 1, 1], [], []>} : vector<2x64xf32>, vector<64x256xf32>, vector<2x256xf32> -> vector<2x256xf32>
    %126 = arith.addf %124, %125 : vector<2x256xf32>
    %127 = vector.extract_strided_slice %126 {offsets = [0, 0], sizes = [2, 192], strides = [1, 1]} : vector<2x256xf32> to vector<2x192xf32>
    %128 = arith.negf %127 : vector<2x192xf32>
    %129 = math.exp %128 : vector<2x192xf32>
    %cst_30 = arith.constant 1.000000e+00 : f32
    %130 = vector.broadcast %cst_30 : f32 to vector<2x192xf32>
    %131 = arith.addf %130, %129 : vector<2x192xf32>
    %132 = arith.divf %130, %131 : vector<2x192xf32>
    %133 = vector.extract_strided_slice %126 {offsets = [0, 192], sizes = [2, 64], strides = [1, 1]} : vector<2x256xf32> to vector<2x64xf32>
    %134 = math.tanh %133 : vector<2x64xf32>
    %135 = vector.extract_strided_slice %132 {offsets = [0, 64], sizes = [2, 64], strides = [1, 1]} : vector<2x192xf32> to vector<2x64xf32>
    %136 = arith.mulf %135, %116 : vector<2x64xf32>
    %137 = vector.extract_strided_slice %132 {offsets = [0, 0], sizes = [2, 64], strides = [1, 1]} : vector<2x192xf32> to vector<2x64xf32>
    %138 = arith.mulf %137, %134 : vector<2x64xf32>
    %139 = arith.addf %136, %138 : vector<2x64xf32>
    %140 = vector.extract_strided_slice %132 {offsets = [0, 128], sizes = [2, 64], strides = [1, 1]} : vector<2x192xf32> to vector<2x64xf32>
    %141 = math.tanh %139 : vector<2x64xf32>
    %142 = arith.mulf %140, %141 : vector<2x64xf32>
    %143 = vector.extract_strided_slice %142 {offsets = [0, 0], sizes = [2, 32], strides = [1, 1]} : vector<2x64xf32> to vector<2x32xf32>
    %c10_31 = arith.constant 10 : index
    %c0_32 = arith.constant 0 : index
    %144 = vector.load %arg4[%c10_31, %c0_32] : memref<16x64xf32, #tpu.memory_space<vmem>>, vector<2x32xf32>
    tpu.vector_store %arg4[%c10_31, %c0_32], %143 {strides = array<i32>} : memref<16x64xf32, #tpu.memory_space<vmem>>, vector<2x32xf32>,
    %145 = vector.extract_strided_slice %142 {offsets = [0, 32], sizes = [2, 32], strides = [1, 1]} : vector<2x64xf32> to vector<2x32xf32>
    %c4_33 = arith.constant 4 : index
    %c32_34 = arith.constant 32 : index
    %146 = vector.load %arg4[%c4_33, %c32_34] : memref<16x64xf32, #tpu.memory_space<vmem>>, vector<2x32xf32>
    tpu.vector_store %arg4[%c4_33, %c32_34], %145 {strides = array<i32>} : memref<16x64xf32, #tpu.memory_space<vmem>>, vector<2x32xf32>,
    %147 = vector.extract_strided_slice %5 {offsets = [12, 0], sizes = [2, 256], strides = [1, 1]} : vector<16x256xf32> to vector<2x256xf32>
    %cst_35 = arith.constant dense<0.000000e+00> : vector<2x256xf32>
    %148 = tpu.matmul %142, %6, %cst_35 {dimension_numbers = #tpu.dot_dimension_numbers<[1], [0], [0], [1], [0, 0, 1, 1], [], []>} : vector<2x64xf32>, vector<64x256xf32>, vector<2x256xf32> -> vector<2x256xf32>
    %149 = arith.addf %147, %148 : vector<2x256xf32>
    %150 = vector.extract_strided_slice %149 {offsets = [0, 0], sizes = [2, 192], strides = [1, 1]} : vector<2x256xf32> to vector<2x192xf32>
    %151 = arith.negf %150 : vector<2x192xf32>
    %152 = math.exp %151 : vector<2x192xf32>
    %cst_36 = arith.constant 1.000000e+00 : f32
    %153 = vector.broadcast %cst_36 : f32 to vector<2x192xf32>
    %154 = arith.addf %153, %152 : vector<2x192xf32>
    %155 = arith.divf %153, %154 : vector<2x192xf32>
    %156 = vector.extract_strided_slice %149 {offsets = [0, 192], sizes = [2, 64], strides = [1, 1]} : vector<2x256xf32> to vector<2x64xf32>
    %157 = math.tanh %156 : vector<2x64xf32>
    %158 = vector.extract_strided_slice %155 {offsets = [0, 64], sizes = [2, 64], strides = [1, 1]} : vector<2x192xf32> to vector<2x64xf32>
    %159 = arith.mulf %158, %139 : vector<2x64xf32>
    %160 = vector.extract_strided_slice %155 {offsets = [0, 0], sizes = [2, 64], strides = [1, 1]} : vector<2x192xf32> to vector<2x64xf32>
    %161 = arith.mulf %160, %157 : vector<2x64xf32>
    %162 = arith.addf %159, %161 : vector<2x64xf32>
    %163 = vector.extract_strided_slice %155 {offsets = [0, 128], sizes = [2, 64], strides = [1, 1]} : vector<2x192xf32> to vector<2x64xf32>
    %164 = math.tanh %162 : vector<2x64xf32>
    %165 = arith.mulf %163, %164 : vector<2x64xf32>
    %166 = vector.extract_strided_slice %165 {offsets = [0, 0], sizes = [2, 32], strides = [1, 1]} : vector<2x64xf32> to vector<2x32xf32>
    %c12_37 = arith.constant 12 : index
    %c0_38 = arith.constant 0 : index
    %167 = vector.load %arg4[%c12_37, %c0_38] : memref<16x64xf32, #tpu.memory_space<vmem>>, vector<2x32xf32>
    tpu.vector_store %arg4[%c12_37, %c0_38], %166 {strides = array<i32>} : memref<16x64xf32, #tpu.memory_space<vmem>>, vector<2x32xf32>,
    %168 = vector.extract_strided_slice %165 {offsets = [0, 32], sizes = [2, 32], strides = [1, 1]} : vector<2x64xf32> to vector<2x32xf32>
    %c2_39 = arith.constant 2 : index
    %c32_40 = arith.constant 32 : index
    %169 = vector.load %arg4[%c2_39, %c32_40] : memref<16x64xf32, #tpu.memory_space<vmem>>, vector<2x32xf32>
    tpu.vector_store %arg4[%c2_39, %c32_40], %168 {strides = array<i32>} : memref<16x64xf32, #tpu.memory_space<vmem>>, vector<2x32xf32>,
    %170 = vector.extract_strided_slice %5 {offsets = [14, 0], sizes = [2, 256], strides = [1, 1]} : vector<16x256xf32> to vector<2x256xf32>
    %cst_41 = arith.constant dense<0.000000e+00> : vector<2x256xf32>
    %171 = tpu.matmul %165, %6, %cst_41 {dimension_numbers = #tpu.dot_dimension_numbers<[1], [0], [0], [1], [0, 0, 1, 1], [], []>} : vector<2x64xf32>, vector<64x256xf32>, vector<2x256xf32> -> vector<2x256xf32>
    %172 = arith.addf %170, %171 : vector<2x256xf32>
    %173 = vector.extract_strided_slice %172 {offsets = [0, 0], sizes = [2, 192], strides = [1, 1]} : vector<2x256xf32> to vector<2x192xf32>
    %174 = arith.negf %173 : vector<2x192xf32>
    %175 = math.exp %174 : vector<2x192xf32>
    %cst_42 = arith.constant 1.000000e+00 : f32
    %176 = vector.broadcast %cst_42 : f32 to vector<2x192xf32>
    %177 = arith.addf %176, %175 : vector<2x192xf32>
    %178 = arith.divf %176, %177 : vector<2x192xf32>
    %179 = vector.extract_strided_slice %172 {offsets = [0, 192], sizes = [2, 64], strides = [1, 1]} : vector<2x256xf32> to vector<2x64xf32>
    %180 = math.tanh %179 : vector<2x64xf32>
    %181 = vector.extract_strided_slice %178 {offsets = [0, 64], sizes = [2, 64], strides = [1, 1]} : vector<2x192xf32> to vector<2x64xf32>
    %182 = arith.mulf %181, %162 : vector<2x64xf32>
    %183 = vector.extract_strided_slice %178 {offsets = [0, 0], sizes = [2, 64], strides = [1, 1]} : vector<2x192xf32> to vector<2x64xf32>
    %184 = arith.mulf %183, %180 : vector<2x64xf32>
    %185 = arith.addf %182, %184 : vector<2x64xf32>
    %186 = vector.extract_strided_slice %178 {offsets = [0, 128], sizes = [2, 64], strides = [1, 1]} : vector<2x192xf32> to vector<2x64xf32>
    %187 = math.tanh %185 : vector<2x64xf32>
    %188 = arith.mulf %186, %187 : vector<2x64xf32>
    %189 = vector.extract_strided_slice %188 {offsets = [0, 0], sizes = [2, 32], strides = [1, 1]} : vector<2x64xf32> to vector<2x32xf32>
    %c14_43 = arith.constant 14 : index
    %c0_44 = arith.constant 0 : index
    %190 = vector.load %arg4[%c14_43, %c0_44] : memref<16x64xf32, #tpu.memory_space<vmem>>, vector<2x32xf32>
    tpu.vector_store %arg4[%c14_43, %c0_44], %189 {strides = array<i32>} : memref<16x64xf32, #tpu.memory_space<vmem>>, vector<2x32xf32>,
    %191 = vector.extract_strided_slice %188 {offsets = [0, 32], sizes = [2, 32], strides = [1, 1]} : vector<2x64xf32> to vector<2x32xf32>
    %c0_45 = arith.constant 0 : index
    %c32_46 = arith.constant 32 : index
    %192 = vector.load %arg4[%c0_45, %c32_46] : memref<16x64xf32, #tpu.memory_space<vmem>>, vector<2x32xf32>
    tpu.vector_store %arg4[%c0_45, %c32_46], %191 {strides = array<i32>} : memref<16x64xf32, #tpu.memory_space<vmem>>, vector<2x32xf32>,
    %c0_47 = arith.constant 0 : index
    %c0_48 = arith.constant 0 : index
    %193 = vector.load %arg4[%c0_47, %c0_48] : memref<16x64xf32, #tpu.memory_space<vmem>>, vector<16x64xf32>
    %cst_49 = arith.constant 1.250000e-01 : f32
    %194 = vector.broadcast %cst_49 : f32 to vector<16x64xf32>
    %195 = arith.mulf %193, %194 : vector<16x64xf32>
    %cst_50 = arith.constant dense<0.000000e+00> : vector<16x16xf32>
    %196 = tpu.matmul %195, %193, %cst_50 {dimension_numbers = #tpu.dot_dimension_numbers<[1], [1], [0], [0], [0, 0, 1, 0], [], []>} : vector<16x64xf32>, vector<16x64xf32>, vector<16x16xf32> -> vector<16x16xf32>
    %c1104 = arith.constant 1104 : index
    %c0_51 = arith.constant 0 : index
    %197 = vector.load %arg2[%c1104, %c0_51] : memref<1144x256xf32, #tpu.memory_space<vmem>>, vector<16x16xf32>
    %198 = arith.addf %196, %197 : vector<16x16xf32>
    %cst_52 = arith.constant dense<0xFF800000> : vector<16xf32>
    %199 = vector.multi_reduction <maximumf>, %198, %cst_52 [1] : vector<16x16xf32> to vector<16xf32>
    %cst_53 = arith.constant 0xFF800000 : f32
    %200 = vector.broadcast %cst_53 : f32 to vector<16xf32>
    %201 = arith.maximumf %200, %199 : vector<16xf32>
    %202 = vector.shape_cast %201 : vector<16xf32> to vector<16x1xf32>
    %203 = vector.broadcast %202 : vector<16x1xf32> to vector<16x16xf32>
    %204 = arith.subf %198, %203 : vector<16x16xf32>
    %205 = math.exp %204 : vector<16x16xf32>
    %cst_54 = arith.constant dense<0.000000e+00> : vector<16xf32>
    %206 = vector.multi_reduction <add>, %205, %cst_54 [1] : vector<16x16xf32> to vector<16xf32>
    %207 = vector.shape_cast %206 : vector<16xf32> to vector<16x1xf32>
    %208 = vector.broadcast %207 : vector<16x1xf32> to vector<16x16xf32>
    %209 = arith.divf %205, %208 : vector<16x16xf32>
    %cst_55 = arith.constant dense<0.000000e+00> : vector<16x64xf32>
    %210 = tpu.matmul %209, %193, %cst_55 {dimension_numbers = #tpu.dot_dimension_numbers<[1], [0], [0], [1], [0, 0, 1, 1], [], []>} : vector<16x16xf32>, vector<16x64xf32>, vector<16x64xf32> -> vector<16x64xf32>
    %211 = vector.extract_strided_slice %210 {offsets = [0, 0], sizes = [2, 64], strides = [1, 1]} : vector<16x64xf32> to vector<2x64xf32>
    %212 = vector.extract_strided_slice %210 {offsets = [2, 0], sizes = [2, 64], strides = [1, 1]} : vector<16x64xf32> to vector<2x64xf32>
    %213 = arith.maximumf %211, %212 : vector<2x64xf32>
    %214 = vector.extract_strided_slice %210 {offsets = [4, 0], sizes = [2, 64], strides = [1, 1]} : vector<16x64xf32> to vector<2x64xf32>
    %215 = arith.maximumf %213, %214 : vector<2x64xf32>
    %216 = vector.extract_strided_slice %210 {offsets = [6, 0], sizes = [2, 64], strides = [1, 1]} : vector<16x64xf32> to vector<2x64xf32>
    %217 = arith.maximumf %215, %216 : vector<2x64xf32>
    %218 = vector.extract_strided_slice %210 {offsets = [8, 0], sizes = [2, 64], strides = [1, 1]} : vector<16x64xf32> to vector<2x64xf32>
    %219 = arith.maximumf %217, %218 : vector<2x64xf32>
    %220 = vector.extract_strided_slice %210 {offsets = [10, 0], sizes = [2, 64], strides = [1, 1]} : vector<16x64xf32> to vector<2x64xf32>
    %221 = arith.maximumf %219, %220 : vector<2x64xf32>
    %222 = vector.extract_strided_slice %210 {offsets = [12, 0], sizes = [2, 64], strides = [1, 1]} : vector<16x64xf32> to vector<2x64xf32>
    %223 = arith.maximumf %221, %222 : vector<2x64xf32>
    %224 = vector.extract_strided_slice %210 {offsets = [14, 0], sizes = [2, 64], strides = [1, 1]} : vector<16x64xf32> to vector<2x64xf32>
    %225 = arith.maximumf %223, %224 : vector<2x64xf32>
    %c0_56 = arith.constant 0 : index
    %c0_57 = arith.constant 0 : index
    %226 = vector.load %arg1[%c0_56, %c0_57] : memref<12x32xf32, #tpu.memory_space<vmem>>, vector<12x32xf32>
    %c1120 = arith.constant 1120 : index
    %c0_58 = arith.constant 0 : index
    %227 = vector.load %arg2[%c1120, %c0_58] : memref<1144x256xf32, #tpu.memory_space<vmem>>, vector<12x2xf32>
    %c1136 = arith.constant 1136 : index
    %c0_59 = arith.constant 0 : index
    %228 = vector.load %arg2[%c1136, %c0_59] : memref<1144x256xf32, #tpu.memory_space<vmem>>, vector<2x12xf32>
    %cst_60 = arith.constant dense<0.000000e+00> : vector<12x64xf32>
    %229 = tpu.matmul %227, %225, %cst_60 {dimension_numbers = #tpu.dot_dimension_numbers<[1], [0], [0], [1], [0, 0, 1, 1], [], []>} : vector<12x2xf32>, vector<2x64xf32>, vector<12x64xf32> -> vector<12x64xf32>
    %c136 = arith.constant 136 : index
    %c0_61 = arith.constant 0 : index
    %230 = vector.load %arg2[%c136, %c0_61] : memref<1144x256xf32, #tpu.memory_space<vmem>>, vector<32x240xf32>
    %c168 = arith.constant 168 : index
    %c0_62 = arith.constant 0 : index
    %231 = vector.load %arg2[%c168, %c0_62] : memref<1144x256xf32, #tpu.memory_space<vmem>>, vector<64x240xf32>
    %cst_63 = arith.constant dense<0.000000e+00> : vector<12x240xf32>
    %232 = tpu.matmul %226, %230, %cst_63 {dimension_numbers = #tpu.dot_dimension_numbers<[1], [0], [0], [1], [0, 0, 1, 1], [], []>} : vector<12x32xf32>, vector<32x240xf32>, vector<12x240xf32> -> vector<12x240xf32>
    %cst_64 = arith.constant dense<0.000000e+00> : vector<12x240xf32>
    %233 = tpu.matmul %229, %231, %cst_64 {dimension_numbers = #tpu.dot_dimension_numbers<[1], [0], [0], [1], [0, 0, 1, 1], [], []>} : vector<12x64xf32>, vector<64x240xf32>, vector<12x240xf32> -> vector<12x240xf32>
    %234 = arith.addf %232, %233 : vector<12x240xf32>
    %c232 = arith.constant 232 : index
    %c0_65 = arith.constant 0 : index
    %235 = vector.load %arg2[%c232, %c0_65] : memref<1144x256xf32, #tpu.memory_space<vmem>>, vector<1x240xf32>
    %236 = vector.broadcast %235 : vector<1x240xf32> to vector<12x240xf32>
    %237 = arith.addf %234, %236 : vector<12x240xf32>
    %238 = math.tanh %237 : vector<12x240xf32>
    %c240 = arith.constant 240 : index
    %c0_66 = arith.constant 0 : index
    %239 = vector.load %arg2[%c240, %c0_66] : memref<1144x256xf32, #tpu.memory_space<vmem>>, vector<240x192xf32>
    %cst_67 = arith.constant dense<0.000000e+00> : vector<12x192xf32>
    %240 = tpu.matmul %238, %239, %cst_67 {dimension_numbers = #tpu.dot_dimension_numbers<[1], [0], [0], [1], [0, 0, 1, 1], [], []>} : vector<12x240xf32>, vector<240x192xf32>, vector<12x192xf32> -> vector<12x192xf32>
    %c480 = arith.constant 480 : index
    %c0_68 = arith.constant 0 : index
    %241 = vector.load %arg2[%c480, %c0_68] : memref<1144x256xf32, #tpu.memory_space<vmem>>, vector<1x192xf32>
    %242 = vector.broadcast %241 : vector<1x192xf32> to vector<12x192xf32>
    %243 = arith.addf %240, %242 : vector<12x192xf32>
    %244 = math.tanh %243 : vector<12x192xf32>
    %c488 = arith.constant 488 : index
    %c0_69 = arith.constant 0 : index
    %245 = vector.load %arg2[%c488, %c0_69] : memref<1144x256xf32, #tpu.memory_space<vmem>>, vector<192x144xf32>
    %cst_70 = arith.constant dense<0.000000e+00> : vector<12x144xf32>
    %246 = tpu.matmul %244, %245, %cst_70 {dimension_numbers = #tpu.dot_dimension_numbers<[1], [0], [0], [1], [0, 0, 1, 1], [], []>} : vector<12x192xf32>, vector<192x144xf32>, vector<12x144xf32> -> vector<12x144xf32>
    %c680 = arith.constant 680 : index
    %c0_71 = arith.constant 0 : index
    %247 = vector.load %arg2[%c680, %c0_71] : memref<1144x256xf32, #tpu.memory_space<vmem>>, vector<1x144xf32>
    %248 = vector.broadcast %247 : vector<1x144xf32> to vector<12x144xf32>
    %249 = arith.addf %246, %248 : vector<12x144xf32>
    %250 = math.tanh %249 : vector<12x144xf32>
    %c688 = arith.constant 688 : index
    %c0_72 = arith.constant 0 : index
    %251 = vector.load %arg2[%c688, %c0_72] : memref<1144x256xf32, #tpu.memory_space<vmem>>, vector<144x96xf32>
    %cst_73 = arith.constant dense<0.000000e+00> : vector<12x96xf32>
    %252 = tpu.matmul %250, %251, %cst_73 {dimension_numbers = #tpu.dot_dimension_numbers<[1], [0], [0], [1], [0, 0, 1, 1], [], []>} : vector<12x144xf32>, vector<144x96xf32>, vector<12x96xf32> -> vector<12x96xf32>
    %c832 = arith.constant 832 : index
    %c0_74 = arith.constant 0 : index
    %253 = vector.load %arg2[%c832, %c0_74] : memref<1144x256xf32, #tpu.memory_space<vmem>>, vector<1x96xf32>
    %254 = vector.broadcast %253 : vector<1x96xf32> to vector<12x96xf32>
    %255 = arith.addf %252, %254 : vector<12x96xf32>
    %256 = math.tanh %255 : vector<12x96xf32>
    %c840 = arith.constant 840 : index
    %c0_75 = arith.constant 0 : index
    %257 = vector.load %arg2[%c840, %c0_75] : memref<1144x256xf32, #tpu.memory_space<vmem>>, vector<96x48xf32>
    %cst_76 = arith.constant dense<0.000000e+00> : vector<12x48xf32>
    %258 = tpu.matmul %256, %257, %cst_76 {dimension_numbers = #tpu.dot_dimension_numbers<[1], [0], [0], [1], [0, 0, 1, 1], [], []>} : vector<12x96xf32>, vector<96x48xf32>, vector<12x48xf32> -> vector<12x48xf32>
    %c936 = arith.constant 936 : index
    %c0_77 = arith.constant 0 : index
    %259 = vector.load %arg2[%c936, %c0_77] : memref<1144x256xf32, #tpu.memory_space<vmem>>, vector<1x48xf32>
    %260 = vector.broadcast %259 : vector<1x48xf32> to vector<12x48xf32>
    %261 = arith.addf %258, %260 : vector<12x48xf32>
    %262 = math.tanh %261 : vector<12x48xf32>
    %c944 = arith.constant 944 : index
    %c0_78 = arith.constant 0 : index
    %263 = vector.load %arg2[%c944, %c0_78] : memref<1144x256xf32, #tpu.memory_space<vmem>>, vector<48x2xf32>
    %cst_79 = arith.constant dense<0.000000e+00> : vector<12x2xf32>
    %264 = tpu.matmul %262, %263, %cst_79 {dimension_numbers = #tpu.dot_dimension_numbers<[1], [0], [0], [1], [0, 0, 1, 1], [], []>} : vector<12x48xf32>, vector<48x2xf32>, vector<12x2xf32> -> vector<12x2xf32>
    %cst_80 = arith.constant dense<0xFF800000> : vector<2xf32>
    %265 = vector.multi_reduction <maximumf>, %264, %cst_80 [0] : vector<12x2xf32> to vector<2xf32>
    %266 = vector.shape_cast %265 : vector<2xf32> to vector<1x2xf32>
    %267 = vector.broadcast %266 : vector<1x2xf32> to vector<12x2xf32>
    %268 = arith.subf %264, %267 : vector<12x2xf32>
    %269 = math.exp %268 : vector<12x2xf32>
    %cst_81 = arith.constant dense<0.000000e+00> : vector<2x2xf32>
    %270 = tpu.matmul %228, %269, %cst_81 {dimension_numbers = #tpu.dot_dimension_numbers<[1], [0], [0], [1], [0, 0, 1, 1], [], []>} : vector<2x12xf32>, vector<12x2xf32>, vector<2x2xf32> -> vector<2x2xf32>
    %cst_82 = arith.constant dense<0.000000e+00> : vector<12x2xf32>
    %271 = tpu.matmul %227, %270, %cst_82 {dimension_numbers = #tpu.dot_dimension_numbers<[1], [0], [0], [1], [0, 0, 1, 1], [], []>} : vector<12x2xf32>, vector<2x2xf32>, vector<12x2xf32> -> vector<12x2xf32>
    %272 = arith.divf %269, %271 : vector<12x2xf32>
    %c992 = arith.constant 992 : index
    %c0_83 = arith.constant 0 : index
    %273 = vector.load %arg2[%c992, %c0_83] : memref<1144x256xf32, #tpu.memory_space<vmem>>, vector<2x1xf32>
    %cst_84 = arith.constant dense<0.000000e+00> : vector<12x1xf32>
    %274 = tpu.matmul %272, %273, %cst_84 {dimension_numbers = #tpu.dot_dimension_numbers<[1], [0], [0], [1], [0, 0, 1, 1], [], []>} : vector<12x2xf32>, vector<2x1xf32>, vector<12x1xf32> -> vector<12x1xf32>
    %cst_85 = arith.constant dense<0xFF800000> : vector<1xf32>
    %275 = vector.multi_reduction <maximumf>, %274, %cst_85 [0] : vector<12x1xf32> to vector<1xf32>
    %276 = vector.shape_cast %275 : vector<1xf32> to vector<1x1xf32>
    %277 = vector.broadcast %276 : vector<1x1xf32> to vector<12x1xf32>
    %278 = arith.subf %274, %277 : vector<12x1xf32>
    %279 = math.exp %278 : vector<12x1xf32>
    %cst_86 = arith.constant dense<0.000000e+00> : vector<2x1xf32>
    %280 = tpu.matmul %228, %279, %cst_86 {dimension_numbers = #tpu.dot_dimension_numbers<[1], [0], [0], [1], [0, 0, 1, 1], [], []>} : vector<2x12xf32>, vector<12x1xf32>, vector<2x1xf32> -> vector<2x1xf32>
    %cst_87 = arith.constant dense<0.000000e+00> : vector<12x1xf32>
    %281 = tpu.matmul %227, %280, %cst_87 {dimension_numbers = #tpu.dot_dimension_numbers<[1], [0], [0], [1], [0, 0, 1, 1], [], []>} : vector<12x2xf32>, vector<2x1xf32>, vector<12x1xf32> -> vector<12x1xf32>
    %282 = arith.divf %279, %281 : vector<12x1xf32>
    %283 = vector.broadcast %282 : vector<12x1xf32> to vector<12x32xf32>
    %284 = arith.mulf %283, %226 : vector<12x32xf32>
    %cst_88 = arith.constant dense<0.000000e+00> : vector<2x32xf32>
    %285 = tpu.matmul %228, %284, %cst_88 {dimension_numbers = #tpu.dot_dimension_numbers<[1], [0], [0], [1], [0, 0, 1, 1], [], []>} : vector<2x12xf32>, vector<12x32xf32>, vector<2x32xf32> -> vector<2x32xf32>
    %c1000 = arith.constant 1000 : index
    %c0_89 = arith.constant 0 : index
    %286 = vector.load %arg2[%c1000, %c0_89] : memref<1144x256xf32, #tpu.memory_space<vmem>>, vector<64x4xf32>
    %cst_90 = arith.constant dense<0.000000e+00> : vector<2x4xf32>
    %287 = tpu.matmul %225, %286, %cst_90 {dimension_numbers = #tpu.dot_dimension_numbers<[1], [0], [0], [1], [0, 0, 1, 1], [], []>} : vector<2x64xf32>, vector<64x4xf32>, vector<2x4xf32> -> vector<2x4xf32>
    %c1064 = arith.constant 1064 : index
    %c0_91 = arith.constant 0 : index
    %288 = vector.load %arg2[%c1064, %c0_91] : memref<1144x256xf32, #tpu.memory_space<vmem>>, vector<32x4xf32>
    %cst_92 = arith.constant dense<0.000000e+00> : vector<2x4xf32>
    %289 = tpu.matmul %285, %288, %cst_92 {dimension_numbers = #tpu.dot_dimension_numbers<[1], [0], [0], [1], [0, 0, 1, 1], [], []>} : vector<2x32xf32>, vector<32x4xf32>, vector<2x4xf32> -> vector<2x4xf32>
    %290 = arith.addf %287, %289 : vector<2x4xf32>
    %c1096 = arith.constant 1096 : index
    %c0_93 = arith.constant 0 : index
    %291 = vector.load %arg2[%c1096, %c0_93] : memref<1144x256xf32, #tpu.memory_space<vmem>>, vector<1x4xf32>
    %292 = vector.broadcast %291 : vector<1x4xf32> to vector<2x4xf32>
    %293 = arith.addf %290, %292 : vector<2x4xf32>
    %c0_94 = arith.constant 0 : index
    %c0_95 = arith.constant 0 : index
    %294 = vector.load %arg3[%c0_94, %c0_95] : memref<2x4xf32, #tpu.memory_space<vmem>>, vector<2x4xf32>
    tpu.vector_store %arg3[%c0_94, %c0_95], %293 {strides = array<i32>} : memref<2x4xf32, #tpu.memory_space<vmem>>, vector<2x4xf32>,
    return
  }
}

</mosaic_0001>

<bundles_post_ra>
// kernel: forward.1
= control target key start
LH: loop header
LB: loop body
LE: loop exit
PB: predicated region body
PF: predicated region fallthrough
CT: control target
= control target key end

     0   :  { %8 = vsyncpa [#allocation4], 0  ;;  %s2869_s0 = inlined_call_operand.vmem [shape: f32[16,64], index: 0, kind: input, shape index: {}]   ;;  %s2870_s1 = inlined_call_operand.vmem [shape: f32[12,32], index: 1, kind: input, shape index: {}]   ;;  %s2871_s2 = inlined_call_operand.hbm [shape: f32[1144,256], index: 2, kind: input, shape index: {}]   ;;  %s2872_s3 = inlined_call_operand.hbm [shape: f32[2,4], index: 3, kind: output, shape index: {}]  }
   0x1   :  { %9 = vsyncpa [#allocation5], 0  ;;  %s18_s14 = sshll.u32 %s2871_s2, 4  ;;  %s2464_s15 = smov [#allocation3]   ;;  %s19_s14 = int_to_ptr.hbm [resolvable:$true] %s18_s14 }
   0x2   :  { %s20_s16 = sshll.u32 %s2464_s15, 4  ;;  %s2465_s17 = smov 256   ;;  %s21_s16 = int_to_ptr.vmem [resolvable:$true] %s20_s16 }
   0x3   :  { %s2466_s18 = smov 16  }
   0x4   :  { %26 = dma.hbm_to_vmem [thread:$0]  %s19_s14, 36608, %s21_s16, [#allocation4], %s2465_s17, %s2465_s17, %s2466_s18  }
   0x5   :  { %2460 = dma.done.wait [#allocation4], 36608  }
   0x6   :  { %2461 = vsyncadd [#allocation4], 4294930688  ;;  %v2494_v0 = vld [vmem:[#allocation3 + $0xf8] sm:$0xff]  ;;  %v2496_v1 = vld [vmem:[#allocation3 + $0xe8] sm:$0xff]  ;;  %vm56_vm0 = vcmask 523264   ;;  %v2467_v28 = vmov 0.0  }
   0x7   :  { %v48_v2 = vld [vmem:[#allocation3 + $0x78] sm:$0xff]  ;;  %156 = vmatpush.msra.mxu3 %v2494_v0  ;;  %v46_v3 = vld [vmem:[#allocation3 + $0x68] sm:$0xff]  ;;  %v2507_v9 = vld [vmem:[#allocation3 + $0xf0] sm:$0xff]  ;;  %s2468_s20 = smov 64   ;;  %vm226_vm9 = vcmask 254976   ;;  %vm228_vm10 = vcmask 517376  }
   0x8   :  { %94 = vmatpush.msra.mxu1 %v48_v2  ;;  %v2499_v4 = vld [vmem:[#allocation3 + $0xd8] sm:$0xff]  ;;  %v2502_v6 = vld [vmem:[#allocation3 + $0xc8] sm:$0xff]  ;;  %136 = vmatpush.msra.mxu2 %v2507_v9  ;;  %v2510_v11 = vld [vmem:[#allocation3 + $0xe0] sm:$0xff]  ;;  %s2470_s30 = smov [#allocation6]  }
   0x9   :  { %v44_v5 = vld [vmem:[#allocation3 + $0x58] sm:$0xff]  ;;  %157 = vmatpush.msra.mxu3 %v2496_v1  ;;  %v42_v7 = vld [vmem:[#allocation3 + $0x48] sm:$0xff]  ;;  %v47_v12 = vld [vmem:[#allocation3 + $0x70] sm:$0xff]  ;;  %s2153_s4 = sshll.u32 %s2470_s30, 4  ;;  %s2154_s4 = int_to_ptr.vmem [resolvable:$true] %s2153_s4 }
   0xa   :  { %95 = vmatpush.msra.mxu1 %v46_v3  ;;  %v2505_v8 = vld [vmem:[#allocation3 + $0xb8] sm:$0xff]  ;;  %v2513_v13 = vld [vmem:[#allocation3 + $0xd0] sm:$0xff]  ;;  %v45_v14 = vld [vmem:[#allocation3 + $0x60] sm:$0xff]  ;;  %137 = vmatpush.msra.mxu2 %v2510_v11 }
   0xb   :  { %158 = vmatpush.msra.mxu3 %v2499_v4  ;;  %v40_v10 = vld [vmem:[#allocation3 + $0x38] sm:$0xff]  ;;  %v2515_v15 = vld [vmem:[#allocation3 + $0xa8] sm:$0xff]  ;;  %71 = vmatpush.msra.mxu0 %v47_v12  ;;  %v2519_v17 = vld [vmem:[#allocation3 + $0xc0] sm:$0xff] }
   0xc   :  { %96 = vmatpush.msra.mxu1 %v44_v5  ;;  %v38_v16 = vld [vmem:[#allocation3 + $0x28] sm:$0xff]  ;;  %v43_v18 = vld [vmem:[#allocation3 + $0x50] sm:$0xff]  ;;  %v2521_v19 = vld [vmem:[#allocation3 + $0x98] sm:$0xff]  ;;  %138 = vmatpush.msra.mxu2 %v2513_v13 }
   0xd   :  { %159 = vmatpush.msra.mxu3 %v2502_v6  ;;  %v36_v20 = vld [vmem:[#allocation3 + $0x18] sm:$0xff]  ;;  %72 = vmatpush.msra.mxu0 %v45_v14  ;;  %v2525_v21 = vld [vmem:[#allocation3 + $0xb0] sm:$0xff]  ;;  %v41_v22 = vld [vmem:[#allocation3 + $0x40] sm:$0xff] }
   0xe   :  { %97 = vmatpush.msra.mxu1 %v42_v7  ;;  %v2527_v23 = vld [vmem:[#allocation3 + $0x88] sm:$0xff]  ;;  %139 = vmatpush.msra.mxu2 %v2519_v17  ;;  %v31_v25 = vld [vmem:[%s2869_s0] sm:$0xff]  ;;  %v2535_v26 = vld [vmem:[#allocation3 + $0xa0] sm:$0xff] }
   0xf   :  { %160 = vmatpush.msra.mxu3 %v2505_v8  ;;  %v34_v24 = vld [vmem:[#allocation3 + $0x8] sm:$0xff]  ;;  %73 = vmatpush.msra.mxu0 %v43_v18  ;;  %v39_v27 = vld [vmem:[#allocation3 + $0x30] sm:$0xff]  ;;  %v37_v30 = vld [vmem:[#allocation3 + $0x20] sm:$0xff] }
  0x10   :  { %98 = vmatpush.msra.mxu1 %v40_v10  ;;  %140 = vmatpush.msra.mxu2 %v2525_v21  ;;  %v2539_v29 = vld [vmem:[#allocation3 + $0x90] sm:$0xff]  ;;  %v2542_v31 = vld [vmem:[#allocation3 + $0x80] sm:$0xff]  ;;  %v32_v61 = vld [vmem:[%s2869_s0 + $0x8] sm:$0xff] }
  0x11   :  { %161 = vmatpush.msra.mxu3 %v2515_v15  ;;  %74 = vmatpush.msra.mxu0 %v41_v22  ;;  %v35_v32 = vld [vmem:[#allocation3 + $0x10] sm:$0xff]  ;;  %v33_v33 = vld [vmem:[#allocation3] sm:$0xff] }
  0x12   :  { %99 = vmatpush.msra.mxu1 %v38_v16  ;;  %141 = vmatpush.msra.mxu2 %v2535_v26  ;;  %v2611_v34 = vld [vmem:[#allocation3 + $0x100] ss:$8 sm:$0x3] }
  0x13   :  { %162 = vmatpush.msra.mxu3 %v2521_v19  ;;  %75 = vmatpush.msra.mxu0 %v39_v27  ;;  %v53_v35 = vperm.slane %v2611_v34, 1  ;;  %v52_v41 = vperm.slane %v2611_v34, 0 }
  0x14   :  { %100 = vmatpush.msra.mxu1 %v36_v20  ;;  %142 = vmatpush.msra.mxu2 %v2539_v29 }
  0x15   :  { %163 = vmatpush.msra.mxu3 %v2527_v23  ;;  %76 = vmatpush.msra.mxu0 %v37_v30 }
  0x16   :  { %101 = vmatpush.msra.mxu1 %v34_v24  ;;  %164 = vmatmul.f32.vlgmr.msra.gmra.mxu3 %v2467_v28 }
  0x17   :  { %2167 = vmatmul.msk.f32.vlgmr.msra.gmra.mxu1 %vm56_vm0, %v31_v25  ;;  %376 = vmatpush.msrb.mxu3 %v2494_v0 }
  0x18   :  { %261 = vmatpush.msrb.mxu1 %v2494_v0  ;;  %143 = vmatpush.msra.mxu2 %v2542_v31 }
  0x19   :  { %377 = vmatpush.msrb.mxu3 %v2496_v1  ;;  %77 = vmatpush.msra.mxu0 %v35_v32 }
  0x1a   :  { %262 = vmatpush.msrb.mxu1 %v2496_v1  ;;  %144 = vmatmul.f32.vlgmr.msra.gmra.mxu2 %v2467_v28 }
  0x1b   :  { %78 = vmatpush.msra.mxu0 %v33_v33  ;;  %356 = vmatpush.msrb.mxu2 %v2507_v9 }
  0x1c   :  { %263 = vmatpush.msrb.mxu1 %v2499_v4  ;;  %2165 = vmatmul.msk.f32.vlgmr.msra.gmra.mxu0 %vm56_vm0, %v31_v25 }
  0x1d   :  { %241 = vmatpush.msrb.mxu0 %v2507_v9  ;;  %357 = vmatpush.msrb.mxu2 %v2510_v11 }
  0x1e   :  { %264 = vmatpush.msrb.mxu1 %v2502_v6  ;;  %378 = vmatpush.msrb.mxu3 %v2499_v4 }
  0x1f   :  { %242 = vmatpush.msrb.mxu0 %v2510_v11  ;;  %358 = vmatpush.msrb.mxu2 %v2513_v13 }
  0x20   :  { %265 = vmatpush.msrb.mxu1 %v2505_v8  ;;  %379 = vmatpush.msrb.mxu3 %v2502_v6 }
  0x21   :  { %243 = vmatpush.msrb.mxu0 %v2513_v13  ;;  %359 = vmatpush.msrb.mxu2 %v2519_v17 }
  0x22   :  { %266 = vmatpush.msrb.mxu1 %v2515_v15  ;;  %380 = vmatpush.msrb.mxu3 %v2505_v8 }
  0x23   :  { %244 = vmatpush.msrb.mxu0 %v2519_v17  ;;  %360 = vmatpush.msrb.mxu2 %v2525_v21 }
  0x24   :  { %267 = vmatpush.msrb.mxu1 %v2521_v19  ;;  %381 = vmatpush.msrb.mxu3 %v2515_v15 }
  0x25   :  { %245 = vmatpush.msrb.mxu0 %v2525_v21  ;;  %361 = vmatpush.msrb.mxu2 %v2535_v26 }
  0x26   :  { %268 = vmatpush.msrb.mxu1 %v2527_v23  ;;  %382 = vmatpush.msrb.mxu3 %v2521_v19 }
  0x27   :  { %246 = vmatpush.msrb.mxu0 %v2535_v26  ;;  %362 = vmatpush.msrb.mxu2 %v2539_v29 }
  0x28   :  { %491 = vmatpush.msra.mxu1 %v2494_v0  ;;  %383 = vmatpush.msrb.mxu3 %v2527_v23 }
  0x29   :  { %247 = vmatpush.msrb.mxu0 %v2539_v29  ;;  %363 = vmatpush.msrb.mxu2 %v2542_v31 }
  0x2a   :  { %492 = vmatpush.msra.mxu1 %v2496_v1  ;;  %606 = vmatpush.msra.mxu3 %v2494_v0 }
  0x2b   :  { %586 = vmatpush.msra.mxu2 %v2507_v9  ;;  %248 = vmatpush.msrb.mxu0 %v2542_v31 }
  0x2c   :  { %493 = vmatpush.msra.mxu1 %v2499_v4  ;;  %607 = vmatpush.msra.mxu3 %v2496_v1 }
  0x2d   :  { %471 = vmatpush.msra.mxu0 %v2507_v9  ;;  %587 = vmatpush.msra.mxu2 %v2510_v11 }
  0x2e   :  { %494 = vmatpush.msra.mxu1 %v2502_v6  ;;  %608 = vmatpush.msra.mxu3 %v2499_v4 }
  0x2f   :  { %472 = vmatpush.msra.mxu0 %v2510_v11  ;;  %588 = vmatpush.msra.mxu2 %v2513_v13 }
  0x30   :  { %495 = vmatpush.msra.mxu1 %v2505_v8  ;;  %609 = vmatpush.msra.mxu3 %v2502_v6 }
  0x31   :  { %473 = vmatpush.msra.mxu0 %v2513_v13  ;;  %589 = vmatpush.msra.mxu2 %v2519_v17 }
  0x32   :  { %496 = vmatpush.msra.mxu1 %v2515_v15  ;;  %610 = vmatpush.msra.mxu3 %v2505_v8 }
  0x33   :  { %474 = vmatpush.msra.mxu0 %v2519_v17  ;;  %590 = vmatpush.msra.mxu2 %v2525_v21 }
  0x34   :  { %497 = vmatpush.msra.mxu1 %v2521_v19  ;;  %611 = vmatpush.msra.mxu3 %v2515_v15 }
  0x35   :  { %475 = vmatpush.msra.mxu0 %v2525_v21  ;;  %591 = vmatpush.msra.mxu2 %v2535_v26 }
  0x36   :  { %498 = vmatpush.msra.mxu1 %v2527_v23  ;;  %612 = vmatpush.msra.mxu3 %v2521_v19 }
  0x37   :  { %476 = vmatpush.msra.mxu0 %v2535_v26  ;;  %592 = vmatpush.msra.mxu2 %v2539_v29 }
  0x38   :  { %613 = vmatpush.msra.mxu3 %v2527_v23  ;;  %2166 = vmatmul.msk.f32.gmra.mxu0 %vm56_vm0, %v32_v61 }
  0x39   :  { %477 = vmatpush.msra.mxu0 %v2539_v29  ;;  %593 = vmatpush.msra.mxu2 %v2542_v31 }
  0x3a   :  { %2168 = vmatmul.msk.f32.gmra.mxu1 %vm56_vm0, %v32_v61 }
  0x3b   :  { %478 = vmatpush.msra.mxu0 %v2542_v31 }
  0x94   :  { %v103_v36 = vpop.f32.mrf.mxu1 }
  0x95   :  { %v2616_v37 = vadd.f32 %v103_v36, %v53_v35 }
  0x99   :  { %v165_v38 = vpop.f32.mrf.mxu3  ;;  %v80_v42 = vpop.f32.mrf.mxu0 }
  0x9a   :  { %v169_v39 = vadd.f32 %v165_v38, %v2616_v37  ;;  %v2623_v43 = vadd.f32 %v80_v42, %v52_v41 }
  0x9c   :  { %2256 = vtanh.f32 %v169_v39  ;;  %v2170_v5 = vmul.f32 -1.442695, %v169_v39 }
  0x9d   :  { %v145_v44 = vpop.f32.mrf.mxu2 }
  0x9e   :  { %v168_v45 = vadd.f32 %v145_v44, %v2623_v43 }
  0xa0   :  { %v2169_v46 = vmul.f32 -1.442695, %v168_v45 }
  0xa2   :  { %v2257_v40 = vpop.eup %2256  ;;  %2258 = vpow2.f32 %v2169_v46 }
  0xa3   :  { %211 = vrot.lane.b32.xlu0 %v2257_v40, %s2468_s20 }
  0xa8   :  { %v2259_v47 = vpop.eup %2258 }
  0xa9   :  { %v176_v48 = vadd.f32 1.0, %v2259_v47 }
  0xab   :  { %2260 = vrcp.f32 %v176_v48  ;;  %vm183_vm1 = vweird.f32 %v176_v48  ;;  %v189_v53 = vand.u32 2147483648, %v176_v48  ;;  %v187_v55 = vand.u32 2147483647, %v176_v48 }
  0xad   :  { %v190_v56 = vor.u32 1.1754944e-38, %v189_v53  ;;  %vm188_vm4 = vcmp.eq.f32.partialorder %v187_v55, 8.507059e+37 }
  0xb1   :  { %v2261_v49 = vpop.eup %2260 }
  0xb2   :  { %v179_v50 = vmul.f32 %v2261_v49, %v176_v48  ;;  %vm184_vm2 = vweird.f32 %v2261_v49 }
  0xb3   :  { %vm185_vm3 = vmor %vm183_vm1, %vm184_vm2 }
  0xb4   :  { %v180_v51 = vsub.f32 1.0, %v179_v50 }
  0xb5   :  { %v2660_v42 = vpop.f32.mrf.mxu0 }
  0xb6   :  { %v181_v52 = vmul.f32 %v2261_v49, %v180_v51 }
  0xb7   :  { %v2656_v33 = vpop.f32.mrf.mxu1 }
  0xb8   :  { %v182_v54 = vadd.f32 %v2261_v49, %v181_v52 }
  0xba   :  { %v186_v57 = vsel %vm185_vm3, %v2261_v49, %v182_v54 }
  0xbb   :  { %v191_v59 = vsel %vm188_vm4, %v190_v56, %v186_v57  ;;  %vm340_vm4 = vcmask 257026  }
  0xbc   :  { %v209_v62 = vmul.f32 0.0, %v191_v59 }
 0x115   :  { %v212_v58 = vpop.permute.xlu0 %211 }
 0x116   :  { %v214_v60 = vmul.f32 %v212_v58, %v191_v59 }
 0x118   :  { %216 = vrot.lane.b32.xlu0 %v214_v60, %s2468_s20 }
 0x18a   :  { %v217_v63 = vpop.permute.xlu0 %216 }
 0x18b   :  { %v2632_v2 = vadd.f32 %v217_v63, %v209_v62 }
 0x18d   :  { %2262 = vtanh.f32 %v2632_v2  ;;  %v321_v62 = vrot.slane %v2632_v2, 6 }
 0x18e   :  { %2264 = vpow2.f32 %v2170_v5 }
 0x193   :  { %v2263_v3 = vpop.eup %2262 }
 0x194   :  { %222 = vrot.lane.b32.xlu1 %v2263_v3, %s2468_s20  ;;  %v2265_v7 = vpop.eup %2264 }
 0x195   :  { %v177_v10 = vadd.f32 1.0, %v2265_v7 }
 0x197   :  { %2266 = vrcp.f32 %v177_v10  ;;  %v204_v22 = vand.u32 2147483648, %v177_v10  ;;  %vm198_vm6 = vweird.f32 %v177_v10  ;;  %v202_v24 = vand.u32 2147483647, %v177_v10 }
 0x199   :  { %v205_v27 = vor.u32 1.1754944e-38, %v204_v22  ;;  %vm203_vm8 = vcmp.eq.f32.partialorder %v202_v24, 8.507059e+37 }
 0x19d   :  { %v2267_v12 = vpop.eup %2266 }
 0x19e   :  { %v194_v14 = vmul.f32 %v2267_v12, %v177_v10  ;;  %vm199_vm5 = vweird.f32 %v2267_v12 }
 0x19f   :  { %vm200_vm7 = vmor %vm198_vm6, %vm199_vm5  ;;  %vm342_vm5 = vcmask 519426  }
 0x1a0   :  { %v195_v16 = vsub.f32 1.0, %v194_v14 }
 0x1a2   :  { %v196_v18 = vmul.f32 %v2267_v12, %v195_v16 }
 0x1a4   :  { %v197_v20 = vadd.f32 %v2267_v12, %v196_v18 }
 0x1a6   :  { %v201_v25 = vsel %vm200_vm7, %v2267_v12, %v197_v20 }
 0x1a7   :  { %v206_v28 = vsel %vm203_vm8, %v205_v27, %v201_v25 }
 0x206   :  { %v223_v30 = vpop.permute.xlu1 %222 }
 0x207   :  { %v225_v32 = vmul.f32 %v223_v30, %v206_v28 }
 0x209   :  { %227 = vst.msk [vmem:[#allocation2] sm:$0x3] %vm226_vm9, %v225_v32  ;;  %2171 = vmatmul.msk.f32.vlgmr.msrb.gmra.mxu0 %vm56_vm0, %v225_v32  ;;  %2172 = vmatmul.msk.f32.vlgmr.msrb.gmra.mxu1 %vm56_vm0, %v225_v32 }
 0x20a   :  { %229 = vst.msk [vmem:[#allocation2 + $0xe] sm:$0x3] %vm228_vm10, %v225_v32  ;;  %692 = vmatpush.msrb.mxu0 %v2507_v9  ;;  %712 = vmatpush.msrb.mxu1 %v2494_v0 }
 0x20c   :  { %693 = vmatpush.msrb.mxu0 %v2510_v11  ;;  %713 = vmatpush.msrb.mxu1 %v2496_v1 }
 0x20e   :  { %694 = vmatpush.msrb.mxu0 %v2513_v13  ;;  %714 = vmatpush.msrb.mxu1 %v2499_v4 }
 0x210   :  { %695 = vmatpush.msrb.mxu0 %v2519_v17  ;;  %715 = vmatpush.msrb.mxu1 %v2502_v6 }
 0x212   :  { %696 = vmatpush.msrb.mxu0 %v2525_v21  ;;  %716 = vmatpush.msrb.mxu1 %v2505_v8 }
 0x214   :  { %697 = vmatpush.msrb.mxu0 %v2535_v26  ;;  %717 = vmatpush.msrb.mxu1 %v2515_v15 }
 0x216   :  { %698 = vmatpush.msrb.mxu0 %v2539_v29  ;;  %718 = vmatpush.msrb.mxu1 %v2521_v19 }
 0x218   :  { %699 = vmatpush.msrb.mxu0 %v2542_v31  ;;  %719 = vmatpush.msrb.mxu1 %v2527_v23 }
 0x286   :  { %v270_v36 = vpop.f32.mrf.mxu1  ;;  %v250_v44 = vpop.f32.mrf.mxu0 }
 0x287   :  { %v276_v38 = vrot.slane %v270_v36, 6  ;;  %v275_v45 = vrot.slane %v250_v44, 6 }
 0x289   :  { %v280_v39 = vadd.f32 %v276_v38, %v2616_v37  ;;  %v279_v46 = vadd.f32 %v275_v45, %v2623_v43 }
 0x28b   :  { %2268 = vtanh.f32 %v280_v39  ;;  %v2173_v47 = vmul.f32 -1.442695, %v279_v46  ;;  %v2174_v10 = vmul.f32 -1.442695, %v280_v39 }
 0x28d   :  { %2270 = vpow2.f32 %v2173_v47 }
 0x291   :  { %v2269_v40 = vpop.eup %2268 }
 0x292   :  { %325 = vrot.lane.b32.xlu1 %v2269_v40, %s2468_s20 }
 0x293   :  { %v2271_v48 = vpop.eup %2270 }
 0x294   :  { %v287_v49 = vadd.f32 1.0, %v2271_v48 }
 0x296   :  { %2272 = vrcp.f32 %v287_v49  ;;  %v300_v55 = vand.u32 2147483648, %v287_v49  ;;  %vm294_vm12 = vweird.f32 %v287_v49  ;;  %v298_v56 = vand.u32 2147483647, %v287_v49 }
 0x298   :  { %v301_v58 = vor.u32 1.1754944e-38, %v300_v55  ;;  %vm299_vm14 = vcmp.eq.f32.partialorder %v298_v56, 8.507059e+37 }
 0x29c   :  { %v2273_v50 = vpop.eup %2272 }
 0x29d   :  { %v290_v51 = vmul.f32 %v2273_v50, %v287_v49  ;;  %vm295_vm11 = vweird.f32 %v2273_v50 }
 0x29e   :  { %vm296_vm13 = vmor %vm294_vm12, %vm295_vm11 }
 0x29f   :  { %v291_v52 = vsub.f32 1.0, %v290_v51 }
 0x2a1   :  { %v292_v53 = vmul.f32 %v2273_v50, %v291_v52 }
 0x2a3   :  { %v293_v54 = vadd.f32 %v2273_v50, %v292_v53 }
 0x2a5   :  { %v297_v57 = vsel %vm296_vm13, %v2273_v50, %v293_v54 }
 0x2a6   :  { %v302_v60 = vsel %vm299_vm14, %v301_v58, %v297_v57 }
 0x2a7   :  { %v323_v63 = vmul.f32 %v321_v62, %v302_v60 }
 0x304   :  { %v326_v59 = vpop.permute.xlu1 %325 }
 0x305   :  { %v328_v61 = vmul.f32 %v326_v59, %v302_v60 }
 0x307   :  { %330 = vrot.lane.b32.xlu2 %v328_v61, %s2468_s20 }
 0x361   :  { %v331_v3 = vpop.permute.xlu2 %330 }
 0x362   :  { %v2665_v5 = vadd.f32 %v331_v3, %v323_v63 }
 0x364   :  { %2274 = vtanh.f32 %v2665_v5  ;;  %v436_v3 = vrot.slane %v2665_v5, 6 }
 0x365   :  { %2276 = vpow2.f32 %v2174_v10 }
 0x36a   :  { %v2275_v7 = vpop.eup %2274 }
 0x36b   :  { %336 = vrot.lane.b32.xlu2 %v2275_v7, %s2468_s20  ;;  %v2277_v12 = vpop.eup %2276 }
 0x36c   :  { %v288_v14 = vadd.f32 1.0, %v2277_v12 }
 0x36e   :  { %2278 = vrcp.f32 %v288_v14  ;;  %v315_v2 = vand.u32 2147483648, %v288_v14  ;;  %vm309_vm1 = vweird.f32 %v288_v14  ;;  %v313_v25 = vand.u32 2147483647, %v288_v14 }
 0x370   :  { %v316_v28 = vor.u32 1.1754944e-38, %v315_v2  ;;  %vm314_vm3 = vcmp.eq.f32.partialorder %v313_v25, 8.507059e+37 }
 0x374   :  { %v2279_v16 = vpop.eup %2278 }
 0x375   :  { %v305_v18 = vmul.f32 %v2279_v16, %v288_v14  ;;  %vm310_vm15 = vweird.f32 %v2279_v16 }
 0x376   :  { %vm311_vm2 = vmor %vm309_vm1, %vm310_vm15  ;;  %vm455_vm1 = vcmask 259076  }
 0x377   :  { %v306_v20 = vsub.f32 1.0, %v305_v18 }
 0x379   :  { %v307_v22 = vmul.f32 %v2279_v16, %v306_v20 }
 0x37b   :  { %v308_v24 = vadd.f32 %v2279_v16, %v307_v22 }
 0x37d   :  { %v312_v27 = vsel %vm311_vm2, %v2279_v16, %v308_v24  ;;  %vm457_vm2 = vcmask 521476  }
 0x37e   :  { %v317_v30 = vsel %vm314_vm3, %v316_v28, %v312_v27 }
 0x3c5   :  { %v337_v32 = vpop.permute.xlu2 %336 }
 0x3c6   :  { %v339_v36 = vmul.f32 %v337_v32, %v317_v30 }
 0x3c8   :  { %341 = vst.msk [vmem:[#allocation2] sm:$0xc] %vm340_vm4, %v339_v36  ;;  %v345_v38 = vrot.slane %v339_v36, 2 }
 0x3c9   :  { %343 = vst.msk [vmem:[#allocation2 + $0xa] sm:$0xc] %vm342_vm5, %v339_v36 }
 0x3ca   :  { %2175 = vmatmul.msk.f32.vlgmr.msrb.gmra.mxu2 %vm56_vm0, %v345_v38  ;;  %2176 = vmatmul.msk.f32.vlgmr.msrb.gmra.mxu3 %vm56_vm0, %v345_v38 }
 0x3cb   :  { %805 = vmatpush.msrb.mxu2 %v2507_v9  ;;  %825 = vmatpush.msrb.mxu3 %v2494_v0 }
 0x3cd   :  { %806 = vmatpush.msrb.mxu2 %v2510_v11  ;;  %826 = vmatpush.msrb.mxu3 %v2496_v1 }
 0x3cf   :  { %807 = vmatpush.msrb.mxu2 %v2513_v13  ;;  %827 = vmatpush.msrb.mxu3 %v2499_v4 }
 0x3d1   :  { %808 = vmatpush.msrb.mxu2 %v2519_v17  ;;  %828 = vmatpush.msrb.mxu3 %v2502_v6 }
 0x3d3   :  { %809 = vmatpush.msrb.mxu2 %v2525_v21  ;;  %829 = vmatpush.msrb.mxu3 %v2505_v8 }
 0x3d5   :  { %810 = vmatpush.msrb.mxu2 %v2535_v26  ;;  %830 = vmatpush.msrb.mxu3 %v2515_v15 }
 0x3d7   :  { %811 = vmatpush.msrb.mxu2 %v2539_v29  ;;  %831 = vmatpush.msrb.mxu3 %v2521_v19 }
 0x3d9   :  { %812 = vmatpush.msrb.mxu2 %v2542_v31  ;;  %832 = vmatpush.msrb.mxu3 %v2527_v23 }
 0x44d   :  { %v385_v39 = vpop.f32.mrf.mxu3  ;;  %v365_v46 = vpop.f32.mrf.mxu2 }
 0x44e   :  { %v391_v40 = vrot.slane %v385_v39, 4  ;;  %v390_v47 = vrot.slane %v365_v46, 4 }
 0x450   :  { %v395_v44 = vadd.f32 %v391_v40, %v2616_v37  ;;  %v394_v48 = vadd.f32 %v390_v47, %v2623_v43 }
 0x452   :  { %2280 = vtanh.f32 %v395_v44  ;;  %v2177_v49 = vmul.f32 -1.442695, %v394_v48  ;;  %v2178_v16 = vmul.f32 -1.442695, %v395_v44 }
 0x454   :  { %2282 = vpow2.f32 %v2177_v49 }
 0x458   :  { %v2281_v45 = vpop.eup %2280 }
 0x459   :  { %440 = vrot.lane.b32.xlu0 %v2281_v45, %s2468_s20 }
 0x45a   :  { %v2283_v50 = vpop.eup %2282 }
 0x45b   :  { %v402_v51 = vadd.f32 1.0, %v2283_v50 }
 0x45d   :  { %2284 = vrcp.f32 %v402_v51  ;;  %v415_v57 = vand.u32 2147483648, %v402_v51  ;;  %vm409_vm7 = vweird.f32 %v402_v51  ;;  %v413_v58 = vand.u32 2147483647, %v402_v51 }
 0x45f   :  { %v416_v60 = vor.u32 1.1754944e-38, %v415_v57  ;;  %vm414_vm11 = vcmp.eq.f32.partialorder %v413_v58, 8.507059e+37 }
 0x463   :  { %v2285_v52 = vpop.eup %2284 }
 0x464   :  { %v405_v53 = vmul.f32 %v2285_v52, %v402_v51  ;;  %vm410_vm6 = vweird.f32 %v2285_v52 }
 0x465   :  { %vm411_vm8 = vmor %vm409_vm7, %vm410_vm6 }
 0x466   :  { %v406_v54 = vsub.f32 1.0, %v405_v53 }
 0x468   :  { %v407_v55 = vmul.f32 %v2285_v52, %v406_v54 }
 0x46a   :  { %v408_v56 = vadd.f32 %v2285_v52, %v407_v55 }
 0x46c   :  { %v412_v59 = vsel %vm411_vm8, %v2285_v52, %v408_v56 }
 0x46d   :  { %v417_v62 = vsel %vm414_vm11, %v416_v60, %v412_v59 }
 0x46e   :  { %v438_v7 = vmul.f32 %v436_v3, %v417_v62 }
 0x4cb   :  { %v441_v61 = vpop.permute.xlu0 %440 }
 0x4cc   :  { %v443_v63 = vmul.f32 %v441_v61, %v417_v62 }
 0x4ce   :  { %445 = vrot.lane.b32.xlu1 %v443_v63, %s2468_s20 }
 0x540   :  { %v446_v10 = vpop.permute.xlu1 %445 }
 0x541   :  { %v2694_v12 = vadd.f32 %v446_v10, %v438_v7 }
 0x543   :  { %2286 = vtanh.f32 %v2694_v12  ;;  %v551_v48 = vrot.slane %v2694_v12, 6 }
 0x544   :  { %2288 = vpow2.f32 %v2178_v16  ;;  %v2734_v16 = vadd.f32 %v2656_v33, %v53_v35 }
 0x549   :  { %v2287_v14 = vpop.eup %2286 }
 0x54a   :  { %451 = vrot.lane.b32.xlu2 %v2287_v14, %s2468_s20  ;;  %v2289_v18 = vpop.eup %2288 }
 0x54b   :  { %v403_v20 = vadd.f32 1.0, %v2289_v18 }
 0x54d   :  { %2290 = vrcp.f32 %v403_v20  ;;  %v430_v5 = vand.u32 2147483648, %v403_v20  ;;  %vm424_vm13 = vweird.f32 %v403_v20  ;;  %v428_v28 = vand.u32 2147483647, %v403_v20 }
 0x54f   :  { %v431_v32 = vor.u32 1.1754944e-38, %v430_v5  ;;  %vm429_vm15 = vcmp.eq.f32.partialorder %v428_v28, 8.507059e+37 }
 0x553   :  { %v2291_v22 = vpop.eup %2290 }
 0x554   :  { %v420_v24 = vmul.f32 %v2291_v22, %v403_v20  ;;  %vm425_vm12 = vweird.f32 %v2291_v22 }
 0x555   :  { %vm426_vm14 = vmor %vm424_vm13, %vm425_vm12 }
 0x556   :  { %v421_v2 = vsub.f32 1.0, %v420_v24 }
 0x558   :  { %v422_v25 = vmul.f32 %v2291_v22, %v421_v2  ;;  %v2741_v2 = vadd.f32 %v2660_v42, %v52_v41 }
 0x55a   :  { %v423_v27 = vadd.f32 %v2291_v22, %v422_v25 }
 0x55c   :  { %v427_v30 = vsel %vm426_vm14, %v2291_v22, %v423_v27 }
 0x55d   :  { %v432_v36 = vsel %vm429_vm15, %v431_v32, %v427_v30  ;;  %vm570_vm15 = vcmask 261126  }
 0x5a4   :  { %v452_v38 = vpop.permute.xlu2 %451 }
 0x5a5   :  { %v454_v39 = vmul.f32 %v452_v38, %v432_v36 }
 0x5a7   :  { %456 = vst.msk [vmem:[#allocation2] sm:$0x30] %vm455_vm1, %v454_v39  ;;  %v460_v40 = vrot.slane %v454_v39, 4 }
 0x5a8   :  { %458 = vst.msk [vmem:[#allocation2 + $0x6] sm:$0x30] %vm457_vm2, %v454_v39 }
 0x5a9   :  { %2179 = vmatmul.msk.f32.vlgmr.msra.gmra.mxu0 %vm56_vm0, %v460_v40  ;;  %2180 = vmatmul.msk.f32.vlgmr.msra.gmra.mxu1 %vm56_vm0, %v460_v40 }
 0x5aa   :  { %918 = vmatpush.msra.mxu0 %v2507_v9  ;;  %938 = vmatpush.msra.mxu1 %v2494_v0 }
 0x5ac   :  { %919 = vmatpush.msra.mxu0 %v2510_v11  ;;  %939 = vmatpush.msra.mxu1 %v2496_v1 }
 0x5ae   :  { %920 = vmatpush.msra.mxu0 %v2513_v13  ;;  %940 = vmatpush.msra.mxu1 %v2499_v4 }
 0x5b0   :  { %921 = vmatpush.msra.mxu0 %v2519_v17  ;;  %941 = vmatpush.msra.mxu1 %v2502_v6 }
 0x5b2   :  { %922 = vmatpush.msra.mxu0 %v2525_v21  ;;  %942 = vmatpush.msra.mxu1 %v2505_v8 }
 0x5b4   :  { %923 = vmatpush.msra.mxu0 %v2535_v26  ;;  %943 = vmatpush.msra.mxu1 %v2515_v15 }
 0x5b6   :  { %924 = vmatpush.msra.mxu0 %v2539_v29  ;;  %944 = vmatpush.msra.mxu1 %v2521_v19 }
 0x5b8   :  { %925 = vmatpush.msra.mxu0 %v2542_v31  ;;  %945 = vmatpush.msra.mxu1 %v2527_v23 }
 0x626   :  { %v500_v0 = vpop.f32.mrf.mxu1  ;;  %v480_v8 = vpop.f32.mrf.mxu0 }
 0x627   :  { %v506_v1 = vrot.slane %v500_v0, 2  ;;  %v505_v9 = vrot.slane %v480_v8, 2 }
 0x629   :  { %v510_v4 = vadd.f32 %v506_v1, %v2616_v37  ;;  %v509_v11 = vadd.f32 %v505_v9, %v2623_v43 }
 0x62b   :  { %2292 = vtanh.f32 %v510_v4  ;;  %v2181_v13 = vmul.f32 -1.442695, %v509_v11  ;;  %v2182_v53 = vmul.f32 -1.442695, %v510_v4 }
 0x62d   :  { %2294 = vpow2.f32 %v2181_v13 }
 0x631   :  { %v2293_v6 = vpop.eup %2292 }
 0x632   :  { %555 = vrot.lane.b32.xlu0 %v2293_v6, %s2468_s20 }
 0x633   :  { %v2295_v15 = vpop.eup %2294 }
 0x634   :  { %v517_v17 = vadd.f32 1.0, %v2295_v15 }
 0x636   :  { %2296 = vrcp.f32 %v517_v17  ;;  %v530_v31 = vand.u32 2147483648, %v517_v17  ;;  %vm524_vm6 = vweird.f32 %v517_v17  ;;  %v528_v37 = vand.u32 2147483647, %v517_v17 }
 0x638   :  { %v531_v45 = vor.u32 1.1754944e-38, %v530_v31  ;;  %vm529_vm8 = vcmp.eq.f32.partialorder %v528_v37, 8.507059e+37 }
 0x63c   :  { %v2297_v19 = vpop.eup %2296 }
 0x63d   :  { %v520_v21 = vmul.f32 %v2297_v19, %v517_v17  ;;  %vm525_vm3 = vweird.f32 %v2297_v19 }
 0x63e   :  { %vm526_vm7 = vmor %vm524_vm6, %vm525_vm3  ;;  %vm572_vm3 = vcmask 523526  }
 0x63f   :  { %v521_v23 = vsub.f32 1.0, %v520_v21 }
 0x641   :  { %v522_v26 = vmul.f32 %v2297_v19, %v521_v23 }
 0x643   :  { %v523_v29 = vadd.f32 %v2297_v19, %v522_v26 }
 0x645   :  { %v527_v44 = vsel %vm526_vm7, %v2297_v19, %v523_v29 }
 0x646   :  { %v532_v43 = vsel %vm529_vm8, %v531_v45, %v527_v44 }
 0x647   :  { %v553_v49 = vmul.f32 %v551_v48, %v532_v43 }
 0x6a4   :  { %v556_v46 = vpop.permute.xlu0 %555 }
 0x6a5   :  { %v558_v47 = vmul.f32 %v556_v46, %v532_v43 }
 0x6a7   :  { %560 = vrot.lane.b32.xlu1 %v558_v47, %s2468_s20 }
 0x719   :  { %v561_v50 = vpop.permute.xlu1 %560 }
 0x71a   :  { %v2723_v51 = vadd.f32 %v561_v50, %v553_v49 }
 0x71c   :  { %2298 = vtanh.f32 %v2723_v51  ;;  %v660_v1 = vrot.slane %v2723_v51, 6 }
 0x71d   :  { %2300 = vpow2.f32 %v2182_v53 }
 0x722   :  { %v2299_v52 = vpop.eup %2298 }
 0x723   :  { %566 = vrot.lane.b32.xlu2 %v2299_v52, %s2468_s20  ;;  %v2301_v54 = vpop.eup %2300 }
 0x724   :  { %v518_v55 = vadd.f32 1.0, %v2301_v54 }
 0x726   :  { %2302 = vrcp.f32 %v518_v55  ;;  %v545_v61 = vand.u32 2147483648, %v518_v55  ;;  %vm539_vm12 = vweird.f32 %v518_v55  ;;  %v543_v62 = vand.u32 2147483647, %v518_v55 }
 0x728   :  { %v546_v3 = vor.u32 1.1754944e-38, %v545_v61  ;;  %vm544_vm14 = vcmp.eq.f32.partialorder %v543_v62, 8.507059e+37 }
 0x72c   :  { %v2303_v56 = vpop.eup %2302 }
 0x72d   :  { %v535_v57 = vmul.f32 %v2303_v56, %v518_v55  ;;  %vm540_vm11 = vweird.f32 %v2303_v56 }
 0x72e   :  { %vm541_vm13 = vmor %vm539_vm12, %vm540_vm11 }
 0x72f   :  { %v536_v58 = vsub.f32 1.0, %v535_v57 }
 0x731   :  { %v537_v59 = vmul.f32 %v2303_v56, %v536_v58 }
 0x733   :  { %v538_v60 = vadd.f32 %v2303_v56, %v537_v59 }
 0x735   :  { %v542_v63 = vsel %vm541_vm13, %v2303_v56, %v538_v60 }
 0x736   :  { %v547_v7 = vsel %vm544_vm14, %v546_v3, %v542_v63 }
 0x77d   :  { %v567_v10 = vpop.permute.xlu2 %566 }
 0x77e   :  { %v569_v12 = vmul.f32 %v567_v10, %v547_v7 }
 0x780   :  { %571 = vst.msk [vmem:[#allocation2] sm:$0xc0] %vm570_vm15, %v569_v12  ;;  %v575_v14 = vrot.slane %v569_v12, 6 }
 0x781   :  { %573 = vst.msk [vmem:[#allocation2 + $0x2] sm:$0xc0] %vm572_vm3, %v569_v12 }
 0x782   :  { %2183 = vmatmul.msk.f32.vlgmr.msra.gmra.mxu2 %vm56_vm0, %v575_v14  ;;  %2184 = vmatmul.msk.f32.vlgmr.msra.gmra.mxu3 %vm56_vm0, %v575_v14 }
 0x805   :  { %v615_v18 = vpop.f32.mrf.mxu3  ;;  %v595_v24 = vpop.f32.mrf.mxu2 }
 0x806   :  { %v619_v20 = vadd.f32 %v615_v18, %v2734_v16  ;;  %v618_v25 = vadd.f32 %v595_v24, %v2741_v2 }
 0x808   :  { %2304 = vtanh.f32 %v619_v20  ;;  %v2185_v27 = vmul.f32 -1.442695, %v618_v25  ;;  %v2186_v11 = vmul.f32 -1.442695, %v619_v20 }
 0x80a   :  { %2306 = vpow2.f32 %v2185_v27 }
 0x80e   :  { %v2305_v22 = vpop.eup %2304 }
 0x80f   :  { %664 = vrot.lane.b32.xlu0 %v2305_v22, %s2468_s20 }
 0x810   :  { %v2307_v5 = vpop.eup %2306 }
 0x811   :  { %v626_v35 = vadd.f32 1.0, %v2307_v5 }
 0x813   :  { %2308 = vrcp.f32 %v626_v35  ;;  %v639_v38 = vand.u32 2147483648, %v626_v35  ;;  %vm633_vm7 = vweird.f32 %v626_v35  ;;  %v637_v39 = vand.u32 2147483647, %v626_v35 }
 0x815   :  { %v640_v41 = vor.u32 1.1754944e-38, %v639_v38  ;;  %vm638_vm11 = vcmp.eq.f32.partialorder %v637_v39, 8.507059e+37 }
 0x819   :  { %v2309_v33 = vpop.eup %2308 }
 0x81a   :  { %v629_v28 = vmul.f32 %v2309_v33, %v626_v35  ;;  %vm634_vm6 = vweird.f32 %v2309_v33 }
 0x81b   :  { %vm635_vm8 = vmor %vm633_vm7, %vm634_vm6 }
 0x81c   :  { %v630_v30 = vsub.f32 1.0, %v629_v28 }
 0x81e   :  { %v631_v32 = vmul.f32 %v2309_v33, %v630_v30 }
 0x820   :  { %v632_v36 = vadd.f32 %v2309_v33, %v631_v32 }
 0x822   :  { %v636_v34 = vsel %vm635_vm8, %v2309_v33, %v632_v36 }
 0x823   :  { %v641_v40 = vsel %vm638_vm11, %v640_v41, %v636_v34 }
 0x824   :  { %v662_v4 = vmul.f32 %v660_v1, %v641_v40 }
 0x881   :  { %v665_v42 = vpop.permute.xlu0 %664 }
 0x882   :  { %v667_v0 = vmul.f32 %v665_v42, %v641_v40 }
 0x884   :  { %669 = vrot.lane.b32.xlu1 %v667_v0, %s2468_s20 }
 0x8f6   :  { %v670_v6 = vpop.permute.xlu1 %669 }
 0x8f7   :  { %v672_v8 = vadd.f32 %v670_v6, %v662_v4 }
 0x8f9   :  { %2310 = vtanh.f32 %v672_v8  ;;  %v772_v18 = vrot.slane %v672_v8, 6 }
 0x8fa   :  { %2312 = vpow2.f32 %v2186_v11 }
 0x8ff   :  { %v2311_v9 = vpop.eup %2310 }
 0x900   :  { %675 = vrot.lane.b32.xlu2 %v2311_v9, %s2468_s20  ;;  %v2313_v13 = vpop.eup %2312 }
 0x901   :  { %v627_v15 = vadd.f32 1.0, %v2313_v13 }
 0x903   :  { %2314 = vrcp.f32 %v627_v15  ;;  %v654_v29 = vand.u32 2147483648, %v627_v15  ;;  %vm648_vm13 = vweird.f32 %v627_v15  ;;  %v652_v31 = vand.u32 2147483647, %v627_v15 }
 0x905   :  { %v655_v44 = vor.u32 1.1754944e-38, %v654_v29  ;;  %vm653_vm6 = vcmp.eq.f32.partialorder %v652_v31, 8.507059e+37 }
 0x909   :  { %v2315_v17 = vpop.eup %2314 }
 0x90a   :  { %v644_v19 = vmul.f32 %v2315_v17, %v627_v15  ;;  %vm649_vm12 = vweird.f32 %v2315_v17 }
 0x90b   :  { %vm650_vm14 = vmor %vm648_vm13, %vm649_vm12 }
 0x90c   :  { %v645_v21 = vsub.f32 1.0, %v644_v19 }
 0x90e   :  { %v646_v23 = vmul.f32 %v2315_v17, %v645_v21 }
 0x910   :  { %v647_v26 = vadd.f32 %v2315_v17, %v646_v23 }
 0x912   :  { %v651_v37 = vsel %vm650_vm14, %v2315_v17, %v647_v26 }
 0x913   :  { %v656_v45 = vsel %vm653_vm6, %v655_v44, %v651_v37 }
 0x95a   :  { %v676_v46 = vpop.permute.xlu2 %675 }
 0x95b   :  { %v678_v43 = vmul.f32 %v676_v46, %v656_v45 }
 0x95d   :  { %679 = vst.msk [vmem:[#allocation2 + $0x8] sm:$0x3] %vm226_vm9, %v678_v43  ;;  %2187 = vmatmul.msk.f32.vlgmr.msrb.gmra.mxu0 %vm56_vm0, %v678_v43  ;;  %2188 = vmatmul.msk.f32.vlgmr.msrb.gmra.mxu1 %vm56_vm0, %v678_v43 }
 0x95e   :  { %680 = vst.msk [vmem:[#allocation2 + $0x6] sm:$0x3] %vm228_vm10, %v678_v43 }
 0x9da   :  { %v721_v47 = vpop.f32.mrf.mxu1  ;;  %v701_v51 = vpop.f32.mrf.mxu0 }
 0x9db   :  { %v727_v48 = vrot.slane %v721_v47, 6  ;;  %v726_v52 = vrot.slane %v701_v51, 6 }
 0x9dd   :  { %v731_v49 = vadd.f32 %v727_v48, %v2734_v16  ;;  %v730_v53 = vadd.f32 %v726_v52, %v2741_v2 }
 0x9df   :  { %2316 = vtanh.f32 %v731_v49  ;;  %v2189_v54 = vmul.f32 -1.442695, %v730_v53  ;;  %v2190_v27 = vmul.f32 -1.442695, %v731_v49 }
 0x9e1   :  { %2318 = vpow2.f32 %v2189_v54 }
 0x9e5   :  { %v2317_v50 = vpop.eup %2316 }
 0x9e6   :  { %776 = vrot.lane.b32.xlu0 %v2317_v50, %s2468_s20 }
 0x9e7   :  { %v2319_v55 = vpop.eup %2318 }
 0x9e8   :  { %v738_v56 = vadd.f32 1.0, %v2319_v55 }
 0x9ea   :  { %2320 = vrcp.f32 %v738_v56  ;;  %v751_v62 = vand.u32 2147483648, %v738_v56  ;;  %vm745_vm10 = vweird.f32 %v738_v56  ;;  %v749_v63 = vand.u32 2147483647, %v738_v56 }
 0x9ec   :  { %v752_v7 = vor.u32 1.1754944e-38, %v751_v62  ;;  %vm750_vm8 = vcmp.eq.f32.partialorder %v749_v63, 8.507059e+37 }
 0x9f0   :  { %v2321_v57 = vpop.eup %2320 }
 0x9f1   :  { %v741_v58 = vmul.f32 %v2321_v57, %v738_v56  ;;  %vm746_vm9 = vweird.f32 %v2321_v57 }
 0x9f2   :  { %vm747_vm7 = vmor %vm745_vm10, %vm746_vm9 }
 0x9f3   :  { %v742_v59 = vsub.f32 1.0, %v741_v58 }
 0x9f5   :  { %v743_v60 = vmul.f32 %v2321_v57, %v742_v59 }
 0x9f7   :  { %v744_v61 = vadd.f32 %v2321_v57, %v743_v60 }
 0x9f9   :  { %v748_v3 = vsel %vm747_vm7, %v2321_v57, %v744_v61 }
 0x9fa   :  { %v753_v12 = vsel %vm750_vm8, %v752_v7, %v748_v3 }
 0x9fb   :  { %v774_v20 = vmul.f32 %v772_v18, %v753_v12 }
 0xa58   :  { %v777_v10 = vpop.permute.xlu0 %776 }
 0xa59   :  { %v779_v14 = vmul.f32 %v777_v10, %v753_v12 }
 0xa5b   :  { %781 = vrot.lane.b32.xlu1 %v779_v14, %s2468_s20 }
 0xacd   :  { %v782_v22 = vpop.permute.xlu1 %781 }
 0xace   :  { %v2755_v24 = vadd.f32 %v782_v22, %v774_v20 }
 0xad0   :  { %2322 = vtanh.f32 %v2755_v24  ;;  %v885_v50 = vrot.slane %v2755_v24, 6 }
 0xad1   :  { %2324 = vpow2.f32 %v2190_v27 }
 0xad6   :  { %v2323_v25 = vpop.eup %2322 }
 0xad7   :  { %787 = vrot.lane.b32.xlu2 %v2323_v25, %s2468_s20  ;;  %v2325_v5 = vpop.eup %2324 }
 0xad8   :  { %v739_v35 = vadd.f32 1.0, %v2325_v5 }
 0xada   :  { %2326 = vrcp.f32 %v739_v35  ;;  %v766_v38 = vand.u32 2147483648, %v739_v35  ;;  %vm760_vm12 = vweird.f32 %v739_v35  ;;  %v764_v39 = vand.u32 2147483647, %v739_v35 }
 0xadc   :  { %v767_v41 = vor.u32 1.1754944e-38, %v766_v38  ;;  %vm765_vm14 = vcmp.eq.f32.partialorder %v764_v39, 8.507059e+37 }
 0xae0   :  { %v2327_v33 = vpop.eup %2326 }
 0xae1   :  { %v756_v28 = vmul.f32 %v2327_v33, %v739_v35  ;;  %vm761_vm11 = vweird.f32 %v2327_v33 }
 0xae2   :  { %vm762_vm13 = vmor %vm760_vm12, %vm761_vm11 }
 0xae3   :  { %v757_v30 = vsub.f32 1.0, %v756_v28 }
 0xae5   :  { %v758_v32 = vmul.f32 %v2327_v33, %v757_v30 }
 0xae7   :  { %v759_v36 = vadd.f32 %v2327_v33, %v758_v32 }
 0xae9   :  { %v763_v34 = vsel %vm762_vm13, %v2327_v33, %v759_v36 }
 0xaea   :  { %v768_v42 = vsel %vm765_vm14, %v767_v41, %v763_v34 }
 0xb31   :  { %v788_v40 = vpop.permute.xlu2 %787 }
 0xb32   :  { %v790_v0 = vmul.f32 %v788_v40, %v768_v42 }
 0xb34   :  { %791 = vst.msk [vmem:[#allocation2 + $0x8] sm:$0xc] %vm340_vm4, %v790_v0  ;;  %v794_v1 = vrot.slane %v790_v0, 2 }
 0xb35   :  { %792 = vst.msk [vmem:[#allocation2 + $0x2] sm:$0xc] %vm342_vm5, %v790_v0 }
 0xb36   :  { %2191 = vmatmul.msk.f32.vlgmr.msrb.gmra.mxu2 %vm56_vm0, %v794_v1  ;;  %2192 = vmatmul.msk.f32.vlgmr.msrb.gmra.mxu3 %vm56_vm0, %v794_v1 }
 0xbb9   :  { %v834_v4 = vpop.f32.mrf.mxu3  ;;  %v814_v11 = vpop.f32.mrf.mxu2 }
 0xbba   :  { %v840_v6 = vrot.slane %v834_v4, 4  ;;  %v839_v13 = vrot.slane %v814_v11, 4 }
 0xbbc   :  { %v844_v8 = vadd.f32 %v840_v6, %v2734_v16  ;;  %v843_v15 = vadd.f32 %v839_v13, %v2741_v2 }
 0xbbe   :  { %2328 = vtanh.f32 %v844_v8  ;;  %v2193_v17 = vmul.f32 -1.442695, %v843_v15  ;;  %v2194_v55 = vmul.f32 -1.442695, %v844_v8 }
 0xbc0   :  { %2330 = vpow2.f32 %v2193_v17 }
 0xbc4   :  { %v2329_v9 = vpop.eup %2328 }
 0xbc5   :  { %889 = vrot.lane.b32.xlu0 %v2329_v9, %s2468_s20 }
 0xbc6   :  { %v2331_v19 = vpop.eup %2330 }
 0xbc7   :  { %v851_v21 = vadd.f32 1.0, %v2331_v19 }
 0xbc9   :  { %2332 = vrcp.f32 %v851_v21  ;;  %v864_v44 = vand.u32 2147483648, %v851_v21  ;;  %vm858_vm5 = vweird.f32 %v851_v21  ;;  %v862_v45 = vand.u32 2147483647, %v851_v21 }
 0xbcb   :  { %v865_v43 = vor.u32 1.1754944e-38, %v864_v44  ;;  %vm863_vm9 = vcmp.eq.f32.partialorder %v862_v45, 8.507059e+37 }
 0xbcf   :  { %v2333_v23 = vpop.eup %2332 }
 0xbd0   :  { %v854_v26 = vmul.f32 %v2333_v23, %v851_v21  ;;  %vm859_vm4 = vweird.f32 %v2333_v23 }
 0xbd1   :  { %vm860_vm6 = vmor %vm858_vm5, %vm859_vm4 }
 0xbd2   :  { %v855_v29 = vsub.f32 1.0, %v854_v26 }
 0xbd4   :  { %v856_v31 = vmul.f32 %v2333_v23, %v855_v29 }
 0xbd6   :  { %v857_v37 = vadd.f32 %v2333_v23, %v856_v31 }
 0xbd8   :  { %v861_v46 = vsel %vm860_vm6, %v2333_v23, %v857_v37 }
 0xbd9   :  { %v866_v48 = vsel %vm863_vm9, %v865_v43, %v861_v46  ;;  %vm1060_vm9 = vcmask 130048  }
 0xbda   :  { %v887_v51 = vmul.f32 %v885_v50, %v866_v48 }
 0xc37   :  { %v890_v47 = vpop.permute.xlu0 %889 }
 0xc38   :  { %v892_v49 = vmul.f32 %v890_v47, %v866_v48 }
 0xc3a   :  { %894 = vrot.lane.b32.xlu1 %v892_v49, %s2468_s20 }
 0xcac   :  { %v895_v52 = vpop.permute.xlu1 %894 }
 0xcad   :  { %v2768_v53 = vadd.f32 %v895_v52, %v887_v51 }
 0xcaf   :  { %2334 = vtanh.f32 %v2768_v53  ;;  %v998_v6 = vrot.slane %v2768_v53, 6  ;;  %v1023_v53 = vld [vmem:[#allocation3 + $0x8a0] sm:$0xff] }
 0xcb0   :  { %2336 = vpow2.f32 %v2194_v55 }
 0xcb5   :  { %v2335_v54 = vpop.eup %2334 }
 0xcb6   :  { %900 = vrot.lane.b32.xlu2 %v2335_v54, %s2468_s20  ;;  %v2337_v56 = vpop.eup %2336 }
 0xcb7   :  { %v852_v57 = vadd.f32 1.0, %v2337_v56 }
 0xcb9   :  { %2338 = vrcp.f32 %v852_v57  ;;  %v879_v63 = vand.u32 2147483648, %v852_v57  ;;  %vm873_vm7 = vweird.f32 %v852_v57  ;;  %v877_v3 = vand.u32 2147483647, %v852_v57 }
 0xcbb   :  { %v880_v10 = vor.u32 1.1754944e-38, %v879_v63  ;;  %vm878_vm11 = vcmp.eq.f32.partialorder %v877_v3, 8.507059e+37 }
 0xcbf   :  { %v2339_v58 = vpop.eup %2338 }
 0xcc0   :  { %v869_v59 = vmul.f32 %v2339_v58, %v852_v57  ;;  %vm874_vm10 = vweird.f32 %v2339_v58  ;;  %v1024_v57 = vld [vmem:[#allocation3 + $0x8b0] sm:$0xff] }
 0xcc1   :  { %vm875_vm8 = vmor %vm873_vm7, %vm874_vm10 }
 0xcc2   :  { %v870_v60 = vsub.f32 1.0, %v869_v59 }
 0xcc4   :  { %v871_v61 = vmul.f32 %v2339_v58, %v870_v60 }
 0xcc6   :  { %v872_v62 = vadd.f32 %v2339_v58, %v871_v61 }
 0xcc8   :  { %v876_v7 = vsel %vm875_vm8, %v2339_v58, %v872_v62 }
 0xcc9   :  { %v881_v12 = vsel %vm878_vm11, %v880_v10, %v876_v7 }
 0xd10   :  { %v901_v14 = vpop.permute.xlu2 %900 }
 0xd11   :  { %v903_v18 = vmul.f32 %v901_v14, %v881_v12 }
 0xd13   :  { %904 = vst.msk [vmem:[#allocation2 + $0x8] sm:$0x30] %vm455_vm1, %v903_v18  ;;  %v907_v20 = vrot.slane %v903_v18, 4 }
 0xd14   :  { %905 = vst.msk [vmem:[#allocation2 - $0x2] sm:$0x30] %vm457_vm2, %v903_v18 }
 0xd15   :  { %2195 = vmatmul.msk.f32.vlgmr.msra.gmra.mxu0 %vm56_vm0, %v907_v20  ;;  %2196 = vmatmul.msk.f32.vlgmr.msra.gmra.mxu1 %vm56_vm0, %v907_v20 }
 0xd92   :  { %v947_v22 = vpop.f32.mrf.mxu1  ;;  %v927_v5 = vpop.f32.mrf.mxu0 }
 0xd93   :  { %v953_v24 = vrot.slane %v947_v22, 2  ;;  %v952_v35 = vrot.slane %v927_v5, 2 }
 0xd95   :  { %v957_v25 = vadd.f32 %v953_v24, %v2734_v16  ;;  %v956_v33 = vadd.f32 %v952_v35, %v2741_v2 }
 0xd97   :  { %2340 = vtanh.f32 %v957_v25  ;;  %v2197_v28 = vmul.f32 -1.442695, %v956_v33  ;;  %v2198_v15 = vmul.f32 -1.442695, %v957_v25 }
 0xd99   :  { %2342 = vpow2.f32 %v2197_v28 }
 0xd9d   :  { %v2341_v27 = vpop.eup %2340 }
 0xd9e   :  { %1002 = vrot.lane.b32.xlu0 %v2341_v27, %s2468_s20 }
 0xd9f   :  { %v2343_v30 = vpop.eup %2342 }
 0xda0   :  { %v964_v32 = vadd.f32 1.0, %v2343_v30 }
 0xda2   :  { %2344 = vrcp.f32 %v964_v32  ;;  %v977_v16 = vand.u32 2147483648, %v964_v32  ;;  %vm971_vm2 = vweird.f32 %v964_v32  ;;  %v975_v42 = vand.u32 2147483647, %v964_v32 }
 0xda4   :  { %v978_v0 = vor.u32 1.1754944e-38, %v977_v16  ;;  %vm976_vm13 = vcmp.eq.f32.partialorder %v975_v42, 8.507059e+37 }
 0xda8   :  { %v2345_v36 = vpop.eup %2344 }
 0xda9   :  { %v967_v38 = vmul.f32 %v2345_v36, %v964_v32  ;;  %vm972_vm1 = vweird.f32 %v2345_v36 }
 0xdaa   :  { %vm973_vm12 = vmor %vm971_vm2, %vm972_vm1 }
 0xdab   :  { %v968_v39 = vsub.f32 1.0, %v967_v38 }
 0xdad   :  { %v969_v34 = vmul.f32 %v2345_v36, %v968_v39 }
 0xdaf   :  { %v970_v41 = vadd.f32 %v2345_v36, %v969_v34 }
 0xdb1   :  { %v974_v40 = vsel %vm973_vm12, %v2345_v36, %v970_v41  ;;  %vm1171_vm12 = vcmask 1041408  }
 0xdb2   :  { %v979_v2 = vsel %vm976_vm13, %v978_v0, %v974_v40  ;;  %vm1164_vm13 = vcmask 15360  }
 0xdb3   :  { %v1000_v8 = vmul.f32 %v998_v6, %v979_v2 }
 0xe10   :  { %v1003_v1 = vpop.permute.xlu0 %1002 }
 0xe11   :  { %v1005_v4 = vmul.f32 %v1003_v1, %v979_v2 }
 0xe13   :  { %1007 = vrot.lane.b32.xlu1 %v1005_v4, %s2468_s20 }
 0xe85   :  { %v1008_v9 = vpop.permute.xlu1 %1007 }
 0xe86   :  { %v1010_v11 = vadd.f32 %v1008_v9, %v1000_v8  ;;  %v1220_v9 = vld [vmem:[#allocation3 + $0x1c0] sm:$0xff] }
 0xe88   :  { %2346 = vtanh.f32 %v1010_v11  ;;  %v1221_v11 = vld [vmem:[#allocation3 + $0x1c8] sm:$0xff] }
 0xe89   :  { %2348 = vpow2.f32 %v2198_v15  ;;  %v1219_v15 = vld [vmem:[#allocation3 + $0x1b8] sm:$0xff] }
 0xe8e   :  { %v2347_v13 = vpop.eup %2346 }
 0xe8f   :  { %1013 = vrot.lane.b32.xlu2 %v2347_v13, %s2468_s20  ;;  %v2349_v17 = vpop.eup %2348  ;;  %v1218_v13 = vld [vmem:[#allocation3 + $0x1b0] sm:$0xff] }
 0xe90   :  { %v965_v19 = vadd.f32 1.0, %v2349_v17  ;;  %v1216_v17 = vld [vmem:[#allocation3 + $0x1a0] sm:$0xff] }
 0xe92   :  { %2350 = vrcp.f32 %v965_v19  ;;  %v992_v37 = vand.u32 2147483648, %v965_v19  ;;  %vm986_vm4 = vweird.f32 %v965_v19  ;;  %v990_v44 = vand.u32 2147483647, %v965_v19 }
 0xe94   :  { %v993_v46 = vor.u32 1.1754944e-38, %v992_v37  ;;  %vm991_vm6 = vcmp.eq.f32.partialorder %v990_v44, 8.507059e+37  ;;  %v1210_v44 = vld [vmem:[#allocation3 + $0x170] sm:$0xff] }
 0xe98   :  { %v2351_v21 = vpop.eup %2350 }
 0xe99   :  { %v982_v23 = vmul.f32 %v2351_v21, %v965_v19  ;;  %vm987_vm14 = vweird.f32 %v2351_v21  ;;  %v1217_v19 = vld [vmem:[#allocation3 + $0x1a8] sm:$0xff] }
 0xe9a   :  { %vm988_vm5 = vmor %vm986_vm4, %vm987_vm14  ;;  %vm1274_vm14 = vcmask 261120   ;;  %vm1409_vm4 = vcmask 916480  }
 0xe9b   :  { %v983_v26 = vsub.f32 1.0, %v982_v23  ;;  %v1215_v23 = vld [vmem:[#allocation3 + $0x198] sm:$0xff] }
 0xe9d   :  { %v984_v29 = vmul.f32 %v2351_v21, %v983_v26 }
 0xe9f   :  { %v985_v31 = vadd.f32 %v2351_v21, %v984_v29  ;;  %v1212_v29 = vld [vmem:[#allocation3 + $0x180] sm:$0xff] }
 0xea1   :  { %v989_v45 = vsel %vm988_vm5, %v2351_v21, %v985_v31  ;;  %v1214_v21 = vld [vmem:[#allocation3 + $0x190] sm:$0xff]  ;;  %v1213_v31 = vld [vmem:[#allocation3 + $0x188] sm:$0xff]  ;;  %vm1755_vm5 = vcmask 785408  }
 0xea2   :  { %v994_v43 = vsel %vm991_vm6, %v993_v46, %v989_v45  ;;  %v1211_v45 = vld [vmem:[#allocation3 + $0x178] sm:$0xff]  ;;  %vm1793_vm6 = vcmask 392192  }
 0xee9   :  { %v1014_v47 = vpop.permute.xlu2 %1013 }
 0xeea   :  { %v1016_v48 = vmul.f32 %v1014_v47, %v994_v43  ;;  %v1208_v47 = vld [vmem:[#allocation3 + $0x160] sm:$0xff] }
 0xeec   :  { %1017 = vst.msk [vmem:[#allocation2 + $0x8] sm:$0xc0] %vm570_vm15, %v1016_v48 }
 0xeed   :  { %1018 = vst.msk [vmem:[#allocation2 - $0x6] sm:$0xc0] %vm572_vm3, %v1016_v48  ;;  %v1209_v48 = vld [vmem:[#allocation3 + $0x168] sm:$0xff] }
 0xef3   :  { %v1020_v49 = vld [vmem:[#allocation2 + $0x8] sm:$0xff] }
 0xef4   :  { %2199 = vmatpush.xpose.msk.msra.mxu2 %vm56_vm0, %v1020_v49  ;;  %1129 = vmatpush.msra.mxu3 %v1020_v49  ;;  %v1019_v50 = vld [vmem:[#allocation2] sm:$0xff]  ;;  %v1022_v52 = vmul.f32 0.125, %v1020_v49 }
 0xef5   :  { %v1021_v51 = vmul.f32 0.125, %v1019_v50 }
 0xef6   :  { %1130 = vmatpush.msra.mxu3 %v1019_v50 }
 0xef8   :  { %2200 = vmatpush.xpose.msk.msra.mxu2 %vm56_vm0, %v1019_v50  ;;  %1259 = vmatpush.msrb.mxu3 %v1221_v11  ;;  %v1361_v11 = vld [vmem:[#allocation3 + $0x278] sm:$0xff] }
 0xefa   :  { %1260 = vmatpush.msrb.mxu3 %v1219_v15  ;;  %v1358_v15 = vld [vmem:[#allocation3 + $0x260] sm:$0xff] }
 0xefb   :  { %2201 = vmatmul.msk.f32.vlgmr.msra.gmra.mxu2 %vm56_vm0, %v1021_v51 }
 0xefc   :  { %1236 = vmatpush.msrb.mxu2 %v1220_v9  ;;  %1261 = vmatpush.msrb.mxu3 %v1217_v19  ;;  %v1392_v9 = vld [vmem:[#allocation3 + $0x370] sm:$0xff]  ;;  %v1359_v19 = vld [vmem:[#allocation3 + $0x268] sm:$0xff] }
 0xefe   :  { %1237 = vmatpush.msrb.mxu2 %v1218_v13  ;;  %1262 = vmatpush.msrb.mxu3 %v1215_v23  ;;  %v1393_v13 = vld [vmem:[#allocation3 + $0x378] sm:$0xff]  ;;  %v1356_v23 = vld [vmem:[#allocation3 + $0x250] sm:$0xff] }
 0xf00   :  { %1238 = vmatpush.msrb.mxu2 %v1216_v17  ;;  %1263 = vmatpush.msrb.mxu3 %v1213_v31  ;;  %v1390_v17 = vld [vmem:[#allocation3 + $0x360] sm:$0xff]  ;;  %v1389_v31 = vld [vmem:[#allocation3 + $0x358] sm:$0xff] }
 0xf02   :  { %1239 = vmatpush.msrb.mxu2 %v1214_v21  ;;  %1264 = vmatpush.msrb.mxu3 %v1211_v45  ;;  %v1391_v21 = vld [vmem:[#allocation3 + $0x368] sm:$0xff] }
 0xf03   :  { %2202 = vmatmul.msk.f32.gmra.mxu2 %vm56_vm0, %v1022_v52  ;;  %v1355_v45 = vld [vmem:[#allocation3 + $0x248] sm:$0xff] }
 0xf04   :  { %1240 = vmatpush.msrb.mxu2 %v1212_v29  ;;  %1265 = vmatpush.msrb.mxu3 %v1209_v48  ;;  %v1357_v29 = vld [vmem:[#allocation3 + $0x258] sm:$0xff]  ;;  %v1352_v48 = vld [vmem:[#allocation3 + $0x230] sm:$0xff] }
 0xf06   :  { %1241 = vmatpush.msrb.mxu2 %v1210_v44  ;;  %v1386_v44 = vld [vmem:[#allocation3 + $0x340] sm:$0xff] }
 0xf08   :  { %1242 = vmatpush.msrb.mxu2 %v1208_v47 }
 0xf7e   :  { %v1054_v54 = vpop.f32.mrf.mxu2 }
 0xf7f   :  { %v1055_v55 = vadd.f32 %v1054_v54, %v1023_v53 }
 0xf81   :  { %v1061_v56 = vsel %vm1060_vm9, %v1055_v55, -inf }
 0xf82   :  { %1062 = vmax.xlane.f32.xlu0 %v1061_v56 }
 0xf86   :  { %v1057_v58 = vpop.f32.mrf.mxu2 }
 0xf87   :  { %v1058_v59 = vadd.f32 %v1057_v58, %v1024_v57 }
 0xf89   :  { %v1064_v60 = vsel %vm1060_vm9, %v1058_v59, -inf }
 0xf8a   :  { %1065 = vmax.xlane.f32.xlu1 %v1064_v60  ;;  %v2796_v60 = vld [vmem:[#allocation3 + $0x8c0] sm:$0xff] }
 0xff5   :  { %v1063_v61 = vpop.xlane.xlu0 %1062 }
 0xff6   :  { %v1067_v62 = vsub.f32 %v1055_v55, %v1063_v61  ;;  %v2802_v61 = vld [vmem:[#allocation3 + $0x8d0] sm:$0xf] }
 0xff8   :  { %v1069_v63 = vmul.f32 1.442695, %v1067_v62  ;;  %v1206_v62 = vld [vmem:[#allocation3 + $0x150] sm:$0xff] }
 0xff9   :  { %1243 = vmatpush.msrb.mxu2 %v1206_v62  ;;  %v1381_v62 = vld [vmem:[#allocation3 + $0x318] sm:$0xff] }
 0xffa   :  { %2352 = vpow2.f32 %v1069_v63  ;;  %v1207_v63 = vld [vmem:[#allocation3 + $0x158] sm:$0xff] }
 0xffb   :  { %1266 = vmatpush.msrb.mxu3 %v1207_v63  ;;  %v1346_v63 = vld [vmem:[#allocation3 + $0x200] sm:$0xff] }
 0xffd   :  { %v1066_v3 = vpop.xlane.xlu1 %1065 }
 0xffe   :  { %v1068_v7 = vsub.f32 %v1058_v59, %v1066_v3  ;;  %v1204_v3 = vld [vmem:[#allocation3 + $0x140] sm:$0xff] }
 0xfff   :  { %1293 = vmatpush.msrb.mxu1 %v1204_v3  ;;  %v1378_v3 = vld [vmem:[#allocation3 + $0x300] sm:$0xff] }
0x1000   :  { %v2353_v10 = vpop.eup %2352  ;;  %v1071_v12 = vmul.f32 1.442695, %v1068_v7  ;;  %v1205_v7 = vld [vmem:[#allocation3 + $0x148] sm:$0xff] }
0x1001   :  { %v1073_v14 = vsel %vm1060_vm9, %v2353_v10, 0.0 }
0x1002   :  { %2354 = vpow2.f32 %v1071_v12  ;;  %1074 = vadd.xlane.f32.xlu2 %v1073_v14  ;;  %v1203_v12 = vld [vmem:[#allocation3 + $0x138] sm:$0xff]  ;;  %v1200_v14 = vld [vmem:[#allocation3 + $0x120] sm:$0xff] }
0x1008   :  { %v2355_v18 = vpop.eup %2354 }
0x1009   :  { %v1076_v20 = vsel %vm1060_vm9, %v2355_v18, 0.0 }
0x100a   :  { %1077 = vadd.xlane.f32.xlu2 %v1076_v20  ;;  %v1198_v20 = vld [vmem:[#allocation3 + $0x110] sm:$0xff] }
0x1075   :  { %v1075_v22 = vpop.xlane.xlu2 %1074 }
0x1076   :  { %2356 = vrcp.f32 %v1075_v22  ;;  %v1090_v35 = vand.u32 2147483648, %v1075_v22  ;;  %v1088_v28 = vand.u32 2147483647, %v1075_v22  ;;  %vm1084_vm3 = vweird.f32 %v1075_v22 }
0x1078   :  { %v1091_v36 = vor.u32 1.1754944e-38, %v1090_v35  ;;  %vm1089_vm7 = vcmp.eq.f32.partialorder %v1088_v28, 8.507059e+37  ;;  %v1371_v35 = vld [vmem:[#allocation3 + $0x2c8] sm:$0xff]  ;;  %v1400_v28 = vld [vmem:[#allocation3 + $0x3b0] sm:$0xff] }
0x1079   :  { %1441 = vmatpush.msra.mxu2 %v1400_v28  ;;  %v1541_v28 = vld [vmem:[#allocation3 + $0x4b8] sm:$0xff] }
0x107c   :  { %v2357_v24 = vpop.eup %2356 }
0x107d   :  { %v1080_v25 = vmul.f32 %v2357_v24, %v1075_v22  ;;  %v1078_v27 = vpop.xlane.xlu2 %1077  ;;  %vm1085_vm15 = vweird.f32 %v2357_v24  ;;  %v1199_v22 = vld [vmem:[#allocation3 + $0x118] sm:$0xff] }
0x107e   :  { %2358 = vrcp.f32 %v1078_v27  ;;  %vm1086_vm10 = vmor %vm1084_vm3, %vm1085_vm15  ;;  %v1105_v42 = vand.u32 2147483648, %v1078_v27  ;;  %v1103_v0 = vand.u32 2147483647, %v1078_v27  ;;  %vm1099_vm11 = vweird.f32 %v1078_v27 }
0x107f   :  { %v1081_v5 = vsub.f32 1.0, %v1080_v25  ;;  %v1372_v25 = vld [vmem:[#allocation3 + $0x2d0] sm:$0xff]  ;;  %vm1843_vm15 = vcmask 1043456   ;;  %vm1839_vm3 = vcmask 97280  }
0x1080   :  { %v1106_v2 = vor.u32 1.1754944e-38, %v1105_v42  ;;  %vm1104_vm2 = vcmp.eq.f32.partialorder %v1103_v0, 8.507059e+37  ;;  %v1396_v42 = vld [vmem:[#allocation3 + $0x390] sm:$0xff]  ;;  %v1397_v0 = vld [vmem:[#allocation3 + $0x398] sm:$0xff] }
0x1081   :  { %v1082_v33 = vmul.f32 %v2357_v24, %v1081_v5  ;;  %v1370_v5 = vld [vmem:[#allocation3 + $0x2c0] sm:$0xff] }
0x1083   :  { %v1083_v30 = vadd.f32 %v2357_v24, %v1082_v33  ;;  %v1368_v33 = vld [vmem:[#allocation3 + $0x2b0] sm:$0xff] }
0x1084   :  { %v2359_v32 = vpop.eup %2358 }
0x1085   :  { %v1087_v38 = vsel %vm1086_vm10, %v2357_v24, %v1083_v30  ;;  %v1095_v39 = vmul.f32 %v2359_v32, %v1078_v27  ;;  %vm1100_vm8 = vweird.f32 %v2359_v32  ;;  %v1159_v24 = vld [vmem:[%s2870_s1] sm:$0xff]  ;;  %v1373_v27 = vld [vmem:[#allocation3 + $0x2d8] sm:$0xff] }
0x1086   :  { %v1092_v34 = vsel %vm1089_vm7, %v1091_v36, %v1087_v38  ;;  %vm1101_vm1 = vmor %vm1099_vm11, %vm1100_vm8  ;;  %v1369_v30 = vld [vmem:[#allocation3 + $0x2b8] sm:$0xff]  ;;  %v1398_v36 = vld [vmem:[#allocation3 + $0x3a0] sm:$0xff] }
0x1087   :  { %v1096_v41 = vsub.f32 1.0, %v1095_v39  ;;  %v1093_v16 = vmul.f32 %v2353_v10, %v1092_v34  ;;  %v1202_v10 = vld [vmem:[#allocation3 + $0x130] sm:$0xff]  ;;  %v1366_v38 = vld [vmem:[#allocation3 + $0x2a0] sm:$0xff]  ;;  %v1367_v39 = vld [vmem:[#allocation3 + $0x2a8] sm:$0xff]  ;;  %1442 = vmatpush.msra.mxu2 %v1398_v36 }
0x1088   :  { %1294 = vmatpush.msrb.mxu1 %v1202_v10  ;;  %v1399_v34 = vld [vmem:[#allocation3 + $0x3a8] sm:$0xff]  ;;  %v1536_v36 = vld [vmem:[#allocation3 + $0x490] sm:$0xff] }
0x1089   :  { %v1097_v40 = vmul.f32 %v2359_v32, %v1096_v41  ;;  %2203 = vmatmul.msk.f32.vlgmr.msra.gmra.mxu3 %vm1060_vm9, %v1093_v16  ;;  %v1160_v41 = vld [vmem:[%s2870_s1 + $0x8] sm:$0xf]  ;;  %v1364_v16 = vld [vmem:[#allocation3 + $0x290] sm:$0xff]  ;;  %1443 = vmatpush.msra.mxu2 %v1396_v42  ;;  %v1379_v10 = vld [vmem:[#allocation3 + $0x308] sm:$0xff] }
0x108a   :  { %1295 = vmatpush.msrb.mxu1 %v1200_v14  ;;  %1462 = vmatpush.msra.mxu3 %v1373_v27  ;;  %v1376_v14 = vld [vmem:[#allocation3 + $0x2f0] sm:$0xff]  ;;  %v1375_v27 = vld [vmem:[#allocation3 + $0x2e8] sm:$0xff] }
0x108b   :  { %v1098_v1 = vadd.f32 %v2359_v32, %v1097_v40  ;;  %v1365_v40 = vld [vmem:[#allocation3 + $0x298] sm:$0xff] }
0x108c   :  { %1296 = vmatpush.msrb.mxu1 %v1198_v20  ;;  %1463 = vmatpush.msra.mxu3 %v1371_v35  ;;  %v1377_v20 = vld [vmem:[#allocation3 + $0x2f8] sm:$0xff]  ;;  %v1543_v35 = vld [vmem:[#allocation3 + $0x4c8] sm:$0xff] }
0x108d   :  { %v1102_v4 = vsel %vm1101_vm1, %v2359_v32, %v1098_v1  ;;  %2212 = vmatmul.msk.f32.vlgmr.msrb.gmra.mxu1 %vm1274_vm14, %v1159_v24  ;;  %v1401_v32 = vld [vmem:[#allocation3 + $0x3b8] sm:$0xff]  ;;  %v1362_v1 = vld [vmem:[#allocation3 + $0x280] sm:$0xff] }
0x108e   :  { %v1107_v6 = vsel %vm1104_vm2, %v1106_v2, %v1102_v4  ;;  %1416 = vmatpush.msra.mxu1 %v1372_v25  ;;  %1464 = vmatpush.msra.mxu3 %v1369_v30  ;;  %v1394_v2 = vld [vmem:[#allocation3 + $0x380] sm:$0xff]  ;;  %v1363_v4 = vld [vmem:[#allocation3 + $0x288] sm:$0xff] }
0x108f   :  { %v1108_v8 = vmul.f32 %v2355_v18, %v1107_v6  ;;  %v1201_v18 = vld [vmem:[#allocation3 + $0x128] sm:$0xff]  ;;  %1444 = vmatpush.msra.mxu2 %v1394_v2  ;;  %v1538_v30 = vld [vmem:[#allocation3 + $0x4a0] sm:$0xff] }
0x1090   :  { %1417 = vmatpush.msra.mxu1 %v1370_v5  ;;  %1465 = vmatpush.msra.mxu3 %v1367_v39  ;;  %v1395_v6 = vld [vmem:[#allocation3 + $0x388] sm:$0xff]  ;;  %v1542_v5 = vld [vmem:[#allocation3 + $0x4c0] sm:$0xff] }
0x1091   :  { %2204 = vmatmul.msk.f32.gmra.mxu3 %vm1060_vm9, %v1108_v8  ;;  %v1360_v8 = vld [vmem:[#allocation3 + $0x270] sm:$0xff]  ;;  %1445 = vmatpush.msra.mxu2 %v1392_v9  ;;  %v1343_v25 = vld [vmem:[#allocation3 + $0x1e8] sm:$0xff]  ;;  %v1534_v39 = vld [vmem:[#allocation3 + $0x480] sm:$0xff] }
0x1092   :  { %1418 = vmatpush.msra.mxu1 %v1368_v33  ;;  %1466 = vmatpush.msra.mxu3 %v1365_v40  ;;  %v1540_v33 = vld [vmem:[#allocation3 + $0x4b0] sm:$0xff] }
0x1093   :  { %1446 = vmatpush.msra.mxu2 %v1390_v17  ;;  %v1532_v40 = vld [vmem:[#allocation3 + $0x470] sm:$0xff]  ;;  %v1529_v17 = vld [vmem:[#allocation3 + $0x458] sm:$0xff] }
0x1094   :  { %1419 = vmatpush.msra.mxu1 %v1366_v38  ;;  %1467 = vmatpush.msra.mxu3 %v1363_v4  ;;  %v1537_v38 = vld [vmem:[#allocation3 + $0x498] sm:$0xff]  ;;  %v1530_v4 = vld [vmem:[#allocation3 + $0x460] sm:$0xff] }
0x1095   :  { %2213 = vmatmul.msk.f32.gmra.mxu1 %vm1274_vm14, %v1160_v41 }
0x1096   :  { %1420 = vmatpush.msra.mxu1 %v1364_v16  ;;  %1468 = vmatpush.msra.mxu3 %v1361_v11  ;;  %v1328_v16 = vld [vmem:[#allocation3 + $0x1d0] ss:$8 sm:$0x3] }
0x1097   :  { %v1331_v2 = vperm.slane %v1328_v16, 1 }
0x1098   :  { %1421 = vmatpush.msra.mxu1 %v1362_v1  ;;  %1469 = vmatpush.msra.mxu3 %v1359_v19  ;;  %v1330_v1 = vperm.slane %v1328_v16, 0  ;;  %v1683_v16 = vld [vmem:[#allocation3 + $0x640] sm:$0xff] }
0x109a   :  { %1422 = vmatpush.msra.mxu1 %v1360_v8  ;;  %1470 = vmatpush.msra.mxu3 %v1357_v29 }
0x109c   :  { %1423 = vmatpush.msra.mxu1 %v1358_v15  ;;  %1471 = vmatpush.msra.mxu3 %v1355_v45  ;;  %v1528_v15 = vld [vmem:[#allocation3 + $0x450] sm:$0xff] }
0x109e   :  { %1424 = vmatpush.msra.mxu1 %v1356_v23 }
0x110c   :  { %v1132_v26 = vpop.f32.mrf.mxu3 }
0x110d   :  { %v1139_v37 = vrot.slane %v1132_v26, 2  ;;  %v1142_v43 = vrot.slane %v1132_v26, 4  ;;  %v1145_v50 = vrot.slane %v1132_v26, 6 }
0x110f   :  { %v1141_v46 = vmax.f32 %v1132_v26, %v1139_v37  ;;  %v1388_v26 = vld [vmem:[#allocation3 + $0x350] sm:$0xff]  ;;  %v1354_v37 = vld [vmem:[#allocation3 + $0x240] sm:$0xff] }
0x1110   :  { %1447 = vmatpush.msra.mxu2 %v1388_v26  ;;  %1425 = vmatpush.msra.mxu1 %v1354_v37 }
0x1111   :  { %v1144_v49 = vmax.f32 %v1141_v46, %v1142_v43  ;;  %v1387_v46 = vld [vmem:[#allocation3 + $0x348] sm:$0xff] }
0x1112   :  { %1448 = vmatpush.msra.mxu2 %v1386_v44  ;;  %1426 = vmatpush.msra.mxu1 %v1352_v48 }
0x1113   :  { %v1147_v51 = vmax.f32 %v1144_v49, %v1145_v50  ;;  %v1384_v49 = vld [vmem:[#allocation3 + $0x330] sm:$0xff]  ;;  %v1353_v50 = vld [vmem:[#allocation3 + $0x238] sm:$0xff] }
0x1114   :  { %v1135_v52 = vpop.f32.mrf.mxu3  ;;  %1449 = vmatpush.msra.mxu2 %v1384_v49  ;;  %1472 = vmatpush.msra.mxu3 %v1353_v50  ;;  %v1526_v50 = vld [vmem:[#allocation3 + $0x440] sm:$0xff] }
0x1115   :  { %v1148_v53 = vmax.f32 %v1147_v51, %v1135_v52  ;;  %v1150_v54 = vrot.slane %v1135_v52, 2  ;;  %v1153_v56 = vrot.slane %v1135_v52, 4  ;;  %v1156_v58 = vrot.slane %v1135_v52, 6  ;;  %v1385_v51 = vld [vmem:[#allocation3 + $0x338] sm:$0xff]  ;;  %v1350_v52 = vld [vmem:[#allocation3 + $0x220] sm:$0xff] }
0x1116   :  { %1427 = vmatpush.msra.mxu1 %v1350_v52  ;;  %v1524_v52 = vld [vmem:[#allocation3 + $0x430] sm:$0xff] }
0x1117   :  { %v1152_v55 = vmax.f32 %v1148_v53, %v1150_v54  ;;  %v1382_v53 = vld [vmem:[#allocation3 + $0x320] sm:$0xff]  ;;  %v1351_v54 = vld [vmem:[#allocation3 + $0x228] sm:$0xff] }
0x1118   :  { %1450 = vmatpush.msra.mxu2 %v1382_v53  ;;  %1473 = vmatpush.msra.mxu3 %v1351_v54  ;;  %v1558_v53 = vld [vmem:[#allocation3 + $0x540] sm:$0xff]  ;;  %v1525_v54 = vld [vmem:[#allocation3 + $0x438] sm:$0xff] }
0x1119   :  { %v1155_v57 = vmax.f32 %v1152_v55, %v1153_v56  ;;  %v1383_v55 = vld [vmem:[#allocation3 + $0x328] sm:$0xff]  ;;  %v1348_v56 = vld [vmem:[#allocation3 + $0x210] sm:$0xff] }
0x111a   :  { %1428 = vmatpush.msra.mxu1 %v1348_v56  ;;  %v1522_v56 = vld [vmem:[#allocation3 + $0x420] sm:$0xff] }
0x111b   :  { %v2794_v59 = vmax.f32 %v1155_v57, %v1156_v58  ;;  %v1380_v57 = vld [vmem:[#allocation3 + $0x310] sm:$0xff]  ;;  %v1349_v58 = vld [vmem:[#allocation3 + $0x218] sm:$0xff] }
0x111c   :  { %1451 = vmatpush.msra.mxu2 %v1380_v57  ;;  %1474 = vmatpush.msra.mxu3 %v1349_v58  ;;  %v1556_v57 = vld [vmem:[#allocation3 + $0x530] sm:$0xff]  ;;  %v1523_v58 = vld [vmem:[#allocation3 + $0x428] sm:$0xff] }
0x111d   :  { %2205 = vmatpush.msk.msrb.mxu0 %vm1171_vm12, %v2794_v59  ;;  %1429 = vmatpush.msra.mxu1 %v1346_v63  ;;  %v1520_v63 = vld [vmem:[#allocation3 + $0x410] sm:$0xff] }
0x111e   :  { %2206 = vmatmul.msk.f32.vlgmr.msrb.gmra.mxu0 %vm1164_vm13, %v2796_v60  ;;  %1452 = vmatpush.msra.mxu2 %v1378_v3  ;;  %v1554_v3 = vld [vmem:[#allocation3 + $0x520] sm:$0xff] }
0x111f   :  { %1316 = vmatpush.msra.mxu0 %v1205_v7  ;;  %v1347_v7 = vld [vmem:[#allocation3 + $0x208] sm:$0xff] }
0x1120   :  { %1475 = vmatpush.msra.mxu3 %v1347_v7  ;;  %1453 = vmatpush.msra.mxu2 %v1376_v14  ;;  %v1521_v7 = vld [vmem:[#allocation3 + $0x418] sm:$0xff]  ;;  %v1552_v14 = vld [vmem:[#allocation3 + $0x510] sm:$0xff] }
0x1121   :  { %1317 = vmatpush.msra.mxu0 %v1203_v12  ;;  %v1344_v12 = vld [vmem:[#allocation3 + $0x1f0] sm:$0xff] }
0x1122   :  { %1430 = vmatpush.msra.mxu1 %v1344_v12  ;;  %v1518_v12 = vld [vmem:[#allocation3 + $0x400] sm:$0xff] }
0x1123   :  { %1318 = vmatpush.msra.mxu0 %v1201_v18  ;;  %v1345_v18 = vld [vmem:[#allocation3 + $0x1f8] sm:$0xff] }
0x1124   :  { %1476 = vmatpush.msra.mxu3 %v1345_v18  ;;  %v1519_v18 = vld [vmem:[#allocation3 + $0x408] sm:$0xff] }
0x1125   :  { %1319 = vmatpush.msra.mxu0 %v1199_v22  ;;  %v1342_v22 = vld [vmem:[#allocation3 + $0x1e0] sm:$0xff] }
0x1126   :  { %2207 = vmatmul.msk.f32.gmra.mxu0 %vm1164_vm13, %v2802_v61  ;;  %1431 = vmatpush.msra.mxu1 %v1342_v22  ;;  %v1516_v22 = vld [vmem:[#allocation3 + $0x3f0] sm:$0xff] }
0x1127   :  { %1487 = vmatpush.msrb.mxu0 %v1401_v32  ;;  %1477 = vmatpush.msra.mxu3 %v1343_v25  ;;  %v1539_v32 = vld [vmem:[#allocation3 + $0x4a8] sm:$0xff]  ;;  %v1517_v25 = vld [vmem:[#allocation3 + $0x3f8] sm:$0xff] }
0x1128   :  { %1604 = vmatpush.msrb.mxu1 %v1558_v53  ;;  %v1675_v53 = vld [vmem:[#allocation3 + $0x5c0] sm:$0xff] }
0x1129   :  { %1488 = vmatpush.msrb.mxu0 %v1399_v34  ;;  %v1535_v34 = vld [vmem:[#allocation3 + $0x488] sm:$0xff] }
0x112a   :  { %1605 = vmatpush.msrb.mxu1 %v1556_v57  ;;  %v1671_v57 = vld [vmem:[#allocation3 + $0x580] sm:$0xff] }
0x112b   :  { %1489 = vmatpush.msrb.mxu0 %v1397_v0  ;;  %v1533_v0 = vld [vmem:[#allocation3 + $0x478] sm:$0xff] }
0x112c   :  { %1606 = vmatpush.msrb.mxu1 %v1554_v3  ;;  %v1685_v3 = vld [vmem:[#allocation3 + $0x660] sm:$0xff] }
0x112d   :  { %1490 = vmatpush.msrb.mxu0 %v1395_v6  ;;  %v1531_v6 = vld [vmem:[#allocation3 + $0x468] sm:$0xff] }
0x112e   :  { %2214 = vmatmul.msk.f32.vlgmr.msra.gmra.mxu0 %vm1274_vm14, %v1159_v24  ;;  %v1374_v24 = vld [vmem:[#allocation3 + $0x2e0] sm:$0xff]  ;;  %1607 = vmatpush.msrb.mxu1 %v1552_v14  ;;  %v1750_v14 = vld [vmem:[#allocation3 + $0x710] sm:$0xff] }
0x112f   :  { %1491 = vmatpush.msrb.mxu0 %v1393_v13  ;;  %1454 = vmatpush.msra.mxu2 %v1374_v24  ;;  %v1550_v24 = vld [vmem:[#allocation3 + $0x500] sm:$0xff] }
0x1130   :  { %1608 = vmatpush.msrb.mxu1 %v1550_v24 }
0x1131   :  { %1492 = vmatpush.msrb.mxu0 %v1391_v21 }
0x1133   :  { %1493 = vmatpush.msrb.mxu0 %v1389_v31 }
0x1135   :  { %1494 = vmatpush.msrb.mxu0 %v1387_v46 }
0x1136   :  { %2215 = vmatmul.msk.f32.gmra.mxu0 %vm1274_vm14, %v1160_v41  ;;  %v1298_v41 = vpop.f32.mrf.mxu1 }
0x1137   :  { %1495 = vmatpush.msrb.mxu0 %v1385_v51  ;;  %v1527_v51 = vld [vmem:[#allocation3 + $0x448] sm:$0xff] }
0x1139   :  { %1496 = vmatpush.msrb.mxu0 %v1383_v55  ;;  %v1559_v55 = vld [vmem:[#allocation3 + $0x548] sm:$0xff] }
0x113b   :  { %1497 = vmatpush.msrb.mxu0 %v1381_v62  ;;  %v1557_v62 = vld [vmem:[#allocation3 + $0x538] sm:$0xff] }
0x113d   :  { %1498 = vmatpush.msrb.mxu0 %v1379_v10  ;;  %v1555_v10 = vld [vmem:[#allocation3 + $0x528] sm:$0xff] }
0x113e   :  { %v1301_v23 = vpop.f32.mrf.mxu1 }
0x113f   :  { %1499 = vmatpush.msrb.mxu0 %v1377_v20  ;;  %v1553_v20 = vld [vmem:[#allocation3 + $0x518] sm:$0xff] }
0x1141   :  { %1500 = vmatpush.msrb.mxu0 %v1375_v27  ;;  %v1551_v27 = vld [vmem:[#allocation3 + $0x508] sm:$0xff] }
0x1143   :  { %1650 = vmatpush.msra.mxu0 %v1559_v55  ;;  %v1673_v55 = vld [vmem:[#allocation3 + $0x5a0] sm:$0xff] }
0x1145   :  { %1651 = vmatpush.msra.mxu0 %v1557_v62  ;;  %v1686_v62 = vld [vmem:[#allocation3 + $0x670] sm:$0xff] }
0x1147   :  { %1652 = vmatpush.msra.mxu0 %v1555_v10  ;;  %v1752_v10 = vld [vmem:[#allocation3 + $0x730] sm:$0xff] }
0x1149   :  { %1653 = vmatpush.msra.mxu0 %v1553_v20  ;;  %v1749_v20 = vld [vmem:[#allocation3 + $0x700] sm:$0xff] }
0x114b   :  { %1654 = vmatpush.msra.mxu0 %v1551_v27 }
0x119b   :  { %v1192_v43 = vpop.f32.mrf.mxu0 }
0x119c   :  { %2208 = vmatmul.msk.f32.vlgmr.msrb.gmra.mxu2 %vm56_vm0, %v1192_v43  ;;  %2210 = vmatmul.msk.f32.vlgmr.msrb.gmra.mxu3 %vm56_vm0, %v1192_v43 }
0x119d   :  { %1573 = vmatpush.msrb.mxu2 %v1542_v5  ;;  %1619 = vmatpush.msrb.mxu3 %v1543_v35  ;;  %v1514_v5 = vld [vmem:[#allocation3 + $0x3e0] sm:$0xff]  ;;  %v1548_v35 = vld [vmem:[#allocation3 + $0x4f0] sm:$0xff] }
0x119e   :  { %1609 = vmatpush.msrb.mxu1 %v1548_v35 }
0x119f   :  { %1574 = vmatpush.msrb.mxu2 %v1540_v33  ;;  %1620 = vmatpush.msrb.mxu3 %v1541_v28  ;;  %v1515_v33 = vld [vmem:[#allocation3 + $0x3e8] sm:$0xff]  ;;  %v1549_v28 = vld [vmem:[#allocation3 + $0x4f8] sm:$0xff] }
0x11a0   :  { %1655 = vmatpush.msra.mxu0 %v1549_v28 }
0x11a1   :  { %1575 = vmatpush.msrb.mxu2 %v1538_v30  ;;  %1621 = vmatpush.msrb.mxu3 %v1539_v32  ;;  %v1512_v30 = vld [vmem:[#allocation3 + $0x3d0] sm:$0xff]  ;;  %v1546_v32 = vld [vmem:[#allocation3 + $0x4e0] sm:$0xff] }
0x11a2   :  { %1610 = vmatpush.msrb.mxu1 %v1546_v32 }
0x11a3   :  { %v1195_v47 = vpop.f32.mrf.mxu0  ;;  %1576 = vmatpush.msrb.mxu2 %v1536_v36  ;;  %1622 = vmatpush.msrb.mxu3 %v1537_v38  ;;  %v1513_v36 = vld [vmem:[#allocation3 + $0x3d8] sm:$0xff]  ;;  %v1547_v38 = vld [vmem:[#allocation3 + $0x4e8] sm:$0xff] }
0x11a4   :  { %2209 = vmatmul.msk.f32.gmra.mxu2 %vm56_vm0, %v1195_v47  ;;  %2211 = vmatmul.msk.f32.gmra.mxu3 %vm56_vm0, %v1195_v47 }
0x11a5   :  { %1577 = vmatpush.msrb.mxu2 %v1534_v39  ;;  %1623 = vmatpush.msrb.mxu3 %v1535_v34  ;;  %v1544_v39 = vld [vmem:[#allocation3 + $0x4d0] sm:$0xff]  ;;  %v1545_v34 = vld [vmem:[#allocation3 + $0x4d8] sm:$0xff] }
0x11a6   :  { %1656 = vmatpush.msra.mxu0 %v1547_v38  ;;  %1611 = vmatpush.msrb.mxu1 %v1544_v39 }
0x11a7   :  { %1578 = vmatpush.msrb.mxu2 %v1532_v40  ;;  %1624 = vmatpush.msrb.mxu3 %v1533_v0  ;;  %v1681_v40 = vld [vmem:[#allocation3 + $0x620] sm:$0xff] }
0x11a8   :  { %1657 = vmatpush.msra.mxu0 %v1545_v34  ;;  %v1403_v0 = vld [vmem:[#allocation3 + $0x3c0] ss:$8 sm:$0x3] }
0x11a9   :  { %1579 = vmatpush.msrb.mxu2 %v1530_v4  ;;  %1625 = vmatpush.msrb.mxu3 %v1531_v6  ;;  %v1405_v4 = vperm.slane %v1403_v0, 0  ;;  %v1679_v6 = vld [vmem:[#allocation3 + $0x600] sm:$0xff] }
0x11ab   :  { %v1321_v42 = vpop.f32.mrf.mxu0  ;;  %1580 = vmatpush.msrb.mxu2 %v1528_v15  ;;  %1626 = vmatpush.msrb.mxu3 %v1529_v17  ;;  %v1677_v17 = vld [vmem:[#allocation3 + $0x5e0] sm:$0xff] }
0x11ad   :  { %1581 = vmatpush.msrb.mxu2 %v1526_v50  ;;  %1627 = vmatpush.msrb.mxu3 %v1527_v51 }
0x11af   :  { %1582 = vmatpush.msrb.mxu2 %v1524_v52  ;;  %1628 = vmatpush.msrb.mxu3 %v1525_v54  ;;  %v1676_v52 = vld [vmem:[#allocation3 + $0x5d0] sm:$0xff] }
0x11b0   :  { %v1674_v54 = vld [vmem:[#allocation3 + $0x5b0] sm:$0xff] }
0x11b1   :  { %1583 = vmatpush.msrb.mxu2 %v1522_v56  ;;  %1629 = vmatpush.msrb.mxu3 %v1523_v58  ;;  %v1672_v56 = vld [vmem:[#allocation3 + $0x590] sm:$0xff] }
0x11b2   :  { %v1670_v58 = vld [vmem:[#allocation3 + $0x570] sm:$0xff] }
0x11b3   :  { %v1324_v26 = vpop.f32.mrf.mxu0  ;;  %1584 = vmatpush.msrb.mxu2 %v1520_v63  ;;  %1630 = vmatpush.msrb.mxu3 %v1521_v7  ;;  %v1669_v63 = vld [vmem:[#allocation3 + $0x560] sm:$0xff] }
0x11b4   :  { %v1753_v7 = vld [vmem:[#allocation3 + $0x740] sm:$0xff] }
0x11b5   :  { %1585 = vmatpush.msrb.mxu2 %v1518_v12  ;;  %1631 = vmatpush.msrb.mxu3 %v1519_v18  ;;  %v1751_v12 = vld [vmem:[#allocation3 + $0x720] sm:$0xff]  ;;  %v1561_v18 = vld [vmem:[#allocation3 + $0x550] ss:$8 sm:$0x3] }
0x11b6   :  { %v1564_v24 = vperm.slane %v1561_v18, 1 }
0x11b7   :  { %1586 = vmatpush.msrb.mxu2 %v1516_v22  ;;  %1632 = vmatpush.msrb.mxu3 %v1517_v25  ;;  %v1563_v22 = vperm.slane %v1561_v18, 0  ;;  %v1748_v25 = vld [vmem:[#allocation3 + $0x6f0] sm:$0xff] }
0x11b9   :  { %1587 = vmatpush.msrb.mxu2 %v1514_v5  ;;  %1633 = vmatpush.msrb.mxu3 %v1515_v33 }
0x11bb   :  { %1588 = vmatpush.msrb.mxu2 %v1512_v30  ;;  %1634 = vmatpush.msrb.mxu3 %v1513_v36 }
0x121f   :  { %v1245_v8 = vpop.f32.mrf.mxu2  ;;  %v1268_v9 = vpop.f32.mrf.mxu3 }
0x1220   :  { %v1299_v11 = vadd.f32 %v1298_v41, %v1245_v8  ;;  %v1322_v13 = vadd.f32 %v1321_v42, %v1268_v9  ;;  %v1684_v41 = vld [vmem:[#allocation3 + $0x650] sm:$0xff]  ;;  %v1406_v8 = vperm.slane %v1403_v0, 1 }
0x1221   :  { %v1682_v42 = vld [vmem:[#allocation3 + $0x630] sm:$0xff] }
0x1222   :  { %v1334_v19 = vadd.f32 %v1330_v1, %v1299_v11  ;;  %v1335_v21 = vadd.f32 %v1331_v2, %v1322_v13  ;;  %v1678_v9 = vld [vmem:[#allocation3 + $0x5f0] sm:$0xff] }
0x1224   :  { %2360 = vtanh.f32 %v1334_v19 }
0x1225   :  { %2362 = vtanh.f32 %v1335_v21 }
0x1227   :  { %v1248_v29 = vpop.f32.mrf.mxu2  ;;  %v1271_v31 = vpop.f32.mrf.mxu3 }
0x1228   :  { %v1302_v37 = vadd.f32 %v1301_v23, %v1248_v29  ;;  %v1325_v44 = vadd.f32 %v1324_v26, %v1271_v31 }
0x122a   :  { %v2361_v45 = vpop.eup %2360  ;;  %v1336_v46 = vadd.f32 %v1330_v1, %v1302_v37  ;;  %v1337_v43 = vadd.f32 %v1331_v2, %v1325_v44  ;;  %v1680_v1 = vld [vmem:[#allocation3 + $0x610] sm:$0xff] }
0x122b   :  { %v2363_v47 = vpop.eup %2362  ;;  %1432 = vmatmul.f32.vlgmr.msra.gmra.mxu1 %v2361_v45  ;;  %1478 = vmatmul.f32.vlgmr.msra.gmra.mxu3 %v2361_v45 }
0x122c   :  { %2364 = vtanh.f32 %v1336_v46  ;;  %2216 = vmatmul.msk.f32.vlgmr.msra.gmra.mxu2 %vm1409_vm4, %v2363_v47  ;;  %2218 = vmatmul.msk.f32.vlgmr.msrb.gmra.mxu0 %vm1409_vm4, %v2363_v47 }
0x122d   :  { %2366 = vtanh.f32 %v1337_v43  ;;  %1694 = vmatpush.msra.mxu1 %v1684_v41  ;;  %1731 = vmatpush.msrb.mxu0 %v1686_v62 }
0x122e   :  { %1766 = vmatpush.msra.mxu2 %v1753_v7 }
0x122f   :  { %1695 = vmatpush.msra.mxu1 %v1683_v16  ;;  %1732 = vmatpush.msrb.mxu0 %v1685_v3 }
0x1230   :  { %1767 = vmatpush.msra.mxu2 %v1752_v10 }
0x1231   :  { %1696 = vmatpush.msra.mxu1 %v1682_v42 }
0x1232   :  { %v2365_v48 = vpop.eup %2364  ;;  %1768 = vmatpush.msra.mxu2 %v1751_v12 }
0x1233   :  { %v2367_v49 = vpop.eup %2366  ;;  %1435 = vmatmul.f32.gmra.mxu1 %v2365_v48  ;;  %1481 = vmatmul.f32.gmra.mxu3 %v2365_v48 }
0x1234   :  { %2217 = vmatmul.msk.f32.gmra.mxu2 %vm1409_vm4, %v2367_v49  ;;  %2219 = vmatmul.msk.f32.gmra.mxu0 %vm1409_vm4, %v2367_v49 }
0x1235   :  { %1697 = vmatpush.msra.mxu1 %v1681_v40  ;;  %1769 = vmatpush.msra.mxu2 %v1750_v14 }
0x1237   :  { %1698 = vmatpush.msra.mxu1 %v1680_v1  ;;  %1770 = vmatpush.msra.mxu2 %v1749_v20 }
0x1239   :  { %1699 = vmatpush.msra.mxu1 %v1679_v6  ;;  %1771 = vmatpush.msra.mxu2 %v1748_v25 }
0x123b   :  { %1700 = vmatpush.msra.mxu1 %v1678_v9  ;;  %v1746_v9 = vld [vmem:[#allocation3 + $0x6d0] sm:$0xff] }
0x123d   :  { %1701 = vmatpush.msra.mxu1 %v1677_v17  ;;  %v1742_v17 = vld [vmem:[#allocation3 + $0x690] sm:$0xff] }
0x123f   :  { %1702 = vmatpush.msra.mxu1 %v1676_v52  ;;  %v1787_v52 = vld [vmem:[#allocation3 + $0x760] sm:$0xff] }
0x1241   :  { %1703 = vmatpush.msra.mxu1 %v1675_v53  ;;  %v1754_v53 = vld [vmem:[#allocation3 + $0x750] ss:$0 sm:$0xff] }
0x1243   :  { %1704 = vmatpush.msra.mxu1 %v1674_v54 }
0x1245   :  { %1705 = vmatpush.msra.mxu1 %v1673_v55 }
0x1247   :  { %1706 = vmatpush.msra.mxu1 %v1672_v56 }
0x1249   :  { %1707 = vmatpush.msra.mxu1 %v1671_v57 }
0x124b   :  { %1708 = vmatpush.msra.mxu1 %v1670_v58 }
0x124d   :  { %1709 = vmatpush.msra.mxu1 %v1669_v63 }
0x12a8   :  { %v1433_v2 = vpop.f32.mrf.mxu1 }
0x12a9   :  { %v1434_v11 = vadd.f32 %v1433_v2, %v1405_v4  ;;  %v1502_v13 = vpop.f32.mrf.mxu0 }
0x12ae   :  { %v1479_v15 = vpop.f32.mrf.mxu3 }
0x12af   :  { %v1456_v19 = vpop.f32.mrf.mxu2  ;;  %v1480_v21 = vadd.f32 %v1479_v15, %v1406_v8  ;;  %v1743_v15 = vld [vmem:[#allocation3 + $0x6a0] sm:$0xff] }
0x12b0   :  { %v1457_v23 = vadd.f32 %v1456_v19, %v1434_v11  ;;  %v1436_v29 = vpop.f32.mrf.mxu1  ;;  %v1745_v11 = vld [vmem:[#allocation3 + $0x6c0] sm:$0xff]  ;;  %v1792_v19 = vld [vmem:[#allocation3 + $0x7b0] sm:$0xff] }
0x12b1   :  { %v1503_v26 = vadd.f32 %v1502_v13, %v1480_v21  ;;  %v1437_v31 = vadd.f32 %v1436_v29, %v1405_v4  ;;  %v1505_v43 = vpop.f32.mrf.mxu0  ;;  %v1744_v13 = vld [vmem:[#allocation3 + $0x6b0] sm:$0xff]  ;;  %1810 = vmatpush.msra.mxu3 %v1792_v19  ;;  %v1687_v21 = vld [vmem:[#allocation3 + $0x680] ss:$0 sm:$0xff] }
0x12b2   :  { %2368 = vtanh.f32 %v1457_v23 }
0x12b3   :  { %2370 = vtanh.f32 %v1503_v26 }
0x12b6   :  { %v1482_v37 = vpop.f32.mrf.mxu3 }
0x12b7   :  { %v1459_v44 = vpop.f32.mrf.mxu2  ;;  %v1483_v45 = vadd.f32 %v1482_v37, %v1406_v8  ;;  %v1747_v8 = vld [vmem:[#allocation3 + $0x6e0] sm:$0xff] }
0x12b8   :  { %v2369_v46 = vpop.eup %2368  ;;  %v1460_v47 = vadd.f32 %v1459_v44, %v1437_v31  ;;  %1772 = vmatpush.msra.mxu2 %v1747_v8 }
0x12b9   :  { %v2371_v48 = vpop.eup %2370  ;;  %v1506_v49 = vadd.f32 %v1505_v43, %v1483_v45  ;;  %1589 = vmatmul.f32.vlgmr.msrb.gmra.mxu2 %v2369_v46  ;;  %1635 = vmatmul.f32.vlgmr.msrb.gmra.mxu3 %v2369_v46 }
0x12ba   :  { %2372 = vtanh.f32 %v1460_v47  ;;  %2220 = vmatmul.msk.f32.vlgmr.msrb.gmra.mxu1 %vm56_vm0, %v2371_v48  ;;  %2222 = vmatmul.msk.f32.vlgmr.msra.gmra.mxu0 %vm56_vm0, %v2371_v48  ;;  %v1791_v48 = vld [vmem:[#allocation3 + $0x7a0] sm:$0xff] }
0x12bb   :  { %2374 = vtanh.f32 %v1506_v49  ;;  %1773 = vmatpush.msra.mxu2 %v1746_v9  ;;  %1811 = vmatpush.msra.mxu3 %v1791_v48  ;;  %v1790_v49 = vld [vmem:[#allocation3 + $0x790] sm:$0xff] }
0x12bd   :  { %1774 = vmatpush.msra.mxu2 %v1745_v11  ;;  %1812 = vmatpush.msra.mxu3 %v1790_v49 }
0x12bf   :  { %1775 = vmatpush.msra.mxu2 %v1744_v13 }
0x12c0   :  { %v2373_v50 = vpop.eup %2372 }
0x12c1   :  { %v2375_v51 = vpop.eup %2374  ;;  %1592 = vmatmul.f32.gmra.mxu2 %v2373_v50  ;;  %1638 = vmatmul.f32.gmra.mxu3 %v2373_v50  ;;  %v1789_v50 = vld [vmem:[#allocation3 + $0x780] sm:$0xff] }
0x12c2   :  { %2221 = vmatmul.msk.f32.gmra.mxu1 %vm56_vm0, %v2375_v51  ;;  %2223 = vmatmul.msk.f32.gmra.mxu0 %vm56_vm0, %v2375_v51  ;;  %v1788_v51 = vld [vmem:[#allocation3 + $0x770] sm:$0xff] }
0x12c3   :  { %1776 = vmatpush.msra.mxu2 %v1743_v15  ;;  %1813 = vmatpush.msra.mxu3 %v1789_v50 }
0x12c5   :  { %1777 = vmatpush.msra.mxu2 %v1742_v17  ;;  %1814 = vmatpush.msra.mxu3 %v1788_v51 }
0x12c7   :  { %1815 = vmatpush.msra.mxu3 %v1787_v52 }
0x1337   :  { %v1613_v27 = vpop.f32.mrf.mxu1  ;;  %v1659_v5 = vpop.f32.mrf.mxu0 }
0x133c   :  { %v1590_v35 = vpop.f32.mrf.mxu2  ;;  %v1636_v33 = vpop.f32.mrf.mxu3 }
0x133d   :  { %v1591_v28 = vadd.f32 %v1590_v35, %v1563_v22  ;;  %v1637_v30 = vadd.f32 %v1636_v33, %v1564_v24 }
0x133f   :  { %v1614_v32 = vadd.f32 %v1613_v27, %v1591_v28  ;;  %v1660_v36 = vadd.f32 %v1659_v5, %v1637_v30  ;;  %v1616_v16 = vpop.f32.mrf.mxu1  ;;  %v1662_v42 = vpop.f32.mrf.mxu0  ;;  %v2835_v30 = vld [vmem:[#allocation3 + $0x8e0] sm:$0x3] }
0x1341   :  { %2376 = vtanh.f32 %v1614_v32 }
0x1342   :  { %2378 = vtanh.f32 %v1660_v36 }
0x1344   :  { %v1593_v38 = vpop.f32.mrf.mxu2  ;;  %v1639_v39 = vpop.f32.mrf.mxu3 }
0x1345   :  { %v1594_v34 = vadd.f32 %v1593_v38, %v1563_v22  ;;  %v1640_v41 = vadd.f32 %v1639_v39, %v1564_v24  ;;  %v1923_v38 = vld [vmem:[#allocation3 + $0x7c0] sm:$0x3] }
0x1346   :  { %2235 = vmatpush.msk.msrb.mxu3 %vm1171_vm12, %v1923_v38  ;;  %v2094_v39 = vld [vmem:[#allocation3 + $0x840] sm:$0xff] }
0x1347   :  { %v2377_v40 = vpop.eup %2376  ;;  %v1617_v0 = vadd.f32 %v1616_v16, %v1594_v34  ;;  %v1663_v1 = vadd.f32 %v1662_v42, %v1640_v41  ;;  %v2093_v34 = vld [vmem:[#allocation3 + $0x830] sm:$0xff]  ;;  %v2092_v41 = vld [vmem:[#allocation3 + $0x820] sm:$0xff] }
0x1348   :  { %v2379_v2 = vpop.eup %2378  ;;  %1710 = vmatmul.f32.vlgmr.msra.gmra.mxu1 %v2377_v40  ;;  %v2091_v16 = vld [vmem:[#allocation3 + $0x810] sm:$0xff]  ;;  %v2090_v42 = vld [vmem:[#allocation3 + $0x800] sm:$0xff] }
0x1349   :  { %2380 = vtanh.f32 %v1617_v0  ;;  %2224 = vmatmul.msk.f32.vlgmr.msrb.gmra.mxu0 %vm1060_vm9, %v2379_v2  ;;  %v2089_v40 = vld [vmem:[#allocation3 + $0x7f0] sm:$0xff]  ;;  %v2088_v0 = vld [vmem:[#allocation3 + $0x7e0] sm:$0xff] }
0x134a   :  { %2382 = vtanh.f32 %v1663_v1  ;;  %v2087_v1 = vld [vmem:[#allocation3 + $0x7d0] sm:$0xff] }
0x134f   :  { %v2381_v4 = vpop.eup %2380 }
0x1350   :  { %v2383_v6 = vpop.eup %2382  ;;  %1713 = vmatmul.f32.gmra.mxu1 %v2381_v4 }
0x1351   :  { %2225 = vmatmul.msk.f32.gmra.mxu0 %vm1060_vm9, %v2383_v6  ;;  %vm1824_vm9 = vcmask 11264  }
0x13c5   :  { %v1711_v23 = vpop.f32.mrf.mxu1 }
0x13c6   :  { %v1712_v26 = vadd.f32 %v1711_v23, %v1687_v21  ;;  %v1734_v29 = vpop.f32.mrf.mxu0 }
0x13c8   :  { %v1735_v31 = vadd.f32 %v1734_v29, %v1712_v26 }
0x13ca   :  { %2384 = vtanh.f32 %v1735_v31 }
0x13cd   :  { %v1714_v37 = vpop.f32.mrf.mxu1 }
0x13ce   :  { %v1715_v44 = vadd.f32 %v1714_v37, %v1687_v21  ;;  %v1737_v45 = vpop.f32.mrf.mxu0 }
0x13d0   :  { %v2385_v46 = vpop.eup %2384  ;;  %v1738_v43 = vadd.f32 %v1737_v45, %v1715_v44 }
0x13d1   :  { %2226 = vmatmul.msk.f32.vlgmr.msra.gmra.mxu2 %vm1755_vm5, %v2385_v46 }
0x13d2   :  { %2386 = vtanh.f32 %v1738_v43 }
0x13d8   :  { %v2387_v47 = vpop.eup %2386 }
0x13d9   :  { %2227 = vmatmul.msk.f32.gmra.mxu2 %vm1755_vm5, %v2387_v47 }
0x1454   :  { %v1779_v54 = vpop.f32.mrf.mxu2 }
0x1455   :  { %v1780_v55 = vadd.f32 %v1779_v54, %v1754_v53 }
0x1457   :  { %2388 = vtanh.f32 %v1780_v55 }
0x145c   :  { %v1782_v56 = vpop.f32.mrf.mxu2 }
0x145d   :  { %v2389_v57 = vpop.eup %2388  ;;  %v1783_v58 = vadd.f32 %v1782_v56, %v1754_v53 }
0x145e   :  { %2228 = vmatmul.msk.f32.vlgmr.msra.gmra.mxu3 %vm1793_vm6, %v2389_v57 }
0x145f   :  { %2390 = vtanh.f32 %v1783_v58  ;;  %2132 = vmatpush.msra.mxu3 %v2094_v39 }
0x1461   :  { %2133 = vmatpush.msra.mxu3 %v2093_v34 }
0x1463   :  { %2134 = vmatpush.msra.mxu3 %v2092_v41 }
0x1465   :  { %v2391_v62 = vpop.eup %2390  ;;  %2135 = vmatpush.msra.mxu3 %v2091_v16 }
0x1466   :  { %2229 = vmatmul.msk.f32.gmra.mxu3 %vm1793_vm6, %v2391_v62  ;;  %vm1956_vm6 = vcmask 7168  }
0x1467   :  { %2136 = vmatpush.msra.mxu3 %v2090_v42 }
0x1469   :  { %2137 = vmatpush.msra.mxu3 %v2089_v40 }
0x146b   :  { %2138 = vmatpush.msra.mxu3 %v2088_v0 }
0x146d   :  { %2139 = vmatpush.msra.mxu3 %v2087_v1 }
0x14e1   :  { %v1817_v63 = vpop.f32.mrf.mxu3 }
0x14e2   :  { %v1823_v7 = vsel %vm1164_vm13, %v1817_v63, -inf }
0x14e9   :  { %v1820_v3 = vpop.f32.mrf.mxu3 }
0x14ea   :  { %v1825_v10 = vsel %vm1824_vm9, %v1820_v3, -inf  ;;  %vm1958_vm9 = vcmask 3072  }
0x14eb   :  { %v1826_v12 = vmax.f32 %v1823_v7, %v1825_v10 }
0x14ed   :  { %v1827_v14 = vrot.slane %v1826_v12, 4 }
0x14ef   :  { %v1828_v18 = vmax.f32 %v1826_v12, %v1827_v14 }
0x14f1   :  { %v1829_v20 = vrot.slane %v1828_v18, 2 }
0x14f3   :  { %v1830_v22 = vmax.f32 %v1828_v18, %v1829_v20  ;;  %v2408_v18 = vld [vmem:[#allocation3 + $0x8c0] sm:$0xff]  ;;  %v2409_v20 = vld [vmem:[#allocation3 + $0x8d0] sm:$0xf] }
0x14f5   :  { %v1831_v24 = vrot.slane %v1830_v22, 1 }
0x14f7   :  { %v1832_v25 = vmax.f32 %v1830_v22, %v1831_v24  ;;  %v2469_v22 = vmov 0  }
0x14f8   :  { %2255 = vset.pattern.permute.xlu1 %v2469_v22  ;;  %2254 = vset.pattern.permute.xlu0 %v2469_v22 }
0x14f9   :  { %v1833_v27 = vsub.f32 %v1817_v63, %v1832_v25  ;;  %v1834_v5 = vsub.f32 %v1820_v3, %v1832_v25 }
0x14fb   :  { %v1837_v35 = vmul.f32 1.442695, %v1834_v5  ;;  %v1835_v33 = vmul.f32 1.442695, %v1833_v27 }
0x14fd   :  { %2392 = vpow2.f32 %v1837_v35 }
0x14fe   :  { %2394 = vpow2.f32 %v1835_v33 }
0x1503   :  { %v2831_v28 = vpop.eup %2392 }
0x1504   :  { %2230 = vmatpush.msk.msra.mxu0 %vm1843_vm15, %v2831_v28  ;;  %v2395_v32 = vpop.eup %2394 }
0x1506   :  { %1862 = vmatpush.msra.mxu0 %v2395_v32 }
0x1507   :  { %2231 = vmatmul.msk.f32.vlgmr.msra.gmra.mxu0 %vm1839_vm3, %v2835_v30 }
0x1584   :  { %v1864_v36 = vpop.f32.mrf.mxu0 }
0x1585   :  { %2232 = vmatpush.msk.msrb.mxu1 %vm1171_vm12, %v1864_v36 }
0x1586   :  { %2233 = vmatmul.msk.f32.vlgmr.msrb.gmra.mxu1 %vm1164_vm13, %v2796_v60 }
0x158e   :  { %2234 = vmatmul.msk.f32.gmra.mxu1 %vm1164_vm13, %v2802_v61 }
0x1603   :  { %v1887_v60 = vpop.f32.mrf.mxu1 }
0x1604   :  { %2396 = vrcp.f32 %v1887_v60  ;;  %v1904_v8 = vand.u32 2147483648, %v1887_v60  ;;  %v1902_v11 = vand.u32 2147483647, %v1887_v60  ;;  %vm1898_vm7 = vweird.f32 %v1887_v60 }
0x1606   :  { %v1905_v17 = vor.u32 1.1754944e-38, %v1904_v8  ;;  %vm1903_vm11 = vcmp.eq.f32.partialorder %v1902_v11, 8.507059e+37  ;;  %v2097_v11 = vld [vmem:[#allocation3 + $0x870] sm:$0xff] }
0x160a   :  { %v2397_v61 = vpop.eup %2396 }
0x160b   :  { %v1894_v2 = vmul.f32 %v2397_v61, %v1887_v60  ;;  %v1890_v4 = vpop.f32.mrf.mxu1  ;;  %vm1899_vm10 = vweird.f32 %v2397_v61 }
0x160c   :  { %2398 = vrcp.f32 %v1890_v4  ;;  %vm1900_vm8 = vmor %vm1898_vm7, %vm1899_vm10  ;;  %v1919_v31 = vand.u32 2147483648, %v1890_v4  ;;  %v1917_v44 = vand.u32 2147483647, %v1890_v4  ;;  %vm1913_vm2 = vweird.f32 %v1890_v4 }
0x160d   :  { %v1895_v6 = vsub.f32 1.0, %v1894_v2 }
0x160e   :  { %v1920_v46 = vor.u32 1.1754944e-38, %v1919_v31  ;;  %vm1918_vm5 = vcmp.eq.f32.partialorder %v1917_v44, 8.507059e+37 }
0x160f   :  { %v1896_v9 = vmul.f32 %v2397_v61, %v1895_v6 }
0x1611   :  { %v1897_v13 = vadd.f32 %v2397_v61, %v1896_v9  ;;  %v2098_v9 = vld [vmem:[#allocation3 + $0x880] sm:$0xff] }
0x1612   :  { %v2399_v15 = vpop.eup %2398  ;;  %2114 = vmatpush.msra.mxu1 %v2098_v9 }
0x1613   :  { %v1901_v19 = vsel %vm1900_vm8, %v2397_v61, %v1897_v13  ;;  %v1909_v21 = vmul.f32 %v2399_v15, %v1890_v4  ;;  %vm1914_vm1 = vweird.f32 %v2399_v15  ;;  %v2096_v13 = vld [vmem:[#allocation3 + $0x860] sm:$0xff] }
0x1614   :  { %v1906_v23 = vsel %vm1903_vm11, %v1905_v17, %v1901_v19  ;;  %vm1915_vm4 = vmor %vm1913_vm2, %vm1914_vm1  ;;  %2115 = vmatpush.msra.mxu1 %v2097_v11  ;;  %v2410_v19 = vld [vmem:[%s2870_s1 + $0x8] sm:$0xf] }
0x1615   :  { %v1910_v26 = vsub.f32 1.0, %v1909_v21  ;;  %v1907_v29 = vmul.f32 %v2395_v32, %v1906_v23  ;;  %v2411_v23 = vld [vmem:[%s2870_s1] sm:$0xff]  ;;  %s2155_s1 = sshll.u32 %s2872_s3, 4  ;;  %s2156_s1 = int_to_ptr.hbm [resolvable:$true] %s2155_s1 }
0x1616   :  { %2116 = vmatpush.msra.mxu1 %v2096_v13 }
0x1617   :  { %v1911_v37 = vmul.f32 %v2399_v15, %v1910_v26  ;;  %2236 = vmatmul.msk.f32.vlgmr.msrb.gmra.mxu3 %vm1164_vm13, %v1907_v29  ;;  %v2095_v29 = vld [vmem:[#allocation3 + $0x850] sm:$0xff] }
0x1618   :  { %2117 = vmatpush.msra.mxu1 %v2095_v29 }
0x1619   :  { %v1912_v45 = vadd.f32 %v2399_v15, %v1911_v37 }
0x161b   :  { %v1916_v43 = vsel %vm1915_vm4, %v2399_v15, %v1912_v45  ;;  %v2144_v45 = vld [vmem:[#allocation3 + $0x890] ss:$0 sm:$0xff] }
0x161c   :  { %v1921_v47 = vsel %vm1918_vm5, %v1920_v46, %v1916_v43 }
0x161d   :  { %v1922_v48 = vmul.f32 %v2831_v28, %v1921_v47 }
0x161f   :  { %2237 = vmatmul.msk.f32.gmra.mxu3 %vm1164_vm13, %v1922_v48 }
0x1627   :  { %2246 = vmatmul.msk.f32.vlgmr.msra.gmra.mxu3 %vm56_vm0, %v2794_v59 }
0x169a   :  { %v1950_v49 = vpop.f32.mrf.mxu3 }
0x169b   :  { %v1957_v51 = vsel %vm1956_vm6, %v1950_v49, -inf }
0x16a2   :  { %v1953_v50 = vpop.f32.mrf.mxu3 }
0x16a3   :  { %v1959_v52 = vsel %vm1958_vm9, %v1953_v50, -inf }
0x16a4   :  { %v1960_v53 = vmax.f32 %v1957_v51, %v1959_v52 }
0x16a6   :  { %v1961_v54 = vrot.slane %v1960_v53, 4 }
0x16a8   :  { %v1962_v55 = vmax.f32 %v1960_v53, %v1961_v54 }
0x16aa   :  { %v1963_v56 = vrot.slane %v1962_v55, 2  ;;  %v2141_v37 = vpop.f32.mrf.mxu3 }
0x16ac   :  { %v1964_v57 = vmax.f32 %v1962_v55, %v1963_v56 }
0x16ae   :  { %v1965_v58 = vrot.slane %v1964_v57, 1 }
0x16b0   :  { %v1966_v62 = vmax.f32 %v1964_v57, %v1965_v58 }
0x16b2   :  { %v1967_v63 = vsub.f32 %v1950_v49, %v1966_v62  ;;  %v1968_v3 = vsub.f32 %v1953_v50, %v1966_v62 }
0x16b4   :  { %v1971_v7 = vmul.f32 1.442695, %v1968_v3  ;;  %v1969_v10 = vmul.f32 1.442695, %v1967_v63 }
0x16b6   :  { %2400 = vpow2.f32 %v1971_v7 }
0x16b7   :  { %2402 = vpow2.f32 %v1969_v10 }
0x16bc   :  { %v2401_v59 = vpop.eup %2400 }
0x16bd   :  { %2238 = vmatpush.msk.msrb.mxu0 %vm1843_vm15, %v2401_v59  ;;  %v2403_v12 = vpop.eup %2402 }
0x16bf   :  { %1991 = vmatpush.msrb.mxu0 %v2403_v12 }
0x16c0   :  { %2239 = vmatmul.msk.f32.vlgmr.msrb.gmra.mxu0 %vm1839_vm3, %v2835_v30 }
0x173d   :  { %v1993_v14 = vpop.f32.mrf.mxu0 }
0x173e   :  { %2240 = vmatpush.msk.msrb.mxu2 %vm1171_vm12, %v1993_v14 }
0x173f   :  { %2241 = vmatmul.msk.f32.vlgmr.msrb.gmra.mxu2 %vm1164_vm13, %v2408_v18 }
0x1747   :  { %2242 = vmatmul.msk.f32.gmra.mxu2 %vm1164_vm13, %v2409_v20 }
0x17c2   :  { %v2016_v24 = vpop.f32.mrf.mxu2 }
0x17c3   :  { %2404 = vrcp.f32 %v2016_v24  ;;  %v2033_v33 = vand.u32 2147483648, %v2016_v24  ;;  %v2031_v32 = vand.u32 2147483647, %v2016_v24  ;;  %vm2027_vm12 = vweird.f32 %v2016_v24 }
0x17c5   :  { %v2034_v39 = vor.u32 1.1754944e-38, %v2033_v33  ;;  %vm2032_vm13 = vcmp.eq.f32.partialorder %v2031_v32, 8.507059e+37 }
0x17c9   :  { %v2405_v25 = vpop.eup %2404 }
0x17ca   :  { %v2023_v27 = vmul.f32 %v2405_v25, %v2016_v24  ;;  %v2019_v5 = vpop.f32.mrf.mxu2  ;;  %vm2028_vm0 = vweird.f32 %v2405_v25 }
0x17cb   :  { %2406 = vrcp.f32 %v2019_v5  ;;  %vm2029_vm10 = vmor %vm2027_vm12, %vm2028_vm0  ;;  %v2048_v0 = vand.u32 2147483648, %v2019_v5  ;;  %v2046_v1 = vand.u32 2147483647, %v2019_v5  ;;  %vm2042_vm8 = vweird.f32 %v2019_v5 }
0x17cc   :  { %v2024_v35 = vsub.f32 1.0, %v2023_v27 }
0x17cd   :  { %v2049_v2 = vor.u32 1.1754944e-38, %v2048_v0  ;;  %vm2047_vm1 = vcmp.eq.f32.partialorder %v2046_v1, 8.507059e+37 }
0x17ce   :  { %v2025_v28 = vmul.f32 %v2405_v25, %v2024_v35 }
0x17d0   :  { %v2026_v36 = vadd.f32 %v2405_v25, %v2025_v28 }
0x17d1   :  { %v2407_v38 = vpop.eup %2406 }
0x17d2   :  { %v2038_v34 = vmul.f32 %v2407_v38, %v2019_v5  ;;  %v2030_v41 = vsel %vm2029_vm10, %v2405_v25, %v2026_v36  ;;  %vm2043_vm7 = vweird.f32 %v2407_v38 }
0x17d3   :  { %v2035_v16 = vsel %vm2032_vm13, %v2034_v39, %v2030_v41  ;;  %vm2044_vm11 = vmor %vm2042_vm8, %vm2043_vm7 }
0x17d4   :  { %v2039_v42 = vsub.f32 1.0, %v2038_v34  ;;  %v2036_v40 = vmul.f32 %v2403_v12, %v2035_v16 }
0x17d6   :  { %v2040_v60 = vmul.f32 %v2407_v38, %v2039_v42  ;;  %2054 = vperm.xlu1 %2255, %v2036_v40  }
0x17d8   :  { %v2041_v61 = vadd.f32 %v2407_v38, %v2040_v60 }
0x17da   :  { %v2045_v4 = vsel %vm2044_vm11, %v2407_v38, %v2041_v61 }
0x17db   :  { %v2050_v6 = vsel %vm2047_vm1, %v2049_v2, %v2045_v4 }
0x17dc   :  { %v2051_v8 = vmul.f32 %v2401_v59, %v2050_v6 }
0x17de   :  { %2059 = vperm.xlu0 %2254, %v2051_v8  }
0x1848   :  { %v2055_v15 = vpop.permute.xlu1 %2054 }
0x1849   :  { %v2062_v26 = vmul.f32 %v2411_v23, %v2055_v15 }
0x1850   :  { %v2060_v17 = vpop.permute.xlu0 %2059 }
0x1851   :  { %v2063_v21 = vmul.f32 %v2410_v19, %v2060_v17 }
0x1853   :  { %2243 = vmatpush.msk.msra.mxu0 %vm1843_vm15, %v2063_v21  ;;  %vm2146_vm15 = vcmask 25600  }
0x1855   :  { %2082 = vmatpush.msra.mxu0 %v2062_v26 }
0x1856   :  { %2244 = vmatmul.msk.f32.vlgmr.msra.gmra.mxu0 %vm1839_vm3, %v2835_v30 }
0x18d3   :  { %v2084_v31 = vpop.f32.mrf.mxu0 }
0x18d4   :  { %2245 = vmatmul.msk.f32.vlgmr.msra.gmra.mxu1 %vm1274_vm14, %v2084_v31 }
0x1951   :  { %v2119_v44 = vpop.f32.mrf.mxu1 }
0x1952   :  { %v2142_v46 = vadd.f32 %v2141_v37, %v2119_v44 }
0x1954   :  { %v2145_v43 = vadd.f32 %v2144_v45, %v2142_v46 }
0x1956   :  { %2147 = vst.msk [vmem:[#allocation6] sm:$0x3] %vm2146_vm15, %v2145_v43 }
0x1957   :  { %2158 = dma.vmem_to_hbm [thread:$0]  %s2154_s4, 32, %s2156_s1, [#allocation5]  }
0x1958   :  { %2462 = dma.done.wait [#allocation5], 32  }
0x1959   :  { %2463 = vsyncadd [#allocation5], 4294967264 }
0x195a   :  { %2163 = vsyncpa [#allocation4], 1 }
0x195b   :  { %2164 = vsyncpa [#allocation5], 1 }

</bundles_post_ra>
